<compile_context>
chip_gen: v7x
topology: tpu7x:2x2x1
jax: 0.10.0
libtpu: 0.0.40
codegen_flags: <defaults>
</compile_context>

<pallas_src>
import numpy as np
import jax
import jax.numpy as jnp
from jax import lax
from jax.experimental import pallas as pl
from jax.experimental.pallas import tpu as pltpu

_EPS = 1e-8         # PyTorch F.cosine_similarity eps
_BIG = 1e30         # finite "+inf" stand-in (identity for min, unreachable for DP sums)
_OUT_LANES = 128    # lane-dense output width


# --------------------------- small vector helpers ----------------------------
def _shift_right(v, d, fill):
    """w[:, j] = v[:, j-d] for j >= d else `fill`.  v: (1, M), d static."""
    m = v.shape[-1]
    if d >= m:
        return jnp.full_like(v, fill)
    pad = jnp.full((1, d), fill, dtype=v.dtype)
    return jnp.concatenate([pad, v[:, : m - d]], axis=-1)


def _prefix_scan(v, op, fill):
    """Inclusive scan along the lane axis (Hillis-Steele, ceil(log2 M) steps)."""
    m = v.shape[-1]
    d = 1
    while d < m:
        v = op(v, _shift_right(v, d, fill))
        d *= 2
    return v


# ------------------------------- fused kernel --------------------------------
def _make_dtw_kernel(N, M, D):
    unroll = (N + M) <= 64    # unroll only short fixed trip counts (bounds compile time)

    def kernel(x_ref, y_ref, out_ref):
        x = x_ref[0]                # (N, D) f32
        y = y_ref[0]                # (M, D) f32

        # ---- 1. cosine-distance cost matrix (MXU + VPU/EUP), stays on-chip ----
        dot = lax.dot_general(
            x, y, (((1,), (1,)), ((), ())),
            preferred_element_type=jnp.float32,
            precision=lax.Precision.HIGHEST,   # see header comment
        )                                                            # (N, M)
        # PyTorch semantics: x.y / (max(||x||, eps) * max(||y||, eps))
        inv_x = jnp.minimum(lax.rsqrt(jnp.sum(x * x, axis=1, keepdims=True)), 1.0 / _EPS)  # (N,1)
        inv_y = jnp.minimum(lax.rsqrt(jnp.sum(y * y, axis=1, keepdims=True)), 1.0 / _EPS)  # (M,1)
        cost = 1.0 - dot * (inv_x * inv_y.T)                         # (N, M)

        row_iota = lax.broadcasted_iota(jnp.int32, (N, M), 0)
        col_iota = lax.broadcasted_iota(jnp.int32, (N, M), 1)
        lane_iota = lax.broadcasted_iota(jnp.int32, (1, M), 1)

        def row_of(mat, ii):
            # (1, M) row ii of mat via masked sublane reduce (no dynamic indexing).
            return jnp.sum(jnp.where(row_iota == ii, mat, 0.0), axis=0, keepdims=True)

        def lane_of(vec, jj):
            # (1, 1) element jj of a (1, M) vector via masked lane reduce.
            return jnp.sum(jnp.where(lane_iota == jj, vec, 0.0), axis=1, keepdims=True)

        # ---- 2. DP, vectorized row-by-row with a min-plus prefix scan ----------
        # tc[i,j] = cost[i,j] + min(tc[i-1,j-1], tc[i-1,j], tc[i,j-1])
        # Within a row:  a[j] = min(tc[i-1,j-1], tc[i-1,j]) + cost[i,j]
        #                tc[i,j] = cummin_j(a - cumsum(cost_row))[j] + cumsum(cost_row)[j]
        row0 = _prefix_scan(row_of(cost, 0), jnp.add, 0.0)           # tc[0, :]
        tc0 = jnp.where(row_iota == 0, row0, 0.0)

        def dp_body(i, carry):
            prev, tc = carry                                         # prev = tc[i-1, :]
            c = row_of(cost, i)
            a = jnp.minimum(prev, _shift_right(prev, 1, _BIG)) + c
            s = _prefix_scan(c, jnp.add, 0.0)
            row = _prefix_scan(a - s, jnp.minimum, _BIG) + s         # tc[i, :]
            tc = jnp.where(row_iota == i, row, tc)
            return row, tc

        _, tc = lax.fori_loop(1, N, dp_body, (row0, tc0), unroll=unroll)

        # ---- 3. backtrace: O(N+M) sequential walk, values via masked reduces ---
        # Same priority as PyTorch (diag > up > left) via argmin tie-break.
        # TODO(synk): the original prints 'error' (and loops forever) if its f64
        # float-equality check fails; that FP edge case is resolved by argmin here.
        path0 = ((row_iota == N - 1) & (col_iota == M - 1)).astype(jnp.float32)

        def bt_body(_, carry):
            i, j, path = carry                                       # i, j: (1,1) int32
            active = jnp.logical_and(i > 0, j > 0)
            prev_r = row_of(tc, i - 1)                               # tc[i-1, :]
            cur_r = row_of(tc, i)                                    # tc[i,   :]
            d = lane_of(prev_r, j - 1)
            u = lane_of(prev_r, j)
            l = lane_of(cur_r, j - 1)
            mn = jnp.minimum(jnp.minimum(d, u), l)
            go_diag = d == mn
            go_up = jnp.logical_and(jnp.logical_not(go_diag), u == mn)
            ni = jnp.where(jnp.logical_or(go_diag, go_up), i - 1, i)
            nj = jnp.where(go_diag, j - 1, jnp.where(go_up, j, j - 1))
            ni = jnp.where(active, ni, i)
            nj = jnp.where(active, nj, j)
            mark = active & (row_iota == ni) & (col_iota == nj)
            path = jnp.maximum(path, mark.astype(jnp.float32))
            return ni, nj, path

        init = (jnp.full((1, 1), N - 1, jnp.int32),
                jnp.full((1, 1), M - 1, jnp.int32),
                path0)
        _, _, path = lax.fori_loop(0, N + M - 2, bt_body, init, unroll=unroll)
        path = jnp.maximum(
            path, ((row_iota == 0) & (col_iota == 0)).astype(jnp.float32))

        # ---- 4. masked column sums + logsumexp (VPU/XLU/EUP) --------------------
        s_pos = jnp.sum(cost * path, axis=0, keepdims=True)          # (1, M)
        s_neg = jnp.sum(cost, axis=0, keepdims=True)                 # (1, M)
        mp = jnp.max(s_pos, axis=1, keepdims=True)
        mg = jnp.max(s_neg, axis=1, keepdims=True)
        lse_p = mp + jnp.log(jnp.sum(jnp.exp(s_pos - mp), axis=1, keepdims=True))
        lse_n = mg + jnp.log(jnp.sum(jnp.exp(s_neg - mg), axis=1, keepdims=True))
        # Lane-dense output block (unmasked vst): replicate the scalar across 128 lanes.
        out_ref[0] = jnp.broadcast_to(lse_p - lse_n, (1, _OUT_LANES))

    return kernel


@jax.jit
def dtw_forward(x, y):
    x = x.astype(jnp.float32)
    y = y.astype(jnp.float32)
    B, N, D = x.shape
    M = y.shape[1]
    out = pl.pallas_call(
        _make_dtw_kernel(N, M, D),
        out_shape=jax.ShapeDtypeStruct((B, 1, _OUT_LANES), jnp.float32),
        grid_spec=pltpu.PrefetchScalarGridSpec(
            num_scalar_prefetch=0,
            grid=(B,),
            in_specs=[pl.BlockSpec((1, N, D), lambda b: (b, 0, 0)),
                      pl.BlockSpec((1, M, D), lambda b: (b, 0, 0))],
            out_specs=pl.BlockSpec((1, 1, _OUT_LANES), lambda b: (b, 0, 0)),
        ),
        compiler_params=pltpu.CompilerParams(
            dimension_semantics=("parallel",),   # independent batches; 2x on v7x megacore
        ),
    )(x, y)
    return out[:, 0, 0]


# ---------------------------- pure-numpy reference ----------------------------
def _reference(x, y):
    x = np.asarray(x, np.float64)
    y = np.asarray(y, np.float64)
    B, N, _ = x.shape
    M = y.shape[1]
    dot = np.einsum("bnd,bmd->bnm", x, y)
    nx = np.maximum(np.sqrt(np.sum(x * x, -1)), _EPS)
    ny = np.maximum(np.sqrt(np.sum(y * y, -1)), _EPS)
    cost = 1.0 - dot / (nx[:, :, None] * ny[:, None, :])
    out = np.zeros(B)
    for b in range(B):
        tc = np.full((N, M), np.inf)
        tc[0, 0] = cost[b, 0, 0]
        for i in range(1, N):
            tc[i, 0] = tc[i - 1, 0] + cost[b, i, 0]
        for j in range(1, M):
            tc[0, j] = tc[0, j - 1] + cost[b, 0, j]
        for i in range(1, N):
            for j in range(1, M):
                tc[i, j] = min(tc[i - 1, j - 1], tc[i - 1, j], tc[i, j - 1]) + cost[b, i, j]
        path = np.zeros((N, M))
        path[N - 1, M - 1] = 1
        i, j = N - 1, M - 1
        while not (i == 0 or j == 0):
            d, u, l = tc[i - 1, j - 1], tc[i - 1, j], tc[i, j - 1]
            m = min(d, u, l)
            if d == m:
                i, j = i - 1, j - 1
            elif u == m:
                i = i - 1
            else:
                j = j - 1
            path[i, j] = 1
        path[0, 0] = 1
        s_pos = np.sum(cost[b] * path, axis=0)
        s_neg = np.sum(cost[b], axis=0)
        lse = lambda s: float(np.max(s) + np.log(np.sum(np.exp(s - np.max(s)))))
        out[b] = lse(s_pos) - lse(s_neg)
    return out


if __name__ == "__main__":
    B, N, M, D = 2, 8, 8, 32
    key = jax.random.PRNGKey(0)
    kx, ky = jax.random.split(key)
    x = jax.random.normal(kx, (B, N, D), dtype=jnp.float32)
    y = jax.random.normal(ky, (B, M, D), dtype=jnp.float32)

    out = jax.block_until_ready(dtw_forward(x, y))

    ref = _reference(np.asarray(x), np.asarray(y))
    assert out.shape == (B,)
    assert np.allclose(np.asarray(out, np.float64), ref, atol=2e-3, rtol=2e-3), (out, ref)
    print("KERNEL_OK")
</pallas_src>

<mosaic_0001>
module attributes {stable_mosaic.version = 11 : i64} {
  func.func @kernel(%arg0: i32, %arg1: memref<1x8x32xf32, #tpu.memory_space<vmem>>, %arg2: memref<1x8x32xf32, #tpu.memory_space<vmem>>, %arg3: memref<1x1x128xf32, #tpu.memory_space<vmem>>) attributes {dimension_semantics = [#tpu.dimension_semantics<parallel>], iteration_bounds = array<i64: 2>, scalar_prefetch = 0 : i64, scratch_operands = 0 : i64, tpu.core_type = #tpu.core_type<tc>, window_params = [{transform_indices = @transform_0, window_bounds = array<i64: 1, 8, 32>}, {transform_indices = @transform_1, window_bounds = array<i64: 1, 8, 32>}, {transform_indices = @transform_2, window_bounds = array<i64: 1, 1, 128>}]} {
    %c0 = arith.constant 0 : index
    %c0_0 = arith.constant 0 : index
    %c0_1 = arith.constant 0 : index
    %0 = vector.load %arg1[%c0, %c0_0, %c0_1] : memref<1x8x32xf32, #tpu.memory_space<vmem>>, vector<1x8x32xf32>
    %1 = vector.shape_cast %0 : vector<1x8x32xf32> to vector<8x32xf32>
    %c0_2 = arith.constant 0 : index
    %c0_3 = arith.constant 0 : index
    %c0_4 = arith.constant 0 : index
    %2 = vector.load %arg2[%c0_2, %c0_3, %c0_4] : memref<1x8x32xf32, #tpu.memory_space<vmem>>, vector<1x8x32xf32>
    %3 = vector.shape_cast %2 : vector<1x8x32xf32> to vector<8x32xf32>
    %cst = arith.constant dense<0.000000e+00> : vector<8x8xf32>
    %4 = tpu.matmul %1, %3, %cst {dimension_numbers = #tpu.dot_dimension_numbers<[1], [1], [0], [0], [0, 0, 1, 0], [], []>, precision = #tpu.contract_precision<fp32>} : vector<8x32xf32>, vector<8x32xf32>, vector<8x8xf32> -> vector<8x8xf32>
    %5 = arith.mulf %1, %1 : vector<8x32xf32>
    %cst_5 = arith.constant dense<0.000000e+00> : vector<8xf32>
    %6 = vector.multi_reduction <add>, %5, %cst_5 [1] : vector<8x32xf32> to vector<8xf32>
    %7 = vector.shape_cast %6 : vector<8xf32> to vector<8x1xf32>
    %8 = math.rsqrt %7 : vector<8x1xf32>
    %cst_6 = arith.constant 1.000000e+08 : f32
    %9 = vector.broadcast %cst_6 : f32 to vector<8x1xf32>
    %10 = arith.minimumf %8, %9 : vector<8x1xf32>
    %11 = arith.mulf %3, %3 : vector<8x32xf32>
    %cst_7 = arith.constant dense<0.000000e+00> : vector<8xf32>
    %12 = vector.multi_reduction <add>, %11, %cst_7 [1] : vector<8x32xf32> to vector<8xf32>
    %13 = vector.shape_cast %12 : vector<8xf32> to vector<8x1xf32>
    %14 = math.rsqrt %13 : vector<8x1xf32>
    %cst_8 = arith.constant 1.000000e+08 : f32
    %15 = vector.broadcast %cst_8 : f32 to vector<8x1xf32>
    %16 = arith.minimumf %14, %15 : vector<8x1xf32>
    %17 = tpu.transpose %16, [1, 0] : vector<8x1xf32> -> vector<1x8xf32>
    %18 = vector.broadcast %10 : vector<8x1xf32> to vector<8x8xf32>
    %19 = vector.broadcast %17 : vector<1x8xf32> to vector<8x8xf32>
    %20 = arith.mulf %18, %19 : vector<8x8xf32>
    %21 = arith.mulf %4, %20 : vector<8x8xf32>
    %cst_9 = arith.constant 1.000000e+00 : f32
    %22 = vector.broadcast %cst_9 : f32 to vector<8x8xf32>
    %23 = arith.subf %22, %21 : vector<8x8xf32>
    %24 = tpu.iota {dimensions = array<i32: 0>} : vector<8x8xi32>
    %25 = tpu.iota {dimensions = array<i32: 1>} : vector<8x8xi32>
    %26 = tpu.iota {dimensions = array<i32: 1>} : vector<1x8xi32>
    %c0_i32 = arith.constant 0 : i32
    %27 = vector.broadcast %c0_i32 : i32 to vector<8x8xi32>
    %28 = arith.cmpi eq, %24, %27 : vector<8x8xi32>
    %cst_10 = arith.constant 0.000000e+00 : f32
    %29 = vector.broadcast %cst_10 : f32 to vector<8x8xf32>
    %30 = arith.select %28, %23, %29 : vector<8x8xi1>, vector<8x8xf32>
    %cst_11 = arith.constant dense<0.000000e+00> : vector<8xf32>
    %31 = vector.multi_reduction <add>, %30, %cst_11 [0] : vector<8x8xf32> to vector<8xf32>
    %32 = vector.shape_cast %31 : vector<8xf32> to vector<1x8xf32>
    %cst_12 = arith.constant 0.000000e+00 : f32
    %33 = vector.broadcast %cst_12 : f32 to vector<1x1xf32>
    %34 = vector.extract_strided_slice %32 {offsets = [0, 0], sizes = [1, 7], strides = [1, 1]} : vector<1x8xf32> to vector<1x7xf32>
    %35 = tpu.concatenate %33, %34 in 1 : vector<1x1xf32>, vector<1x7xf32> -> vector<1x8xf32>
    %36 = arith.addf %32, %35 : vector<1x8xf32>
    %cst_13 = arith.constant 0.000000e+00 : f32
    %37 = vector.broadcast %cst_13 : f32 to vector<1x2xf32>
    %38 = vector.extract_strided_slice %36 {offsets = [0, 0], sizes = [1, 6], strides = [1, 1]} : vector<1x8xf32> to vector<1x6xf32>
    %39 = tpu.concatenate %37, %38 in 1 : vector<1x2xf32>, vector<1x6xf32> -> vector<1x8xf32>
    %40 = arith.addf %36, %39 : vector<1x8xf32>
    %cst_14 = arith.constant 0.000000e+00 : f32
    %41 = vector.broadcast %cst_14 : f32 to vector<1x4xf32>
    %42 = vector.extract_strided_slice %40 {offsets = [0, 0], sizes = [1, 4], strides = [1, 1]} : vector<1x8xf32> to vector<1x4xf32>
    %43 = tpu.concatenate %41, %42 in 1 : vector<1x4xf32>, vector<1x4xf32> -> vector<1x8xf32>
    %44 = arith.addf %40, %43 : vector<1x8xf32>
    %c0_i32_15 = arith.constant 0 : i32
    %45 = vector.broadcast %c0_i32_15 : i32 to vector<8x8xi32>
    %46 = arith.cmpi eq, %24, %45 : vector<8x8xi32>
    %cst_16 = arith.constant 0.000000e+00 : f32
    %47 = vector.shape_cast %44 : vector<1x8xf32> to vector<1x8xf32>
    %48 = vector.broadcast %47 : vector<1x8xf32> to vector<8x8xf32>
    %49 = vector.broadcast %cst_16 : f32 to vector<8x8xf32>
    %50 = arith.select %46, %48, %49 : vector<8x8xi1>, vector<8x8xf32>
    %c1_i32 = arith.constant 1 : i32
    %51 = vector.broadcast %c1_i32 : i32 to vector<8x8xi32>
    %52 = arith.cmpi eq, %24, %51 : vector<8x8xi32>
    %cst_17 = arith.constant 0.000000e+00 : f32
    %53 = vector.broadcast %cst_17 : f32 to vector<8x8xf32>
    %54 = arith.select %52, %23, %53 : vector<8x8xi1>, vector<8x8xf32>
    %cst_18 = arith.constant dense<0.000000e+00> : vector<8xf32>
    %55 = vector.multi_reduction <add>, %54, %cst_18 [0] : vector<8x8xf32> to vector<8xf32>
    %56 = vector.shape_cast %55 : vector<8xf32> to vector<1x8xf32>
    %cst_19 = arith.constant 1.000000e+30 : f32
    %57 = vector.broadcast %cst_19 : f32 to vector<1x1xf32>
    %58 = vector.extract_strided_slice %44 {offsets = [0, 0], sizes = [1, 7], strides = [1, 1]} : vector<1x8xf32> to vector<1x7xf32>
    %59 = tpu.concatenate %57, %58 in 1 : vector<1x1xf32>, vector<1x7xf32> -> vector<1x8xf32>
    %60 = arith.minimumf %44, %59 : vector<1x8xf32>
    %61 = arith.addf %60, %56 : vector<1x8xf32>
    %cst_20 = arith.constant 0.000000e+00 : f32
    %62 = vector.broadcast %cst_20 : f32 to vector<1x1xf32>
    %63 = vector.extract_strided_slice %56 {offsets = [0, 0], sizes = [1, 7], strides = [1, 1]} : vector<1x8xf32> to vector<1x7xf32>
    %64 = tpu.concatenate %62, %63 in 1 : vector<1x1xf32>, vector<1x7xf32> -> vector<1x8xf32>
    %65 = arith.addf %56, %64 : vector<1x8xf32>
    %cst_21 = arith.constant 0.000000e+00 : f32
    %66 = vector.broadcast %cst_21 : f32 to vector<1x2xf32>
    %67 = vector.extract_strided_slice %65 {offsets = [0, 0], sizes = [1, 6], strides = [1, 1]} : vector<1x8xf32> to vector<1x6xf32>
    %68 = tpu.concatenate %66, %67 in 1 : vector<1x2xf32>, vector<1x6xf32> -> vector<1x8xf32>
    %69 = arith.addf %65, %68 : vector<1x8xf32>
    %cst_22 = arith.constant 0.000000e+00 : f32
    %70 = vector.broadcast %cst_22 : f32 to vector<1x4xf32>
    %71 = vector.extract_strided_slice %69 {offsets = [0, 0], sizes = [1, 4], strides = [1, 1]} : vector<1x8xf32> to vector<1x4xf32>
    %72 = tpu.concatenate %70, %71 in 1 : vector<1x4xf32>, vector<1x4xf32> -> vector<1x8xf32>
    %73 = arith.addf %69, %72 : vector<1x8xf32>
    %74 = arith.subf %61, %73 : vector<1x8xf32>
    %cst_23 = arith.constant 1.000000e+30 : f32
    %75 = vector.broadcast %cst_23 : f32 to vector<1x1xf32>
    %76 = vector.extract_strided_slice %74 {offsets = [0, 0], sizes = [1, 7], strides = [1, 1]} : vector<1x8xf32> to vector<1x7xf32>
    %77 = tpu.concatenate %75, %76 in 1 : vector<1x1xf32>, vector<1x7xf32> -> vector<1x8xf32>
    %78 = arith.minimumf %74, %77 : vector<1x8xf32>
    %cst_24 = arith.constant 1.000000e+30 : f32
    %79 = vector.broadcast %cst_24 : f32 to vector<1x2xf32>
    %80 = vector.extract_strided_slice %78 {offsets = [0, 0], sizes = [1, 6], strides = [1, 1]} : vector<1x8xf32> to vector<1x6xf32>
    %81 = tpu.concatenate %79, %80 in 1 : vector<1x2xf32>, vector<1x6xf32> -> vector<1x8xf32>
    %82 = arith.minimumf %78, %81 : vector<1x8xf32>
    %cst_25 = arith.constant 1.000000e+30 : f32
    %83 = vector.broadcast %cst_25 : f32 to vector<1x4xf32>
    %84 = vector.extract_strided_slice %82 {offsets = [0, 0], sizes = [1, 4], strides = [1, 1]} : vector<1x8xf32> to vector<1x4xf32>
    %85 = tpu.concatenate %83, %84 in 1 : vector<1x4xf32>, vector<1x4xf32> -> vector<1x8xf32>
    %86 = arith.minimumf %82, %85 : vector<1x8xf32>
    %87 = arith.addf %86, %73 : vector<1x8xf32>
    %88 = vector.broadcast %c1_i32 : i32 to vector<8x8xi32>
    %89 = arith.cmpi eq, %24, %88 : vector<8x8xi32>
    %90 = vector.shape_cast %87 : vector<1x8xf32> to vector<1x8xf32>
    %91 = vector.broadcast %90 : vector<1x8xf32> to vector<8x8xf32>
    %92 = arith.select %89, %91, %50 : vector<8x8xi1>, vector<8x8xf32>
    %c2_i32 = arith.constant 2 : i32
    %93 = vector.broadcast %c2_i32 : i32 to vector<8x8xi32>
    %94 = arith.cmpi eq, %24, %93 : vector<8x8xi32>
    %cst_26 = arith.constant 0.000000e+00 : f32
    %95 = vector.broadcast %cst_26 : f32 to vector<8x8xf32>
    %96 = arith.select %94, %23, %95 : vector<8x8xi1>, vector<8x8xf32>
    %cst_27 = arith.constant dense<0.000000e+00> : vector<8xf32>
    %97 = vector.multi_reduction <add>, %96, %cst_27 [0] : vector<8x8xf32> to vector<8xf32>
    %98 = vector.shape_cast %97 : vector<8xf32> to vector<1x8xf32>
    %cst_28 = arith.constant 1.000000e+30 : f32
    %99 = vector.broadcast %cst_28 : f32 to vector<1x1xf32>
    %100 = vector.extract_strided_slice %87 {offsets = [0, 0], sizes = [1, 7], strides = [1, 1]} : vector<1x8xf32> to vector<1x7xf32>
    %101 = tpu.concatenate %99, %100 in 1 : vector<1x1xf32>, vector<1x7xf32> -> vector<1x8xf32>
    %102 = arith.minimumf %87, %101 : vector<1x8xf32>
    %103 = arith.addf %102, %98 : vector<1x8xf32>
    %cst_29 = arith.constant 0.000000e+00 : f32
    %104 = vector.broadcast %cst_29 : f32 to vector<1x1xf32>
    %105 = vector.extract_strided_slice %98 {offsets = [0, 0], sizes = [1, 7], strides = [1, 1]} : vector<1x8xf32> to vector<1x7xf32>
    %106 = tpu.concatenate %104, %105 in 1 : vector<1x1xf32>, vector<1x7xf32> -> vector<1x8xf32>
    %107 = arith.addf %98, %106 : vector<1x8xf32>
    %cst_30 = arith.constant 0.000000e+00 : f32
    %108 = vector.broadcast %cst_30 : f32 to vector<1x2xf32>
    %109 = vector.extract_strided_slice %107 {offsets = [0, 0], sizes = [1, 6], strides = [1, 1]} : vector<1x8xf32> to vector<1x6xf32>
    %110 = tpu.concatenate %108, %109 in 1 : vector<1x2xf32>, vector<1x6xf32> -> vector<1x8xf32>
    %111 = arith.addf %107, %110 : vector<1x8xf32>
    %cst_31 = arith.constant 0.000000e+00 : f32
    %112 = vector.broadcast %cst_31 : f32 to vector<1x4xf32>
    %113 = vector.extract_strided_slice %111 {offsets = [0, 0], sizes = [1, 4], strides = [1, 1]} : vector<1x8xf32> to vector<1x4xf32>
    %114 = tpu.concatenate %112, %113 in 1 : vector<1x4xf32>, vector<1x4xf32> -> vector<1x8xf32>
    %115 = arith.addf %111, %114 : vector<1x8xf32>
    %116 = arith.subf %103, %115 : vector<1x8xf32>
    %cst_32 = arith.constant 1.000000e+30 : f32
    %117 = vector.broadcast %cst_32 : f32 to vector<1x1xf32>
    %118 = vector.extract_strided_slice %116 {offsets = [0, 0], sizes = [1, 7], strides = [1, 1]} : vector<1x8xf32> to vector<1x7xf32>
    %119 = tpu.concatenate %117, %118 in 1 : vector<1x1xf32>, vector<1x7xf32> -> vector<1x8xf32>
    %120 = arith.minimumf %116, %119 : vector<1x8xf32>
    %cst_33 = arith.constant 1.000000e+30 : f32
    %121 = vector.broadcast %cst_33 : f32 to vector<1x2xf32>
    %122 = vector.extract_strided_slice %120 {offsets = [0, 0], sizes = [1, 6], strides = [1, 1]} : vector<1x8xf32> to vector<1x6xf32>
    %123 = tpu.concatenate %121, %122 in 1 : vector<1x2xf32>, vector<1x6xf32> -> vector<1x8xf32>
    %124 = arith.minimumf %120, %123 : vector<1x8xf32>
    %cst_34 = arith.constant 1.000000e+30 : f32
    %125 = vector.broadcast %cst_34 : f32 to vector<1x4xf32>
    %126 = vector.extract_strided_slice %124 {offsets = [0, 0], sizes = [1, 4], strides = [1, 1]} : vector<1x8xf32> to vector<1x4xf32>
    %127 = tpu.concatenate %125, %126 in 1 : vector<1x4xf32>, vector<1x4xf32> -> vector<1x8xf32>
    %128 = arith.minimumf %124, %127 : vector<1x8xf32>
    %129 = arith.addf %128, %115 : vector<1x8xf32>
    %130 = vector.broadcast %c2_i32 : i32 to vector<8x8xi32>
    %131 = arith.cmpi eq, %24, %130 : vector<8x8xi32>
    %132 = vector.shape_cast %129 : vector<1x8xf32> to vector<1x8xf32>
    %133 = vector.broadcast %132 : vector<1x8xf32> to vector<8x8xf32>
    %134 = arith.select %131, %133, %92 : vector<8x8xi1>, vector<8x8xf32>
    %c3_i32 = arith.constant 3 : i32
    %135 = vector.broadcast %c3_i32 : i32 to vector<8x8xi32>
    %136 = arith.cmpi eq, %24, %135 : vector<8x8xi32>
    %cst_35 = arith.constant 0.000000e+00 : f32
    %137 = vector.broadcast %cst_35 : f32 to vector<8x8xf32>
    %138 = arith.select %136, %23, %137 : vector<8x8xi1>, vector<8x8xf32>
    %cst_36 = arith.constant dense<0.000000e+00> : vector<8xf32>
    %139 = vector.multi_reduction <add>, %138, %cst_36 [0] : vector<8x8xf32> to vector<8xf32>
    %140 = vector.shape_cast %139 : vector<8xf32> to vector<1x8xf32>
    %cst_37 = arith.constant 1.000000e+30 : f32
    %141 = vector.broadcast %cst_37 : f32 to vector<1x1xf32>
    %142 = vector.extract_strided_slice %129 {offsets = [0, 0], sizes = [1, 7], strides = [1, 1]} : vector<1x8xf32> to vector<1x7xf32>
    %143 = tpu.concatenate %141, %142 in 1 : vector<1x1xf32>, vector<1x7xf32> -> vector<1x8xf32>
    %144 = arith.minimumf %129, %143 : vector<1x8xf32>
    %145 = arith.addf %144, %140 : vector<1x8xf32>
    %cst_38 = arith.constant 0.000000e+00 : f32
    %146 = vector.broadcast %cst_38 : f32 to vector<1x1xf32>
    %147 = vector.extract_strided_slice %140 {offsets = [0, 0], sizes = [1, 7], strides = [1, 1]} : vector<1x8xf32> to vector<1x7xf32>
    %148 = tpu.concatenate %146, %147 in 1 : vector<1x1xf32>, vector<1x7xf32> -> vector<1x8xf32>
    %149 = arith.addf %140, %148 : vector<1x8xf32>
    %cst_39 = arith.constant 0.000000e+00 : f32
    %150 = vector.broadcast %cst_39 : f32 to vector<1x2xf32>
    %151 = vector.extract_strided_slice %149 {offsets = [0, 0], sizes = [1, 6], strides = [1, 1]} : vector<1x8xf32> to vector<1x6xf32>
    %152 = tpu.concatenate %150, %151 in 1 : vector<1x2xf32>, vector<1x6xf32> -> vector<1x8xf32>
    %153 = arith.addf %149, %152 : vector<1x8xf32>
    %cst_40 = arith.constant 0.000000e+00 : f32
    %154 = vector.broadcast %cst_40 : f32 to vector<1x4xf32>
    %155 = vector.extract_strided_slice %153 {offsets = [0, 0], sizes = [1, 4], strides = [1, 1]} : vector<1x8xf32> to vector<1x4xf32>
    %156 = tpu.concatenate %154, %155 in 1 : vector<1x4xf32>, vector<1x4xf32> -> vector<1x8xf32>
    %157 = arith.addf %153, %156 : vector<1x8xf32>
    %158 = arith.subf %145, %157 : vector<1x8xf32>
    %cst_41 = arith.constant 1.000000e+30 : f32
    %159 = vector.broadcast %cst_41 : f32 to vector<1x1xf32>
    %160 = vector.extract_strided_slice %158 {offsets = [0, 0], sizes = [1, 7], strides = [1, 1]} : vector<1x8xf32> to vector<1x7xf32>
    %161 = tpu.concatenate %159, %160 in 1 : vector<1x1xf32>, vector<1x7xf32> -> vector<1x8xf32>
    %162 = arith.minimumf %158, %161 : vector<1x8xf32>
    %cst_42 = arith.constant 1.000000e+30 : f32
    %163 = vector.broadcast %cst_42 : f32 to vector<1x2xf32>
    %164 = vector.extract_strided_slice %162 {offsets = [0, 0], sizes = [1, 6], strides = [1, 1]} : vector<1x8xf32> to vector<1x6xf32>
    %165 = tpu.concatenate %163, %164 in 1 : vector<1x2xf32>, vector<1x6xf32> -> vector<1x8xf32>
    %166 = arith.minimumf %162, %165 : vector<1x8xf32>
    %cst_43 = arith.constant 1.000000e+30 : f32
    %167 = vector.broadcast %cst_43 : f32 to vector<1x4xf32>
    %168 = vector.extract_strided_slice %166 {offsets = [0, 0], sizes = [1, 4], strides = [1, 1]} : vector<1x8xf32> to vector<1x4xf32>
    %169 = tpu.concatenate %167, %168 in 1 : vector<1x4xf32>, vector<1x4xf32> -> vector<1x8xf32>
    %170 = arith.minimumf %166, %169 : vector<1x8xf32>
    %171 = arith.addf %170, %157 : vector<1x8xf32>
    %172 = vector.broadcast %c3_i32 : i32 to vector<8x8xi32>
    %173 = arith.cmpi eq, %24, %172 : vector<8x8xi32>
    %174 = vector.shape_cast %171 : vector<1x8xf32> to vector<1x8xf32>
    %175 = vector.broadcast %174 : vector<1x8xf32> to vector<8x8xf32>
    %176 = arith.select %173, %175, %134 : vector<8x8xi1>, vector<8x8xf32>
    %c4_i32 = arith.constant 4 : i32
    %177 = vector.broadcast %c4_i32 : i32 to vector<8x8xi32>
    %178 = arith.cmpi eq, %24, %177 : vector<8x8xi32>
    %cst_44 = arith.constant 0.000000e+00 : f32
    %179 = vector.broadcast %cst_44 : f32 to vector<8x8xf32>
    %180 = arith.select %178, %23, %179 : vector<8x8xi1>, vector<8x8xf32>
    %cst_45 = arith.constant dense<0.000000e+00> : vector<8xf32>
    %181 = vector.multi_reduction <add>, %180, %cst_45 [0] : vector<8x8xf32> to vector<8xf32>
    %182 = vector.shape_cast %181 : vector<8xf32> to vector<1x8xf32>
    %cst_46 = arith.constant 1.000000e+30 : f32
    %183 = vector.broadcast %cst_46 : f32 to vector<1x1xf32>
    %184 = vector.extract_strided_slice %171 {offsets = [0, 0], sizes = [1, 7], strides = [1, 1]} : vector<1x8xf32> to vector<1x7xf32>
    %185 = tpu.concatenate %183, %184 in 1 : vector<1x1xf32>, vector<1x7xf32> -> vector<1x8xf32>
    %186 = arith.minimumf %171, %185 : vector<1x8xf32>
    %187 = arith.addf %186, %182 : vector<1x8xf32>
    %cst_47 = arith.constant 0.000000e+00 : f32
    %188 = vector.broadcast %cst_47 : f32 to vector<1x1xf32>
    %189 = vector.extract_strided_slice %182 {offsets = [0, 0], sizes = [1, 7], strides = [1, 1]} : vector<1x8xf32> to vector<1x7xf32>
    %190 = tpu.concatenate %188, %189 in 1 : vector<1x1xf32>, vector<1x7xf32> -> vector<1x8xf32>
    %191 = arith.addf %182, %190 : vector<1x8xf32>
    %cst_48 = arith.constant 0.000000e+00 : f32
    %192 = vector.broadcast %cst_48 : f32 to vector<1x2xf32>
    %193 = vector.extract_strided_slice %191 {offsets = [0, 0], sizes = [1, 6], strides = [1, 1]} : vector<1x8xf32> to vector<1x6xf32>
    %194 = tpu.concatenate %192, %193 in 1 : vector<1x2xf32>, vector<1x6xf32> -> vector<1x8xf32>
    %195 = arith.addf %191, %194 : vector<1x8xf32>
    %cst_49 = arith.constant 0.000000e+00 : f32
    %196 = vector.broadcast %cst_49 : f32 to vector<1x4xf32>
    %197 = vector.extract_strided_slice %195 {offsets = [0, 0], sizes = [1, 4], strides = [1, 1]} : vector<1x8xf32> to vector<1x4xf32>
    %198 = tpu.concatenate %196, %197 in 1 : vector<1x4xf32>, vector<1x4xf32> -> vector<1x8xf32>
    %199 = arith.addf %195, %198 : vector<1x8xf32>
    %200 = arith.subf %187, %199 : vector<1x8xf32>
    %cst_50 = arith.constant 1.000000e+30 : f32
    %201 = vector.broadcast %cst_50 : f32 to vector<1x1xf32>
    %202 = vector.extract_strided_slice %200 {offsets = [0, 0], sizes = [1, 7], strides = [1, 1]} : vector<1x8xf32> to vector<1x7xf32>
    %203 = tpu.concatenate %201, %202 in 1 : vector<1x1xf32>, vector<1x7xf32> -> vector<1x8xf32>
    %204 = arith.minimumf %200, %203 : vector<1x8xf32>
    %cst_51 = arith.constant 1.000000e+30 : f32
    %205 = vector.broadcast %cst_51 : f32 to vector<1x2xf32>
    %206 = vector.extract_strided_slice %204 {offsets = [0, 0], sizes = [1, 6], strides = [1, 1]} : vector<1x8xf32> to vector<1x6xf32>
    %207 = tpu.concatenate %205, %206 in 1 : vector<1x2xf32>, vector<1x6xf32> -> vector<1x8xf32>
    %208 = arith.minimumf %204, %207 : vector<1x8xf32>
    %cst_52 = arith.constant 1.000000e+30 : f32
    %209 = vector.broadcast %cst_52 : f32 to vector<1x4xf32>
    %210 = vector.extract_strided_slice %208 {offsets = [0, 0], sizes = [1, 4], strides = [1, 1]} : vector<1x8xf32> to vector<1x4xf32>
    %211 = tpu.concatenate %209, %210 in 1 : vector<1x4xf32>, vector<1x4xf32> -> vector<1x8xf32>
    %212 = arith.minimumf %208, %211 : vector<1x8xf32>
    %213 = arith.addf %212, %199 : vector<1x8xf32>
    %214 = vector.broadcast %c4_i32 : i32 to vector<8x8xi32>
    %215 = arith.cmpi eq, %24, %214 : vector<8x8xi32>
    %216 = vector.shape_cast %213 : vector<1x8xf32> to vector<1x8xf32>
    %217 = vector.broadcast %216 : vector<1x8xf32> to vector<8x8xf32>
    %218 = arith.select %215, %217, %176 : vector<8x8xi1>, vector<8x8xf32>
    %c5_i32 = arith.constant 5 : i32
    %219 = vector.broadcast %c5_i32 : i32 to vector<8x8xi32>
    %220 = arith.cmpi eq, %24, %219 : vector<8x8xi32>
    %cst_53 = arith.constant 0.000000e+00 : f32
    %221 = vector.broadcast %cst_53 : f32 to vector<8x8xf32>
    %222 = arith.select %220, %23, %221 : vector<8x8xi1>, vector<8x8xf32>
    %cst_54 = arith.constant dense<0.000000e+00> : vector<8xf32>
    %223 = vector.multi_reduction <add>, %222, %cst_54 [0] : vector<8x8xf32> to vector<8xf32>
    %224 = vector.shape_cast %223 : vector<8xf32> to vector<1x8xf32>
    %cst_55 = arith.constant 1.000000e+30 : f32
    %225 = vector.broadcast %cst_55 : f32 to vector<1x1xf32>
    %226 = vector.extract_strided_slice %213 {offsets = [0, 0], sizes = [1, 7], strides = [1, 1]} : vector<1x8xf32> to vector<1x7xf32>
    %227 = tpu.concatenate %225, %226 in 1 : vector<1x1xf32>, vector<1x7xf32> -> vector<1x8xf32>
    %228 = arith.minimumf %213, %227 : vector<1x8xf32>
    %229 = arith.addf %228, %224 : vector<1x8xf32>
    %cst_56 = arith.constant 0.000000e+00 : f32
    %230 = vector.broadcast %cst_56 : f32 to vector<1x1xf32>
    %231 = vector.extract_strided_slice %224 {offsets = [0, 0], sizes = [1, 7], strides = [1, 1]} : vector<1x8xf32> to vector<1x7xf32>
    %232 = tpu.concatenate %230, %231 in 1 : vector<1x1xf32>, vector<1x7xf32> -> vector<1x8xf32>
    %233 = arith.addf %224, %232 : vector<1x8xf32>
    %cst_57 = arith.constant 0.000000e+00 : f32
    %234 = vector.broadcast %cst_57 : f32 to vector<1x2xf32>
    %235 = vector.extract_strided_slice %233 {offsets = [0, 0], sizes = [1, 6], strides = [1, 1]} : vector<1x8xf32> to vector<1x6xf32>
    %236 = tpu.concatenate %234, %235 in 1 : vector<1x2xf32>, vector<1x6xf32> -> vector<1x8xf32>
    %237 = arith.addf %233, %236 : vector<1x8xf32>
    %cst_58 = arith.constant 0.000000e+00 : f32
    %238 = vector.broadcast %cst_58 : f32 to vector<1x4xf32>
    %239 = vector.extract_strided_slice %237 {offsets = [0, 0], sizes = [1, 4], strides = [1, 1]} : vector<1x8xf32> to vector<1x4xf32>
    %240 = tpu.concatenate %238, %239 in 1 : vector<1x4xf32>, vector<1x4xf32> -> vector<1x8xf32>
    %241 = arith.addf %237, %240 : vector<1x8xf32>
    %242 = arith.subf %229, %241 : vector<1x8xf32>
    %cst_59 = arith.constant 1.000000e+30 : f32
    %243 = vector.broadcast %cst_59 : f32 to vector<1x1xf32>
    %244 = vector.extract_strided_slice %242 {offsets = [0, 0], sizes = [1, 7], strides = [1, 1]} : vector<1x8xf32> to vector<1x7xf32>
    %245 = tpu.concatenate %243, %244 in 1 : vector<1x1xf32>, vector<1x7xf32> -> vector<1x8xf32>
    %246 = arith.minimumf %242, %245 : vector<1x8xf32>
    %cst_60 = arith.constant 1.000000e+30 : f32
    %247 = vector.broadcast %cst_60 : f32 to vector<1x2xf32>
    %248 = vector.extract_strided_slice %246 {offsets = [0, 0], sizes = [1, 6], strides = [1, 1]} : vector<1x8xf32> to vector<1x6xf32>
    %249 = tpu.concatenate %247, %248 in 1 : vector<1x2xf32>, vector<1x6xf32> -> vector<1x8xf32>
    %250 = arith.minimumf %246, %249 : vector<1x8xf32>
    %cst_61 = arith.constant 1.000000e+30 : f32
    %251 = vector.broadcast %cst_61 : f32 to vector<1x4xf32>
    %252 = vector.extract_strided_slice %250 {offsets = [0, 0], sizes = [1, 4], strides = [1, 1]} : vector<1x8xf32> to vector<1x4xf32>
    %253 = tpu.concatenate %251, %252 in 1 : vector<1x4xf32>, vector<1x4xf32> -> vector<1x8xf32>
    %254 = arith.minimumf %250, %253 : vector<1x8xf32>
    %255 = arith.addf %254, %241 : vector<1x8xf32>
    %256 = vector.broadcast %c5_i32 : i32 to vector<8x8xi32>
    %257 = arith.cmpi eq, %24, %256 : vector<8x8xi32>
    %258 = vector.shape_cast %255 : vector<1x8xf32> to vector<1x8xf32>
    %259 = vector.broadcast %258 : vector<1x8xf32> to vector<8x8xf32>
    %260 = arith.select %257, %259, %218 : vector<8x8xi1>, vector<8x8xf32>
    %c6_i32 = arith.constant 6 : i32
    %261 = vector.broadcast %c6_i32 : i32 to vector<8x8xi32>
    %262 = arith.cmpi eq, %24, %261 : vector<8x8xi32>
    %cst_62 = arith.constant 0.000000e+00 : f32
    %263 = vector.broadcast %cst_62 : f32 to vector<8x8xf32>
    %264 = arith.select %262, %23, %263 : vector<8x8xi1>, vector<8x8xf32>
    %cst_63 = arith.constant dense<0.000000e+00> : vector<8xf32>
    %265 = vector.multi_reduction <add>, %264, %cst_63 [0] : vector<8x8xf32> to vector<8xf32>
    %266 = vector.shape_cast %265 : vector<8xf32> to vector<1x8xf32>
    %cst_64 = arith.constant 1.000000e+30 : f32
    %267 = vector.broadcast %cst_64 : f32 to vector<1x1xf32>
    %268 = vector.extract_strided_slice %255 {offsets = [0, 0], sizes = [1, 7], strides = [1, 1]} : vector<1x8xf32> to vector<1x7xf32>
    %269 = tpu.concatenate %267, %268 in 1 : vector<1x1xf32>, vector<1x7xf32> -> vector<1x8xf32>
    %270 = arith.minimumf %255, %269 : vector<1x8xf32>
    %271 = arith.addf %270, %266 : vector<1x8xf32>
    %cst_65 = arith.constant 0.000000e+00 : f32
    %272 = vector.broadcast %cst_65 : f32 to vector<1x1xf32>
    %273 = vector.extract_strided_slice %266 {offsets = [0, 0], sizes = [1, 7], strides = [1, 1]} : vector<1x8xf32> to vector<1x7xf32>
    %274 = tpu.concatenate %272, %273 in 1 : vector<1x1xf32>, vector<1x7xf32> -> vector<1x8xf32>
    %275 = arith.addf %266, %274 : vector<1x8xf32>
    %cst_66 = arith.constant 0.000000e+00 : f32
    %276 = vector.broadcast %cst_66 : f32 to vector<1x2xf32>
    %277 = vector.extract_strided_slice %275 {offsets = [0, 0], sizes = [1, 6], strides = [1, 1]} : vector<1x8xf32> to vector<1x6xf32>
    %278 = tpu.concatenate %276, %277 in 1 : vector<1x2xf32>, vector<1x6xf32> -> vector<1x8xf32>
    %279 = arith.addf %275, %278 : vector<1x8xf32>
    %cst_67 = arith.constant 0.000000e+00 : f32
    %280 = vector.broadcast %cst_67 : f32 to vector<1x4xf32>
    %281 = vector.extract_strided_slice %279 {offsets = [0, 0], sizes = [1, 4], strides = [1, 1]} : vector<1x8xf32> to vector<1x4xf32>
    %282 = tpu.concatenate %280, %281 in 1 : vector<1x4xf32>, vector<1x4xf32> -> vector<1x8xf32>
    %283 = arith.addf %279, %282 : vector<1x8xf32>
    %284 = arith.subf %271, %283 : vector<1x8xf32>
    %cst_68 = arith.constant 1.000000e+30 : f32
    %285 = vector.broadcast %cst_68 : f32 to vector<1x1xf32>
    %286 = vector.extract_strided_slice %284 {offsets = [0, 0], sizes = [1, 7], strides = [1, 1]} : vector<1x8xf32> to vector<1x7xf32>
    %287 = tpu.concatenate %285, %286 in 1 : vector<1x1xf32>, vector<1x7xf32> -> vector<1x8xf32>
    %288 = arith.minimumf %284, %287 : vector<1x8xf32>
    %cst_69 = arith.constant 1.000000e+30 : f32
    %289 = vector.broadcast %cst_69 : f32 to vector<1x2xf32>
    %290 = vector.extract_strided_slice %288 {offsets = [0, 0], sizes = [1, 6], strides = [1, 1]} : vector<1x8xf32> to vector<1x6xf32>
    %291 = tpu.concatenate %289, %290 in 1 : vector<1x2xf32>, vector<1x6xf32> -> vector<1x8xf32>
    %292 = arith.minimumf %288, %291 : vector<1x8xf32>
    %cst_70 = arith.constant 1.000000e+30 : f32
    %293 = vector.broadcast %cst_70 : f32 to vector<1x4xf32>
    %294 = vector.extract_strided_slice %292 {offsets = [0, 0], sizes = [1, 4], strides = [1, 1]} : vector<1x8xf32> to vector<1x4xf32>
    %295 = tpu.concatenate %293, %294 in 1 : vector<1x4xf32>, vector<1x4xf32> -> vector<1x8xf32>
    %296 = arith.minimumf %292, %295 : vector<1x8xf32>
    %297 = arith.addf %296, %283 : vector<1x8xf32>
    %298 = vector.broadcast %c6_i32 : i32 to vector<8x8xi32>
    %299 = arith.cmpi eq, %24, %298 : vector<8x8xi32>
    %300 = vector.shape_cast %297 : vector<1x8xf32> to vector<1x8xf32>
    %301 = vector.broadcast %300 : vector<1x8xf32> to vector<8x8xf32>
    %302 = arith.select %299, %301, %260 : vector<8x8xi1>, vector<8x8xf32>
    %c7_i32 = arith.constant 7 : i32
    %303 = vector.broadcast %c7_i32 : i32 to vector<8x8xi32>
    %304 = arith.cmpi eq, %24, %303 : vector<8x8xi32>
    %cst_71 = arith.constant 0.000000e+00 : f32
    %305 = vector.broadcast %cst_71 : f32 to vector<8x8xf32>
    %306 = arith.select %304, %23, %305 : vector<8x8xi1>, vector<8x8xf32>
    %cst_72 = arith.constant dense<0.000000e+00> : vector<8xf32>
    %307 = vector.multi_reduction <add>, %306, %cst_72 [0] : vector<8x8xf32> to vector<8xf32>
    %308 = vector.shape_cast %307 : vector<8xf32> to vector<1x8xf32>
    %cst_73 = arith.constant 1.000000e+30 : f32
    %309 = vector.broadcast %cst_73 : f32 to vector<1x1xf32>
    %310 = vector.extract_strided_slice %297 {offsets = [0, 0], sizes = [1, 7], strides = [1, 1]} : vector<1x8xf32> to vector<1x7xf32>
    %311 = tpu.concatenate %309, %310 in 1 : vector<1x1xf32>, vector<1x7xf32> -> vector<1x8xf32>
    %312 = arith.minimumf %297, %311 : vector<1x8xf32>
    %313 = arith.addf %312, %308 : vector<1x8xf32>
    %cst_74 = arith.constant 0.000000e+00 : f32
    %314 = vector.broadcast %cst_74 : f32 to vector<1x1xf32>
    %315 = vector.extract_strided_slice %308 {offsets = [0, 0], sizes = [1, 7], strides = [1, 1]} : vector<1x8xf32> to vector<1x7xf32>
    %316 = tpu.concatenate %314, %315 in 1 : vector<1x1xf32>, vector<1x7xf32> -> vector<1x8xf32>
    %317 = arith.addf %308, %316 : vector<1x8xf32>
    %cst_75 = arith.constant 0.000000e+00 : f32
    %318 = vector.broadcast %cst_75 : f32 to vector<1x2xf32>
    %319 = vector.extract_strided_slice %317 {offsets = [0, 0], sizes = [1, 6], strides = [1, 1]} : vector<1x8xf32> to vector<1x6xf32>
    %320 = tpu.concatenate %318, %319 in 1 : vector<1x2xf32>, vector<1x6xf32> -> vector<1x8xf32>
    %321 = arith.addf %317, %320 : vector<1x8xf32>
    %cst_76 = arith.constant 0.000000e+00 : f32
    %322 = vector.broadcast %cst_76 : f32 to vector<1x4xf32>
    %323 = vector.extract_strided_slice %321 {offsets = [0, 0], sizes = [1, 4], strides = [1, 1]} : vector<1x8xf32> to vector<1x4xf32>
    %324 = tpu.concatenate %322, %323 in 1 : vector<1x4xf32>, vector<1x4xf32> -> vector<1x8xf32>
    %325 = arith.addf %321, %324 : vector<1x8xf32>
    %326 = arith.subf %313, %325 : vector<1x8xf32>
    %cst_77 = arith.constant 1.000000e+30 : f32
    %327 = vector.broadcast %cst_77 : f32 to vector<1x1xf32>
    %328 = vector.extract_strided_slice %326 {offsets = [0, 0], sizes = [1, 7], strides = [1, 1]} : vector<1x8xf32> to vector<1x7xf32>
    %329 = tpu.concatenate %327, %328 in 1 : vector<1x1xf32>, vector<1x7xf32> -> vector<1x8xf32>
    %330 = arith.minimumf %326, %329 : vector<1x8xf32>
    %cst_78 = arith.constant 1.000000e+30 : f32
    %331 = vector.broadcast %cst_78 : f32 to vector<1x2xf32>
    %332 = vector.extract_strided_slice %330 {offsets = [0, 0], sizes = [1, 6], strides = [1, 1]} : vector<1x8xf32> to vector<1x6xf32>
    %333 = tpu.concatenate %331, %332 in 1 : vector<1x2xf32>, vector<1x6xf32> -> vector<1x8xf32>
    %334 = arith.minimumf %330, %333 : vector<1x8xf32>
    %cst_79 = arith.constant 1.000000e+30 : f32
    %335 = vector.broadcast %cst_79 : f32 to vector<1x4xf32>
    %336 = vector.extract_strided_slice %334 {offsets = [0, 0], sizes = [1, 4], strides = [1, 1]} : vector<1x8xf32> to vector<1x4xf32>
    %337 = tpu.concatenate %335, %336 in 1 : vector<1x4xf32>, vector<1x4xf32> -> vector<1x8xf32>
    %338 = arith.minimumf %334, %337 : vector<1x8xf32>
    %339 = arith.addf %338, %325 : vector<1x8xf32>
    %340 = vector.broadcast %c7_i32 : i32 to vector<8x8xi32>
    %341 = arith.cmpi eq, %24, %340 : vector<8x8xi32>
    %342 = vector.shape_cast %339 : vector<1x8xf32> to vector<1x8xf32>
    %343 = vector.broadcast %342 : vector<1x8xf32> to vector<8x8xf32>
    %344 = arith.select %341, %343, %302 : vector<8x8xi1>, vector<8x8xf32>
    %c7_i32_80 = arith.constant 7 : i32
    %c7_i32_81 = arith.constant 7 : i32
    %345 = vector.broadcast %c7_i32_81 : i32 to vector<8x8xi32>
    %346 = arith.cmpi eq, %24, %345 : vector<8x8xi32>
    %c7_i32_82 = arith.constant 7 : i32
    %347 = vector.broadcast %c7_i32_82 : i32 to vector<8x8xi32>
    %348 = arith.cmpi eq, %25, %347 : vector<8x8xi32>
    %349 = arith.andi %346, %348 : vector<8x8xi1>
    %350 = arith.extui %349 : vector<8x8xi1> to vector<8x8xi32>
    %351 = arith.sitofp %350 : vector<8x8xi32> to vector<8x8xf32>
    %c7_i32_83 = arith.constant 7 : i32
    %352 = vector.broadcast %c7_i32_83 : i32 to vector<1x1xi32>
    %c7_i32_84 = arith.constant 7 : i32
    %353 = vector.broadcast %c7_i32_84 : i32 to vector<1x1xi32>
    %c0_i32_85 = arith.constant 0 : i32
    %c0_i32_86 = arith.constant 0 : i32
    %354 = vector.broadcast %c0_i32_86 : i32 to vector<1x1xi32>
    %355 = arith.cmpi sgt, %352, %354 : vector<1x1xi32>
    %c0_i32_87 = arith.constant 0 : i32
    %356 = vector.broadcast %c0_i32_87 : i32 to vector<1x1xi32>
    %357 = arith.cmpi sgt, %353, %356 : vector<1x1xi32>
    %358 = arith.andi %355, %357 : vector<1x1xi1>
    %c1_i32_88 = arith.constant 1 : i32
    %359 = vector.broadcast %c1_i32_88 : i32 to vector<1x1xi32>
    %360 = arith.subi %352, %359 : vector<1x1xi32>
    %361 = vector.broadcast %360 : vector<1x1xi32> to vector<8x8xi32>
    %362 = arith.cmpi eq, %24, %361 : vector<8x8xi32>
    %cst_89 = arith.constant 0.000000e+00 : f32
    %363 = vector.broadcast %cst_89 : f32 to vector<8x8xf32>
    %364 = arith.select %362, %344, %363 : vector<8x8xi1>, vector<8x8xf32>
    %cst_90 = arith.constant dense<0.000000e+00> : vector<8xf32>
    %365 = vector.multi_reduction <add>, %364, %cst_90 [0] : vector<8x8xf32> to vector<8xf32>
    %366 = vector.shape_cast %365 : vector<8xf32> to vector<1x8xf32>
    %367 = vector.broadcast %352 : vector<1x1xi32> to vector<8x8xi32>
    %368 = arith.cmpi eq, %24, %367 : vector<8x8xi32>
    %cst_91 = arith.constant 0.000000e+00 : f32
    %369 = vector.broadcast %cst_91 : f32 to vector<8x8xf32>
    %370 = arith.select %368, %344, %369 : vector<8x8xi1>, vector<8x8xf32>
    %cst_92 = arith.constant dense<0.000000e+00> : vector<8xf32>
    %371 = vector.multi_reduction <add>, %370, %cst_92 [0] : vector<8x8xf32> to vector<8xf32>
    %372 = vector.shape_cast %371 : vector<8xf32> to vector<1x8xf32>
    %c1_i32_93 = arith.constant 1 : i32
    %373 = vector.broadcast %c1_i32_93 : i32 to vector<1x1xi32>
    %374 = arith.subi %353, %373 : vector<1x1xi32>
    %375 = vector.broadcast %374 : vector<1x1xi32> to vector<1x8xi32>
    %376 = arith.cmpi eq, %26, %375 : vector<1x8xi32>
    %cst_94 = arith.constant 0.000000e+00 : f32
    %377 = vector.broadcast %cst_94 : f32 to vector<1x8xf32>
    %378 = arith.select %376, %366, %377 : vector<1x8xi1>, vector<1x8xf32>
    %cst_95 = arith.constant dense<0.000000e+00> : vector<1xf32>
    %379 = vector.multi_reduction <add>, %378, %cst_95 [1] : vector<1x8xf32> to vector<1xf32>
    %380 = vector.shape_cast %379 : vector<1xf32> to vector<1x1xf32>
    %381 = vector.broadcast %353 : vector<1x1xi32> to vector<1x8xi32>
    %382 = arith.cmpi eq, %26, %381 : vector<1x8xi32>
    %cst_96 = arith.constant 0.000000e+00 : f32
    %383 = vector.broadcast %cst_96 : f32 to vector<1x8xf32>
    %384 = arith.select %382, %366, %383 : vector<1x8xi1>, vector<1x8xf32>
    %cst_97 = arith.constant dense<0.000000e+00> : vector<1xf32>
    %385 = vector.multi_reduction <add>, %384, %cst_97 [1] : vector<1x8xf32> to vector<1xf32>
    %386 = vector.shape_cast %385 : vector<1xf32> to vector<1x1xf32>
    %c1_i32_98 = arith.constant 1 : i32
    %387 = vector.broadcast %c1_i32_98 : i32 to vector<1x1xi32>
    %388 = arith.subi %353, %387 : vector<1x1xi32>
    %389 = vector.broadcast %388 : vector<1x1xi32> to vector<1x8xi32>
    %390 = arith.cmpi eq, %26, %389 : vector<1x8xi32>
    %cst_99 = arith.constant 0.000000e+00 : f32
    %391 = vector.broadcast %cst_99 : f32 to vector<1x8xf32>
    %392 = arith.select %390, %372, %391 : vector<1x8xi1>, vector<1x8xf32>
    %cst_100 = arith.constant dense<0.000000e+00> : vector<1xf32>
    %393 = vector.multi_reduction <add>, %392, %cst_100 [1] : vector<1x8xf32> to vector<1xf32>
    %394 = vector.shape_cast %393 : vector<1xf32> to vector<1x1xf32>
    %395 = arith.minimumf %380, %386 : vector<1x1xf32>
    %396 = arith.minimumf %395, %394 : vector<1x1xf32>
    %397 = arith.cmpf oeq, %380, %396 : vector<1x1xf32>
    %cst_101 = arith.constant dense<true> : vector<1x1xi1>
    %398 = arith.xori %397, %cst_101 : vector<1x1xi1>
    %399 = arith.cmpf oeq, %386, %396 : vector<1x1xf32>
    %400 = arith.andi %398, %399 : vector<1x1xi1>
    %401 = arith.ori %397, %400 : vector<1x1xi1>
    %c1_i32_102 = arith.constant 1 : i32
    %402 = vector.broadcast %c1_i32_102 : i32 to vector<1x1xi32>
    %403 = arith.subi %352, %402 : vector<1x1xi32>
    %404 = arith.select %401, %403, %352 : vector<1x1xi1>, vector<1x1xi32>
    %c1_i32_103 = arith.constant 1 : i32
    %405 = vector.broadcast %c1_i32_103 : i32 to vector<1x1xi32>
    %406 = arith.subi %353, %405 : vector<1x1xi32>
    %c1_i32_104 = arith.constant 1 : i32
    %407 = vector.broadcast %c1_i32_104 : i32 to vector<1x1xi32>
    %408 = arith.subi %353, %407 : vector<1x1xi32>
    %409 = arith.select %400, %353, %408 : vector<1x1xi1>, vector<1x1xi32>
    %410 = arith.select %397, %406, %409 : vector<1x1xi1>, vector<1x1xi32>
    %411 = arith.select %358, %404, %352 : vector<1x1xi1>, vector<1x1xi32>
    %412 = arith.select %358, %410, %353 : vector<1x1xi1>, vector<1x1xi32>
    %413 = vector.broadcast %411 : vector<1x1xi32> to vector<8x8xi32>
    %414 = arith.cmpi eq, %24, %413 : vector<8x8xi32>
    %415 = vector.broadcast %358 : vector<1x1xi1> to vector<8x8xi1>
    %416 = arith.andi %415, %414 : vector<8x8xi1>
    %417 = vector.broadcast %412 : vector<1x1xi32> to vector<8x8xi32>
    %418 = arith.cmpi eq, %25, %417 : vector<8x8xi32>
    %419 = arith.andi %416, %418 : vector<8x8xi1>
    %420 = arith.extui %419 : vector<8x8xi1> to vector<8x8xi32>
    %421 = arith.sitofp %420 : vector<8x8xi32> to vector<8x8xf32>
    %422 = arith.maximumf %351, %421 : vector<8x8xf32>
    %c1_i32_105 = arith.constant 1 : i32
    %c0_i32_106 = arith.constant 0 : i32
    %423 = vector.broadcast %c0_i32_106 : i32 to vector<1x1xi32>
    %424 = arith.cmpi sgt, %411, %423 : vector<1x1xi32>
    %c0_i32_107 = arith.constant 0 : i32
    %425 = vector.broadcast %c0_i32_107 : i32 to vector<1x1xi32>
    %426 = arith.cmpi sgt, %412, %425 : vector<1x1xi32>
    %427 = arith.andi %424, %426 : vector<1x1xi1>
    %c1_i32_108 = arith.constant 1 : i32
    %428 = vector.broadcast %c1_i32_108 : i32 to vector<1x1xi32>
    %429 = arith.subi %411, %428 : vector<1x1xi32>
    %430 = vector.broadcast %429 : vector<1x1xi32> to vector<8x8xi32>
    %431 = arith.cmpi eq, %24, %430 : vector<8x8xi32>
    %cst_109 = arith.constant 0.000000e+00 : f32
    %432 = vector.broadcast %cst_109 : f32 to vector<8x8xf32>
    %433 = arith.select %431, %344, %432 : vector<8x8xi1>, vector<8x8xf32>
    %cst_110 = arith.constant dense<0.000000e+00> : vector<8xf32>
    %434 = vector.multi_reduction <add>, %433, %cst_110 [0] : vector<8x8xf32> to vector<8xf32>
    %435 = vector.shape_cast %434 : vector<8xf32> to vector<1x8xf32>
    %436 = vector.broadcast %411 : vector<1x1xi32> to vector<8x8xi32>
    %437 = arith.cmpi eq, %24, %436 : vector<8x8xi32>
    %cst_111 = arith.constant 0.000000e+00 : f32
    %438 = vector.broadcast %cst_111 : f32 to vector<8x8xf32>
    %439 = arith.select %437, %344, %438 : vector<8x8xi1>, vector<8x8xf32>
    %cst_112 = arith.constant dense<0.000000e+00> : vector<8xf32>
    %440 = vector.multi_reduction <add>, %439, %cst_112 [0] : vector<8x8xf32> to vector<8xf32>
    %441 = vector.shape_cast %440 : vector<8xf32> to vector<1x8xf32>
    %c1_i32_113 = arith.constant 1 : i32
    %442 = vector.broadcast %c1_i32_113 : i32 to vector<1x1xi32>
    %443 = arith.subi %412, %442 : vector<1x1xi32>
    %444 = vector.broadcast %443 : vector<1x1xi32> to vector<1x8xi32>
    %445 = arith.cmpi eq, %26, %444 : vector<1x8xi32>
    %cst_114 = arith.constant 0.000000e+00 : f32
    %446 = vector.broadcast %cst_114 : f32 to vector<1x8xf32>
    %447 = arith.select %445, %435, %446 : vector<1x8xi1>, vector<1x8xf32>
    %cst_115 = arith.constant dense<0.000000e+00> : vector<1xf32>
    %448 = vector.multi_reduction <add>, %447, %cst_115 [1] : vector<1x8xf32> to vector<1xf32>
    %449 = vector.shape_cast %448 : vector<1xf32> to vector<1x1xf32>
    %450 = vector.broadcast %412 : vector<1x1xi32> to vector<1x8xi32>
    %451 = arith.cmpi eq, %26, %450 : vector<1x8xi32>
    %cst_116 = arith.constant 0.000000e+00 : f32
    %452 = vector.broadcast %cst_116 : f32 to vector<1x8xf32>
    %453 = arith.select %451, %435, %452 : vector<1x8xi1>, vector<1x8xf32>
    %cst_117 = arith.constant dense<0.000000e+00> : vector<1xf32>
    %454 = vector.multi_reduction <add>, %453, %cst_117 [1] : vector<1x8xf32> to vector<1xf32>
    %455 = vector.shape_cast %454 : vector<1xf32> to vector<1x1xf32>
    %c1_i32_118 = arith.constant 1 : i32
    %456 = vector.broadcast %c1_i32_118 : i32 to vector<1x1xi32>
    %457 = arith.subi %412, %456 : vector<1x1xi32>
    %458 = vector.broadcast %457 : vector<1x1xi32> to vector<1x8xi32>
    %459 = arith.cmpi eq, %26, %458 : vector<1x8xi32>
    %cst_119 = arith.constant 0.000000e+00 : f32
    %460 = vector.broadcast %cst_119 : f32 to vector<1x8xf32>
    %461 = arith.select %459, %441, %460 : vector<1x8xi1>, vector<1x8xf32>
    %cst_120 = arith.constant dense<0.000000e+00> : vector<1xf32>
    %462 = vector.multi_reduction <add>, %461, %cst_120 [1] : vector<1x8xf32> to vector<1xf32>
    %463 = vector.shape_cast %462 : vector<1xf32> to vector<1x1xf32>
    %464 = arith.minimumf %449, %455 : vector<1x1xf32>
    %465 = arith.minimumf %464, %463 : vector<1x1xf32>
    %466 = arith.cmpf oeq, %449, %465 : vector<1x1xf32>
    %cst_121 = arith.constant dense<true> : vector<1x1xi1>
    %467 = arith.xori %466, %cst_121 : vector<1x1xi1>
    %468 = arith.cmpf oeq, %455, %465 : vector<1x1xf32>
    %469 = arith.andi %467, %468 : vector<1x1xi1>
    %470 = arith.ori %466, %469 : vector<1x1xi1>
    %c1_i32_122 = arith.constant 1 : i32
    %471 = vector.broadcast %c1_i32_122 : i32 to vector<1x1xi32>
    %472 = arith.subi %411, %471 : vector<1x1xi32>
    %473 = arith.select %470, %472, %411 : vector<1x1xi1>, vector<1x1xi32>
    %c1_i32_123 = arith.constant 1 : i32
    %474 = vector.broadcast %c1_i32_123 : i32 to vector<1x1xi32>
    %475 = arith.subi %412, %474 : vector<1x1xi32>
    %c1_i32_124 = arith.constant 1 : i32
    %476 = vector.broadcast %c1_i32_124 : i32 to vector<1x1xi32>
    %477 = arith.subi %412, %476 : vector<1x1xi32>
    %478 = arith.select %469, %412, %477 : vector<1x1xi1>, vector<1x1xi32>
    %479 = arith.select %466, %475, %478 : vector<1x1xi1>, vector<1x1xi32>
    %480 = arith.select %427, %473, %411 : vector<1x1xi1>, vector<1x1xi32>
    %481 = arith.select %427, %479, %412 : vector<1x1xi1>, vector<1x1xi32>
    %482 = vector.broadcast %480 : vector<1x1xi32> to vector<8x8xi32>
    %483 = arith.cmpi eq, %24, %482 : vector<8x8xi32>
    %484 = vector.broadcast %427 : vector<1x1xi1> to vector<8x8xi1>
    %485 = arith.andi %484, %483 : vector<8x8xi1>
    %486 = vector.broadcast %481 : vector<1x1xi32> to vector<8x8xi32>
    %487 = arith.cmpi eq, %25, %486 : vector<8x8xi32>
    %488 = arith.andi %485, %487 : vector<8x8xi1>
    %489 = arith.extui %488 : vector<8x8xi1> to vector<8x8xi32>
    %490 = arith.sitofp %489 : vector<8x8xi32> to vector<8x8xf32>
    %491 = arith.maximumf %422, %490 : vector<8x8xf32>
    %c2_i32_125 = arith.constant 2 : i32
    %c0_i32_126 = arith.constant 0 : i32
    %492 = vector.broadcast %c0_i32_126 : i32 to vector<1x1xi32>
    %493 = arith.cmpi sgt, %480, %492 : vector<1x1xi32>
    %c0_i32_127 = arith.constant 0 : i32
    %494 = vector.broadcast %c0_i32_127 : i32 to vector<1x1xi32>
    %495 = arith.cmpi sgt, %481, %494 : vector<1x1xi32>
    %496 = arith.andi %493, %495 : vector<1x1xi1>
    %c1_i32_128 = arith.constant 1 : i32
    %497 = vector.broadcast %c1_i32_128 : i32 to vector<1x1xi32>
    %498 = arith.subi %480, %497 : vector<1x1xi32>
    %499 = vector.broadcast %498 : vector<1x1xi32> to vector<8x8xi32>
    %500 = arith.cmpi eq, %24, %499 : vector<8x8xi32>
    %cst_129 = arith.constant 0.000000e+00 : f32
    %501 = vector.broadcast %cst_129 : f32 to vector<8x8xf32>
    %502 = arith.select %500, %344, %501 : vector<8x8xi1>, vector<8x8xf32>
    %cst_130 = arith.constant dense<0.000000e+00> : vector<8xf32>
    %503 = vector.multi_reduction <add>, %502, %cst_130 [0] : vector<8x8xf32> to vector<8xf32>
    %504 = vector.shape_cast %503 : vector<8xf32> to vector<1x8xf32>
    %505 = vector.broadcast %480 : vector<1x1xi32> to vector<8x8xi32>
    %506 = arith.cmpi eq, %24, %505 : vector<8x8xi32>
    %cst_131 = arith.constant 0.000000e+00 : f32
    %507 = vector.broadcast %cst_131 : f32 to vector<8x8xf32>
    %508 = arith.select %506, %344, %507 : vector<8x8xi1>, vector<8x8xf32>
    %cst_132 = arith.constant dense<0.000000e+00> : vector<8xf32>
    %509 = vector.multi_reduction <add>, %508, %cst_132 [0] : vector<8x8xf32> to vector<8xf32>
    %510 = vector.shape_cast %509 : vector<8xf32> to vector<1x8xf32>
    %c1_i32_133 = arith.constant 1 : i32
    %511 = vector.broadcast %c1_i32_133 : i32 to vector<1x1xi32>
    %512 = arith.subi %481, %511 : vector<1x1xi32>
    %513 = vector.broadcast %512 : vector<1x1xi32> to vector<1x8xi32>
    %514 = arith.cmpi eq, %26, %513 : vector<1x8xi32>
    %cst_134 = arith.constant 0.000000e+00 : f32
    %515 = vector.broadcast %cst_134 : f32 to vector<1x8xf32>
    %516 = arith.select %514, %504, %515 : vector<1x8xi1>, vector<1x8xf32>
    %cst_135 = arith.constant dense<0.000000e+00> : vector<1xf32>
    %517 = vector.multi_reduction <add>, %516, %cst_135 [1] : vector<1x8xf32> to vector<1xf32>
    %518 = vector.shape_cast %517 : vector<1xf32> to vector<1x1xf32>
    %519 = vector.broadcast %481 : vector<1x1xi32> to vector<1x8xi32>
    %520 = arith.cmpi eq, %26, %519 : vector<1x8xi32>
    %cst_136 = arith.constant 0.000000e+00 : f32
    %521 = vector.broadcast %cst_136 : f32 to vector<1x8xf32>
    %522 = arith.select %520, %504, %521 : vector<1x8xi1>, vector<1x8xf32>
    %cst_137 = arith.constant dense<0.000000e+00> : vector<1xf32>
    %523 = vector.multi_reduction <add>, %522, %cst_137 [1] : vector<1x8xf32> to vector<1xf32>
    %524 = vector.shape_cast %523 : vector<1xf32> to vector<1x1xf32>
    %c1_i32_138 = arith.constant 1 : i32
    %525 = vector.broadcast %c1_i32_138 : i32 to vector<1x1xi32>
    %526 = arith.subi %481, %525 : vector<1x1xi32>
    %527 = vector.broadcast %526 : vector<1x1xi32> to vector<1x8xi32>
    %528 = arith.cmpi eq, %26, %527 : vector<1x8xi32>
    %cst_139 = arith.constant 0.000000e+00 : f32
    %529 = vector.broadcast %cst_139 : f32 to vector<1x8xf32>
    %530 = arith.select %528, %510, %529 : vector<1x8xi1>, vector<1x8xf32>
    %cst_140 = arith.constant dense<0.000000e+00> : vector<1xf32>
    %531 = vector.multi_reduction <add>, %530, %cst_140 [1] : vector<1x8xf32> to vector<1xf32>
    %532 = vector.shape_cast %531 : vector<1xf32> to vector<1x1xf32>
    %533 = arith.minimumf %518, %524 : vector<1x1xf32>
    %534 = arith.minimumf %533, %532 : vector<1x1xf32>
    %535 = arith.cmpf oeq, %518, %534 : vector<1x1xf32>
    %cst_141 = arith.constant dense<true> : vector<1x1xi1>
    %536 = arith.xori %535, %cst_141 : vector<1x1xi1>
    %537 = arith.cmpf oeq, %524, %534 : vector<1x1xf32>
    %538 = arith.andi %536, %537 : vector<1x1xi1>
    %539 = arith.ori %535, %538 : vector<1x1xi1>
    %c1_i32_142 = arith.constant 1 : i32
    %540 = vector.broadcast %c1_i32_142 : i32 to vector<1x1xi32>
    %541 = arith.subi %480, %540 : vector<1x1xi32>
    %542 = arith.select %539, %541, %480 : vector<1x1xi1>, vector<1x1xi32>
    %c1_i32_143 = arith.constant 1 : i32
    %543 = vector.broadcast %c1_i32_143 : i32 to vector<1x1xi32>
    %544 = arith.subi %481, %543 : vector<1x1xi32>
    %c1_i32_144 = arith.constant 1 : i32
    %545 = vector.broadcast %c1_i32_144 : i32 to vector<1x1xi32>
    %546 = arith.subi %481, %545 : vector<1x1xi32>
    %547 = arith.select %538, %481, %546 : vector<1x1xi1>, vector<1x1xi32>
    %548 = arith.select %535, %544, %547 : vector<1x1xi1>, vector<1x1xi32>
    %549 = arith.select %496, %542, %480 : vector<1x1xi1>, vector<1x1xi32>
    %550 = arith.select %496, %548, %481 : vector<1x1xi1>, vector<1x1xi32>
    %551 = vector.broadcast %549 : vector<1x1xi32> to vector<8x8xi32>
    %552 = arith.cmpi eq, %24, %551 : vector<8x8xi32>
    %553 = vector.broadcast %496 : vector<1x1xi1> to vector<8x8xi1>
    %554 = arith.andi %553, %552 : vector<8x8xi1>
    %555 = vector.broadcast %550 : vector<1x1xi32> to vector<8x8xi32>
    %556 = arith.cmpi eq, %25, %555 : vector<8x8xi32>
    %557 = arith.andi %554, %556 : vector<8x8xi1>
    %558 = arith.extui %557 : vector<8x8xi1> to vector<8x8xi32>
    %559 = arith.sitofp %558 : vector<8x8xi32> to vector<8x8xf32>
    %560 = arith.maximumf %491, %559 : vector<8x8xf32>
    %c3_i32_145 = arith.constant 3 : i32
    %c0_i32_146 = arith.constant 0 : i32
    %561 = vector.broadcast %c0_i32_146 : i32 to vector<1x1xi32>
    %562 = arith.cmpi sgt, %549, %561 : vector<1x1xi32>
    %c0_i32_147 = arith.constant 0 : i32
    %563 = vector.broadcast %c0_i32_147 : i32 to vector<1x1xi32>
    %564 = arith.cmpi sgt, %550, %563 : vector<1x1xi32>
    %565 = arith.andi %562, %564 : vector<1x1xi1>
    %c1_i32_148 = arith.constant 1 : i32
    %566 = vector.broadcast %c1_i32_148 : i32 to vector<1x1xi32>
    %567 = arith.subi %549, %566 : vector<1x1xi32>
    %568 = vector.broadcast %567 : vector<1x1xi32> to vector<8x8xi32>
    %569 = arith.cmpi eq, %24, %568 : vector<8x8xi32>
    %cst_149 = arith.constant 0.000000e+00 : f32
    %570 = vector.broadcast %cst_149 : f32 to vector<8x8xf32>
    %571 = arith.select %569, %344, %570 : vector<8x8xi1>, vector<8x8xf32>
    %cst_150 = arith.constant dense<0.000000e+00> : vector<8xf32>
    %572 = vector.multi_reduction <add>, %571, %cst_150 [0] : vector<8x8xf32> to vector<8xf32>
    %573 = vector.shape_cast %572 : vector<8xf32> to vector<1x8xf32>
    %574 = vector.broadcast %549 : vector<1x1xi32> to vector<8x8xi32>
    %575 = arith.cmpi eq, %24, %574 : vector<8x8xi32>
    %cst_151 = arith.constant 0.000000e+00 : f32
    %576 = vector.broadcast %cst_151 : f32 to vector<8x8xf32>
    %577 = arith.select %575, %344, %576 : vector<8x8xi1>, vector<8x8xf32>
    %cst_152 = arith.constant dense<0.000000e+00> : vector<8xf32>
    %578 = vector.multi_reduction <add>, %577, %cst_152 [0] : vector<8x8xf32> to vector<8xf32>
    %579 = vector.shape_cast %578 : vector<8xf32> to vector<1x8xf32>
    %c1_i32_153 = arith.constant 1 : i32
    %580 = vector.broadcast %c1_i32_153 : i32 to vector<1x1xi32>
    %581 = arith.subi %550, %580 : vector<1x1xi32>
    %582 = vector.broadcast %581 : vector<1x1xi32> to vector<1x8xi32>
    %583 = arith.cmpi eq, %26, %582 : vector<1x8xi32>
    %cst_154 = arith.constant 0.000000e+00 : f32
    %584 = vector.broadcast %cst_154 : f32 to vector<1x8xf32>
    %585 = arith.select %583, %573, %584 : vector<1x8xi1>, vector<1x8xf32>
    %cst_155 = arith.constant dense<0.000000e+00> : vector<1xf32>
    %586 = vector.multi_reduction <add>, %585, %cst_155 [1] : vector<1x8xf32> to vector<1xf32>
    %587 = vector.shape_cast %586 : vector<1xf32> to vector<1x1xf32>
    %588 = vector.broadcast %550 : vector<1x1xi32> to vector<1x8xi32>
    %589 = arith.cmpi eq, %26, %588 : vector<1x8xi32>
    %cst_156 = arith.constant 0.000000e+00 : f32
    %590 = vector.broadcast %cst_156 : f32 to vector<1x8xf32>
    %591 = arith.select %589, %573, %590 : vector<1x8xi1>, vector<1x8xf32>
    %cst_157 = arith.constant dense<0.000000e+00> : vector<1xf32>
    %592 = vector.multi_reduction <add>, %591, %cst_157 [1] : vector<1x8xf32> to vector<1xf32>
    %593 = vector.shape_cast %592 : vector<1xf32> to vector<1x1xf32>
    %c1_i32_158 = arith.constant 1 : i32
    %594 = vector.broadcast %c1_i32_158 : i32 to vector<1x1xi32>
    %595 = arith.subi %550, %594 : vector<1x1xi32>
    %596 = vector.broadcast %595 : vector<1x1xi32> to vector<1x8xi32>
    %597 = arith.cmpi eq, %26, %596 : vector<1x8xi32>
    %cst_159 = arith.constant 0.000000e+00 : f32
    %598 = vector.broadcast %cst_159 : f32 to vector<1x8xf32>
    %599 = arith.select %597, %579, %598 : vector<1x8xi1>, vector<1x8xf32>
    %cst_160 = arith.constant dense<0.000000e+00> : vector<1xf32>
    %600 = vector.multi_reduction <add>, %599, %cst_160 [1] : vector<1x8xf32> to vector<1xf32>
    %601 = vector.shape_cast %600 : vector<1xf32> to vector<1x1xf32>
    %602 = arith.minimumf %587, %593 : vector<1x1xf32>
    %603 = arith.minimumf %602, %601 : vector<1x1xf32>
    %604 = arith.cmpf oeq, %587, %603 : vector<1x1xf32>
    %cst_161 = arith.constant dense<true> : vector<1x1xi1>
    %605 = arith.xori %604, %cst_161 : vector<1x1xi1>
    %606 = arith.cmpf oeq, %593, %603 : vector<1x1xf32>
    %607 = arith.andi %605, %606 : vector<1x1xi1>
    %608 = arith.ori %604, %607 : vector<1x1xi1>
    %c1_i32_162 = arith.constant 1 : i32
    %609 = vector.broadcast %c1_i32_162 : i32 to vector<1x1xi32>
    %610 = arith.subi %549, %609 : vector<1x1xi32>
    %611 = arith.select %608, %610, %549 : vector<1x1xi1>, vector<1x1xi32>
    %c1_i32_163 = arith.constant 1 : i32
    %612 = vector.broadcast %c1_i32_163 : i32 to vector<1x1xi32>
    %613 = arith.subi %550, %612 : vector<1x1xi32>
    %c1_i32_164 = arith.constant 1 : i32
    %614 = vector.broadcast %c1_i32_164 : i32 to vector<1x1xi32>
    %615 = arith.subi %550, %614 : vector<1x1xi32>
    %616 = arith.select %607, %550, %615 : vector<1x1xi1>, vector<1x1xi32>
    %617 = arith.select %604, %613, %616 : vector<1x1xi1>, vector<1x1xi32>
    %618 = arith.select %565, %611, %549 : vector<1x1xi1>, vector<1x1xi32>
    %619 = arith.select %565, %617, %550 : vector<1x1xi1>, vector<1x1xi32>
    %620 = vector.broadcast %618 : vector<1x1xi32> to vector<8x8xi32>
    %621 = arith.cmpi eq, %24, %620 : vector<8x8xi32>
    %622 = vector.broadcast %565 : vector<1x1xi1> to vector<8x8xi1>
    %623 = arith.andi %622, %621 : vector<8x8xi1>
    %624 = vector.broadcast %619 : vector<1x1xi32> to vector<8x8xi32>
    %625 = arith.cmpi eq, %25, %624 : vector<8x8xi32>
    %626 = arith.andi %623, %625 : vector<8x8xi1>
    %627 = arith.extui %626 : vector<8x8xi1> to vector<8x8xi32>
    %628 = arith.sitofp %627 : vector<8x8xi32> to vector<8x8xf32>
    %629 = arith.maximumf %560, %628 : vector<8x8xf32>
    %c4_i32_165 = arith.constant 4 : i32
    %c0_i32_166 = arith.constant 0 : i32
    %630 = vector.broadcast %c0_i32_166 : i32 to vector<1x1xi32>
    %631 = arith.cmpi sgt, %618, %630 : vector<1x1xi32>
    %c0_i32_167 = arith.constant 0 : i32
    %632 = vector.broadcast %c0_i32_167 : i32 to vector<1x1xi32>
    %633 = arith.cmpi sgt, %619, %632 : vector<1x1xi32>
    %634 = arith.andi %631, %633 : vector<1x1xi1>
    %c1_i32_168 = arith.constant 1 : i32
    %635 = vector.broadcast %c1_i32_168 : i32 to vector<1x1xi32>
    %636 = arith.subi %618, %635 : vector<1x1xi32>
    %637 = vector.broadcast %636 : vector<1x1xi32> to vector<8x8xi32>
    %638 = arith.cmpi eq, %24, %637 : vector<8x8xi32>
    %cst_169 = arith.constant 0.000000e+00 : f32
    %639 = vector.broadcast %cst_169 : f32 to vector<8x8xf32>
    %640 = arith.select %638, %344, %639 : vector<8x8xi1>, vector<8x8xf32>
    %cst_170 = arith.constant dense<0.000000e+00> : vector<8xf32>
    %641 = vector.multi_reduction <add>, %640, %cst_170 [0] : vector<8x8xf32> to vector<8xf32>
    %642 = vector.shape_cast %641 : vector<8xf32> to vector<1x8xf32>
    %643 = vector.broadcast %618 : vector<1x1xi32> to vector<8x8xi32>
    %644 = arith.cmpi eq, %24, %643 : vector<8x8xi32>
    %cst_171 = arith.constant 0.000000e+00 : f32
    %645 = vector.broadcast %cst_171 : f32 to vector<8x8xf32>
    %646 = arith.select %644, %344, %645 : vector<8x8xi1>, vector<8x8xf32>
    %cst_172 = arith.constant dense<0.000000e+00> : vector<8xf32>
    %647 = vector.multi_reduction <add>, %646, %cst_172 [0] : vector<8x8xf32> to vector<8xf32>
    %648 = vector.shape_cast %647 : vector<8xf32> to vector<1x8xf32>
    %c1_i32_173 = arith.constant 1 : i32
    %649 = vector.broadcast %c1_i32_173 : i32 to vector<1x1xi32>
    %650 = arith.subi %619, %649 : vector<1x1xi32>
    %651 = vector.broadcast %650 : vector<1x1xi32> to vector<1x8xi32>
    %652 = arith.cmpi eq, %26, %651 : vector<1x8xi32>
    %cst_174 = arith.constant 0.000000e+00 : f32
    %653 = vector.broadcast %cst_174 : f32 to vector<1x8xf32>
    %654 = arith.select %652, %642, %653 : vector<1x8xi1>, vector<1x8xf32>
    %cst_175 = arith.constant dense<0.000000e+00> : vector<1xf32>
    %655 = vector.multi_reduction <add>, %654, %cst_175 [1] : vector<1x8xf32> to vector<1xf32>
    %656 = vector.shape_cast %655 : vector<1xf32> to vector<1x1xf32>
    %657 = vector.broadcast %619 : vector<1x1xi32> to vector<1x8xi32>
    %658 = arith.cmpi eq, %26, %657 : vector<1x8xi32>
    %cst_176 = arith.constant 0.000000e+00 : f32
    %659 = vector.broadcast %cst_176 : f32 to vector<1x8xf32>
    %660 = arith.select %658, %642, %659 : vector<1x8xi1>, vector<1x8xf32>
    %cst_177 = arith.constant dense<0.000000e+00> : vector<1xf32>
    %661 = vector.multi_reduction <add>, %660, %cst_177 [1] : vector<1x8xf32> to vector<1xf32>
    %662 = vector.shape_cast %661 : vector<1xf32> to vector<1x1xf32>
    %c1_i32_178 = arith.constant 1 : i32
    %663 = vector.broadcast %c1_i32_178 : i32 to vector<1x1xi32>
    %664 = arith.subi %619, %663 : vector<1x1xi32>
    %665 = vector.broadcast %664 : vector<1x1xi32> to vector<1x8xi32>
    %666 = arith.cmpi eq, %26, %665 : vector<1x8xi32>
    %cst_179 = arith.constant 0.000000e+00 : f32
    %667 = vector.broadcast %cst_179 : f32 to vector<1x8xf32>
    %668 = arith.select %666, %648, %667 : vector<1x8xi1>, vector<1x8xf32>
    %cst_180 = arith.constant dense<0.000000e+00> : vector<1xf32>
    %669 = vector.multi_reduction <add>, %668, %cst_180 [1] : vector<1x8xf32> to vector<1xf32>
    %670 = vector.shape_cast %669 : vector<1xf32> to vector<1x1xf32>
    %671 = arith.minimumf %656, %662 : vector<1x1xf32>
    %672 = arith.minimumf %671, %670 : vector<1x1xf32>
    %673 = arith.cmpf oeq, %656, %672 : vector<1x1xf32>
    %cst_181 = arith.constant dense<true> : vector<1x1xi1>
    %674 = arith.xori %673, %cst_181 : vector<1x1xi1>
    %675 = arith.cmpf oeq, %662, %672 : vector<1x1xf32>
    %676 = arith.andi %674, %675 : vector<1x1xi1>
    %677 = arith.ori %673, %676 : vector<1x1xi1>
    %c1_i32_182 = arith.constant 1 : i32
    %678 = vector.broadcast %c1_i32_182 : i32 to vector<1x1xi32>
    %679 = arith.subi %618, %678 : vector<1x1xi32>
    %680 = arith.select %677, %679, %618 : vector<1x1xi1>, vector<1x1xi32>
    %c1_i32_183 = arith.constant 1 : i32
    %681 = vector.broadcast %c1_i32_183 : i32 to vector<1x1xi32>
    %682 = arith.subi %619, %681 : vector<1x1xi32>
    %c1_i32_184 = arith.constant 1 : i32
    %683 = vector.broadcast %c1_i32_184 : i32 to vector<1x1xi32>
    %684 = arith.subi %619, %683 : vector<1x1xi32>
    %685 = arith.select %676, %619, %684 : vector<1x1xi1>, vector<1x1xi32>
    %686 = arith.select %673, %682, %685 : vector<1x1xi1>, vector<1x1xi32>
    %687 = arith.select %634, %680, %618 : vector<1x1xi1>, vector<1x1xi32>
    %688 = arith.select %634, %686, %619 : vector<1x1xi1>, vector<1x1xi32>
    %689 = vector.broadcast %687 : vector<1x1xi32> to vector<8x8xi32>
    %690 = arith.cmpi eq, %24, %689 : vector<8x8xi32>
    %691 = vector.broadcast %634 : vector<1x1xi1> to vector<8x8xi1>
    %692 = arith.andi %691, %690 : vector<8x8xi1>
    %693 = vector.broadcast %688 : vector<1x1xi32> to vector<8x8xi32>
    %694 = arith.cmpi eq, %25, %693 : vector<8x8xi32>
    %695 = arith.andi %692, %694 : vector<8x8xi1>
    %696 = arith.extui %695 : vector<8x8xi1> to vector<8x8xi32>
    %697 = arith.sitofp %696 : vector<8x8xi32> to vector<8x8xf32>
    %698 = arith.maximumf %629, %697 : vector<8x8xf32>
    %c5_i32_185 = arith.constant 5 : i32
    %c0_i32_186 = arith.constant 0 : i32
    %699 = vector.broadcast %c0_i32_186 : i32 to vector<1x1xi32>
    %700 = arith.cmpi sgt, %687, %699 : vector<1x1xi32>
    %c0_i32_187 = arith.constant 0 : i32
    %701 = vector.broadcast %c0_i32_187 : i32 to vector<1x1xi32>
    %702 = arith.cmpi sgt, %688, %701 : vector<1x1xi32>
    %703 = arith.andi %700, %702 : vector<1x1xi1>
    %c1_i32_188 = arith.constant 1 : i32
    %704 = vector.broadcast %c1_i32_188 : i32 to vector<1x1xi32>
    %705 = arith.subi %687, %704 : vector<1x1xi32>
    %706 = vector.broadcast %705 : vector<1x1xi32> to vector<8x8xi32>
    %707 = arith.cmpi eq, %24, %706 : vector<8x8xi32>
    %cst_189 = arith.constant 0.000000e+00 : f32
    %708 = vector.broadcast %cst_189 : f32 to vector<8x8xf32>
    %709 = arith.select %707, %344, %708 : vector<8x8xi1>, vector<8x8xf32>
    %cst_190 = arith.constant dense<0.000000e+00> : vector<8xf32>
    %710 = vector.multi_reduction <add>, %709, %cst_190 [0] : vector<8x8xf32> to vector<8xf32>
    %711 = vector.shape_cast %710 : vector<8xf32> to vector<1x8xf32>
    %712 = vector.broadcast %687 : vector<1x1xi32> to vector<8x8xi32>
    %713 = arith.cmpi eq, %24, %712 : vector<8x8xi32>
    %cst_191 = arith.constant 0.000000e+00 : f32
    %714 = vector.broadcast %cst_191 : f32 to vector<8x8xf32>
    %715 = arith.select %713, %344, %714 : vector<8x8xi1>, vector<8x8xf32>
    %cst_192 = arith.constant dense<0.000000e+00> : vector<8xf32>
    %716 = vector.multi_reduction <add>, %715, %cst_192 [0] : vector<8x8xf32> to vector<8xf32>
    %717 = vector.shape_cast %716 : vector<8xf32> to vector<1x8xf32>
    %c1_i32_193 = arith.constant 1 : i32
    %718 = vector.broadcast %c1_i32_193 : i32 to vector<1x1xi32>
    %719 = arith.subi %688, %718 : vector<1x1xi32>
    %720 = vector.broadcast %719 : vector<1x1xi32> to vector<1x8xi32>
    %721 = arith.cmpi eq, %26, %720 : vector<1x8xi32>
    %cst_194 = arith.constant 0.000000e+00 : f32
    %722 = vector.broadcast %cst_194 : f32 to vector<1x8xf32>
    %723 = arith.select %721, %711, %722 : vector<1x8xi1>, vector<1x8xf32>
    %cst_195 = arith.constant dense<0.000000e+00> : vector<1xf32>
    %724 = vector.multi_reduction <add>, %723, %cst_195 [1] : vector<1x8xf32> to vector<1xf32>
    %725 = vector.shape_cast %724 : vector<1xf32> to vector<1x1xf32>
    %726 = vector.broadcast %688 : vector<1x1xi32> to vector<1x8xi32>
    %727 = arith.cmpi eq, %26, %726 : vector<1x8xi32>
    %cst_196 = arith.constant 0.000000e+00 : f32
    %728 = vector.broadcast %cst_196 : f32 to vector<1x8xf32>
    %729 = arith.select %727, %711, %728 : vector<1x8xi1>, vector<1x8xf32>
    %cst_197 = arith.constant dense<0.000000e+00> : vector<1xf32>
    %730 = vector.multi_reduction <add>, %729, %cst_197 [1] : vector<1x8xf32> to vector<1xf32>
    %731 = vector.shape_cast %730 : vector<1xf32> to vector<1x1xf32>
    %c1_i32_198 = arith.constant 1 : i32
    %732 = vector.broadcast %c1_i32_198 : i32 to vector<1x1xi32>
    %733 = arith.subi %688, %732 : vector<1x1xi32>
    %734 = vector.broadcast %733 : vector<1x1xi32> to vector<1x8xi32>
    %735 = arith.cmpi eq, %26, %734 : vector<1x8xi32>
    %cst_199 = arith.constant 0.000000e+00 : f32
    %736 = vector.broadcast %cst_199 : f32 to vector<1x8xf32>
    %737 = arith.select %735, %717, %736 : vector<1x8xi1>, vector<1x8xf32>
    %cst_200 = arith.constant dense<0.000000e+00> : vector<1xf32>
    %738 = vector.multi_reduction <add>, %737, %cst_200 [1] : vector<1x8xf32> to vector<1xf32>
    %739 = vector.shape_cast %738 : vector<1xf32> to vector<1x1xf32>
    %740 = arith.minimumf %725, %731 : vector<1x1xf32>
    %741 = arith.minimumf %740, %739 : vector<1x1xf32>
    %742 = arith.cmpf oeq, %725, %741 : vector<1x1xf32>
    %cst_201 = arith.constant dense<true> : vector<1x1xi1>
    %743 = arith.xori %742, %cst_201 : vector<1x1xi1>
    %744 = arith.cmpf oeq, %731, %741 : vector<1x1xf32>
    %745 = arith.andi %743, %744 : vector<1x1xi1>
    %746 = arith.ori %742, %745 : vector<1x1xi1>
    %c1_i32_202 = arith.constant 1 : i32
    %747 = vector.broadcast %c1_i32_202 : i32 to vector<1x1xi32>
    %748 = arith.subi %687, %747 : vector<1x1xi32>
    %749 = arith.select %746, %748, %687 : vector<1x1xi1>, vector<1x1xi32>
    %c1_i32_203 = arith.constant 1 : i32
    %750 = vector.broadcast %c1_i32_203 : i32 to vector<1x1xi32>
    %751 = arith.subi %688, %750 : vector<1x1xi32>
    %c1_i32_204 = arith.constant 1 : i32
    %752 = vector.broadcast %c1_i32_204 : i32 to vector<1x1xi32>
    %753 = arith.subi %688, %752 : vector<1x1xi32>
    %754 = arith.select %745, %688, %753 : vector<1x1xi1>, vector<1x1xi32>
    %755 = arith.select %742, %751, %754 : vector<1x1xi1>, vector<1x1xi32>
    %756 = arith.select %703, %749, %687 : vector<1x1xi1>, vector<1x1xi32>
    %757 = arith.select %703, %755, %688 : vector<1x1xi1>, vector<1x1xi32>
    %758 = vector.broadcast %756 : vector<1x1xi32> to vector<8x8xi32>
    %759 = arith.cmpi eq, %24, %758 : vector<8x8xi32>
    %760 = vector.broadcast %703 : vector<1x1xi1> to vector<8x8xi1>
    %761 = arith.andi %760, %759 : vector<8x8xi1>
    %762 = vector.broadcast %757 : vector<1x1xi32> to vector<8x8xi32>
    %763 = arith.cmpi eq, %25, %762 : vector<8x8xi32>
    %764 = arith.andi %761, %763 : vector<8x8xi1>
    %765 = arith.extui %764 : vector<8x8xi1> to vector<8x8xi32>
    %766 = arith.sitofp %765 : vector<8x8xi32> to vector<8x8xf32>
    %767 = arith.maximumf %698, %766 : vector<8x8xf32>
    %c6_i32_205 = arith.constant 6 : i32
    %c0_i32_206 = arith.constant 0 : i32
    %768 = vector.broadcast %c0_i32_206 : i32 to vector<1x1xi32>
    %769 = arith.cmpi sgt, %756, %768 : vector<1x1xi32>
    %c0_i32_207 = arith.constant 0 : i32
    %770 = vector.broadcast %c0_i32_207 : i32 to vector<1x1xi32>
    %771 = arith.cmpi sgt, %757, %770 : vector<1x1xi32>
    %772 = arith.andi %769, %771 : vector<1x1xi1>
    %c1_i32_208 = arith.constant 1 : i32
    %773 = vector.broadcast %c1_i32_208 : i32 to vector<1x1xi32>
    %774 = arith.subi %756, %773 : vector<1x1xi32>
    %775 = vector.broadcast %774 : vector<1x1xi32> to vector<8x8xi32>
    %776 = arith.cmpi eq, %24, %775 : vector<8x8xi32>
    %cst_209 = arith.constant 0.000000e+00 : f32
    %777 = vector.broadcast %cst_209 : f32 to vector<8x8xf32>
    %778 = arith.select %776, %344, %777 : vector<8x8xi1>, vector<8x8xf32>
    %cst_210 = arith.constant dense<0.000000e+00> : vector<8xf32>
    %779 = vector.multi_reduction <add>, %778, %cst_210 [0] : vector<8x8xf32> to vector<8xf32>
    %780 = vector.shape_cast %779 : vector<8xf32> to vector<1x8xf32>
    %781 = vector.broadcast %756 : vector<1x1xi32> to vector<8x8xi32>
    %782 = arith.cmpi eq, %24, %781 : vector<8x8xi32>
    %cst_211 = arith.constant 0.000000e+00 : f32
    %783 = vector.broadcast %cst_211 : f32 to vector<8x8xf32>
    %784 = arith.select %782, %344, %783 : vector<8x8xi1>, vector<8x8xf32>
    %cst_212 = arith.constant dense<0.000000e+00> : vector<8xf32>
    %785 = vector.multi_reduction <add>, %784, %cst_212 [0] : vector<8x8xf32> to vector<8xf32>
    %786 = vector.shape_cast %785 : vector<8xf32> to vector<1x8xf32>
    %c1_i32_213 = arith.constant 1 : i32
    %787 = vector.broadcast %c1_i32_213 : i32 to vector<1x1xi32>
    %788 = arith.subi %757, %787 : vector<1x1xi32>
    %789 = vector.broadcast %788 : vector<1x1xi32> to vector<1x8xi32>
    %790 = arith.cmpi eq, %26, %789 : vector<1x8xi32>
    %cst_214 = arith.constant 0.000000e+00 : f32
    %791 = vector.broadcast %cst_214 : f32 to vector<1x8xf32>
    %792 = arith.select %790, %780, %791 : vector<1x8xi1>, vector<1x8xf32>
    %cst_215 = arith.constant dense<0.000000e+00> : vector<1xf32>
    %793 = vector.multi_reduction <add>, %792, %cst_215 [1] : vector<1x8xf32> to vector<1xf32>
    %794 = vector.shape_cast %793 : vector<1xf32> to vector<1x1xf32>
    %795 = vector.broadcast %757 : vector<1x1xi32> to vector<1x8xi32>
    %796 = arith.cmpi eq, %26, %795 : vector<1x8xi32>
    %cst_216 = arith.constant 0.000000e+00 : f32
    %797 = vector.broadcast %cst_216 : f32 to vector<1x8xf32>
    %798 = arith.select %796, %780, %797 : vector<1x8xi1>, vector<1x8xf32>
    %cst_217 = arith.constant dense<0.000000e+00> : vector<1xf32>
    %799 = vector.multi_reduction <add>, %798, %cst_217 [1] : vector<1x8xf32> to vector<1xf32>
    %800 = vector.shape_cast %799 : vector<1xf32> to vector<1x1xf32>
    %c1_i32_218 = arith.constant 1 : i32
    %801 = vector.broadcast %c1_i32_218 : i32 to vector<1x1xi32>
    %802 = arith.subi %757, %801 : vector<1x1xi32>
    %803 = vector.broadcast %802 : vector<1x1xi32> to vector<1x8xi32>
    %804 = arith.cmpi eq, %26, %803 : vector<1x8xi32>
    %cst_219 = arith.constant 0.000000e+00 : f32
    %805 = vector.broadcast %cst_219 : f32 to vector<1x8xf32>
    %806 = arith.select %804, %786, %805 : vector<1x8xi1>, vector<1x8xf32>
    %cst_220 = arith.constant dense<0.000000e+00> : vector<1xf32>
    %807 = vector.multi_reduction <add>, %806, %cst_220 [1] : vector<1x8xf32> to vector<1xf32>
    %808 = vector.shape_cast %807 : vector<1xf32> to vector<1x1xf32>
    %809 = arith.minimumf %794, %800 : vector<1x1xf32>
    %810 = arith.minimumf %809, %808 : vector<1x1xf32>
    %811 = arith.cmpf oeq, %794, %810 : vector<1x1xf32>
    %cst_221 = arith.constant dense<true> : vector<1x1xi1>
    %812 = arith.xori %811, %cst_221 : vector<1x1xi1>
    %813 = arith.cmpf oeq, %800, %810 : vector<1x1xf32>
    %814 = arith.andi %812, %813 : vector<1x1xi1>
    %815 = arith.ori %811, %814 : vector<1x1xi1>
    %c1_i32_222 = arith.constant 1 : i32
    %816 = vector.broadcast %c1_i32_222 : i32 to vector<1x1xi32>
    %817 = arith.subi %756, %816 : vector<1x1xi32>
    %818 = arith.select %815, %817, %756 : vector<1x1xi1>, vector<1x1xi32>
    %c1_i32_223 = arith.constant 1 : i32
    %819 = vector.broadcast %c1_i32_223 : i32 to vector<1x1xi32>
    %820 = arith.subi %757, %819 : vector<1x1xi32>
    %c1_i32_224 = arith.constant 1 : i32
    %821 = vector.broadcast %c1_i32_224 : i32 to vector<1x1xi32>
    %822 = arith.subi %757, %821 : vector<1x1xi32>
    %823 = arith.select %814, %757, %822 : vector<1x1xi1>, vector<1x1xi32>
    %824 = arith.select %811, %820, %823 : vector<1x1xi1>, vector<1x1xi32>
    %825 = arith.select %772, %818, %756 : vector<1x1xi1>, vector<1x1xi32>
    %826 = arith.select %772, %824, %757 : vector<1x1xi1>, vector<1x1xi32>
    %827 = vector.broadcast %825 : vector<1x1xi32> to vector<8x8xi32>
    %828 = arith.cmpi eq, %24, %827 : vector<8x8xi32>
    %829 = vector.broadcast %772 : vector<1x1xi1> to vector<8x8xi1>
    %830 = arith.andi %829, %828 : vector<8x8xi1>
    %831 = vector.broadcast %826 : vector<1x1xi32> to vector<8x8xi32>
    %832 = arith.cmpi eq, %25, %831 : vector<8x8xi32>
    %833 = arith.andi %830, %832 : vector<8x8xi1>
    %834 = arith.extui %833 : vector<8x8xi1> to vector<8x8xi32>
    %835 = arith.sitofp %834 : vector<8x8xi32> to vector<8x8xf32>
    %836 = arith.maximumf %767, %835 : vector<8x8xf32>
    %c7_i32_225 = arith.constant 7 : i32
    %c0_i32_226 = arith.constant 0 : i32
    %837 = vector.broadcast %c0_i32_226 : i32 to vector<1x1xi32>
    %838 = arith.cmpi sgt, %825, %837 : vector<1x1xi32>
    %c0_i32_227 = arith.constant 0 : i32
    %839 = vector.broadcast %c0_i32_227 : i32 to vector<1x1xi32>
    %840 = arith.cmpi sgt, %826, %839 : vector<1x1xi32>
    %841 = arith.andi %838, %840 : vector<1x1xi1>
    %c1_i32_228 = arith.constant 1 : i32
    %842 = vector.broadcast %c1_i32_228 : i32 to vector<1x1xi32>
    %843 = arith.subi %825, %842 : vector<1x1xi32>
    %844 = vector.broadcast %843 : vector<1x1xi32> to vector<8x8xi32>
    %845 = arith.cmpi eq, %24, %844 : vector<8x8xi32>
    %cst_229 = arith.constant 0.000000e+00 : f32
    %846 = vector.broadcast %cst_229 : f32 to vector<8x8xf32>
    %847 = arith.select %845, %344, %846 : vector<8x8xi1>, vector<8x8xf32>
    %cst_230 = arith.constant dense<0.000000e+00> : vector<8xf32>
    %848 = vector.multi_reduction <add>, %847, %cst_230 [0] : vector<8x8xf32> to vector<8xf32>
    %849 = vector.shape_cast %848 : vector<8xf32> to vector<1x8xf32>
    %850 = vector.broadcast %825 : vector<1x1xi32> to vector<8x8xi32>
    %851 = arith.cmpi eq, %24, %850 : vector<8x8xi32>
    %cst_231 = arith.constant 0.000000e+00 : f32
    %852 = vector.broadcast %cst_231 : f32 to vector<8x8xf32>
    %853 = arith.select %851, %344, %852 : vector<8x8xi1>, vector<8x8xf32>
    %cst_232 = arith.constant dense<0.000000e+00> : vector<8xf32>
    %854 = vector.multi_reduction <add>, %853, %cst_232 [0] : vector<8x8xf32> to vector<8xf32>
    %855 = vector.shape_cast %854 : vector<8xf32> to vector<1x8xf32>
    %c1_i32_233 = arith.constant 1 : i32
    %856 = vector.broadcast %c1_i32_233 : i32 to vector<1x1xi32>
    %857 = arith.subi %826, %856 : vector<1x1xi32>
    %858 = vector.broadcast %857 : vector<1x1xi32> to vector<1x8xi32>
    %859 = arith.cmpi eq, %26, %858 : vector<1x8xi32>
    %cst_234 = arith.constant 0.000000e+00 : f32
    %860 = vector.broadcast %cst_234 : f32 to vector<1x8xf32>
    %861 = arith.select %859, %849, %860 : vector<1x8xi1>, vector<1x8xf32>
    %cst_235 = arith.constant dense<0.000000e+00> : vector<1xf32>
    %862 = vector.multi_reduction <add>, %861, %cst_235 [1] : vector<1x8xf32> to vector<1xf32>
    %863 = vector.shape_cast %862 : vector<1xf32> to vector<1x1xf32>
    %864 = vector.broadcast %826 : vector<1x1xi32> to vector<1x8xi32>
    %865 = arith.cmpi eq, %26, %864 : vector<1x8xi32>
    %cst_236 = arith.constant 0.000000e+00 : f32
    %866 = vector.broadcast %cst_236 : f32 to vector<1x8xf32>
    %867 = arith.select %865, %849, %866 : vector<1x8xi1>, vector<1x8xf32>
    %cst_237 = arith.constant dense<0.000000e+00> : vector<1xf32>
    %868 = vector.multi_reduction <add>, %867, %cst_237 [1] : vector<1x8xf32> to vector<1xf32>
    %869 = vector.shape_cast %868 : vector<1xf32> to vector<1x1xf32>
    %c1_i32_238 = arith.constant 1 : i32
    %870 = vector.broadcast %c1_i32_238 : i32 to vector<1x1xi32>
    %871 = arith.subi %826, %870 : vector<1x1xi32>
    %872 = vector.broadcast %871 : vector<1x1xi32> to vector<1x8xi32>
    %873 = arith.cmpi eq, %26, %872 : vector<1x8xi32>
    %cst_239 = arith.constant 0.000000e+00 : f32
    %874 = vector.broadcast %cst_239 : f32 to vector<1x8xf32>
    %875 = arith.select %873, %855, %874 : vector<1x8xi1>, vector<1x8xf32>
    %cst_240 = arith.constant dense<0.000000e+00> : vector<1xf32>
    %876 = vector.multi_reduction <add>, %875, %cst_240 [1] : vector<1x8xf32> to vector<1xf32>
    %877 = vector.shape_cast %876 : vector<1xf32> to vector<1x1xf32>
    %878 = arith.minimumf %863, %869 : vector<1x1xf32>
    %879 = arith.minimumf %878, %877 : vector<1x1xf32>
    %880 = arith.cmpf oeq, %863, %879 : vector<1x1xf32>
    %cst_241 = arith.constant dense<true> : vector<1x1xi1>
    %881 = arith.xori %880, %cst_241 : vector<1x1xi1>
    %882 = arith.cmpf oeq, %869, %879 : vector<1x1xf32>
    %883 = arith.andi %881, %882 : vector<1x1xi1>
    %884 = arith.ori %880, %883 : vector<1x1xi1>
    %c1_i32_242 = arith.constant 1 : i32
    %885 = vector.broadcast %c1_i32_242 : i32 to vector<1x1xi32>
    %886 = arith.subi %825, %885 : vector<1x1xi32>
    %887 = arith.select %884, %886, %825 : vector<1x1xi1>, vector<1x1xi32>
    %c1_i32_243 = arith.constant 1 : i32
    %888 = vector.broadcast %c1_i32_243 : i32 to vector<1x1xi32>
    %889 = arith.subi %826, %888 : vector<1x1xi32>
    %c1_i32_244 = arith.constant 1 : i32
    %890 = vector.broadcast %c1_i32_244 : i32 to vector<1x1xi32>
    %891 = arith.subi %826, %890 : vector<1x1xi32>
    %892 = arith.select %883, %826, %891 : vector<1x1xi1>, vector<1x1xi32>
    %893 = arith.select %880, %889, %892 : vector<1x1xi1>, vector<1x1xi32>
    %894 = arith.select %841, %887, %825 : vector<1x1xi1>, vector<1x1xi32>
    %895 = arith.select %841, %893, %826 : vector<1x1xi1>, vector<1x1xi32>
    %896 = vector.broadcast %894 : vector<1x1xi32> to vector<8x8xi32>
    %897 = arith.cmpi eq, %24, %896 : vector<8x8xi32>
    %898 = vector.broadcast %841 : vector<1x1xi1> to vector<8x8xi1>
    %899 = arith.andi %898, %897 : vector<8x8xi1>
    %900 = vector.broadcast %895 : vector<1x1xi32> to vector<8x8xi32>
    %901 = arith.cmpi eq, %25, %900 : vector<8x8xi32>
    %902 = arith.andi %899, %901 : vector<8x8xi1>
    %903 = arith.extui %902 : vector<8x8xi1> to vector<8x8xi32>
    %904 = arith.sitofp %903 : vector<8x8xi32> to vector<8x8xf32>
    %905 = arith.maximumf %836, %904 : vector<8x8xf32>
    %c8_i32 = arith.constant 8 : i32
    %c0_i32_245 = arith.constant 0 : i32
    %906 = vector.broadcast %c0_i32_245 : i32 to vector<1x1xi32>
    %907 = arith.cmpi sgt, %894, %906 : vector<1x1xi32>
    %c0_i32_246 = arith.constant 0 : i32
    %908 = vector.broadcast %c0_i32_246 : i32 to vector<1x1xi32>
    %909 = arith.cmpi sgt, %895, %908 : vector<1x1xi32>
    %910 = arith.andi %907, %909 : vector<1x1xi1>
    %c1_i32_247 = arith.constant 1 : i32
    %911 = vector.broadcast %c1_i32_247 : i32 to vector<1x1xi32>
    %912 = arith.subi %894, %911 : vector<1x1xi32>
    %913 = vector.broadcast %912 : vector<1x1xi32> to vector<8x8xi32>
    %914 = arith.cmpi eq, %24, %913 : vector<8x8xi32>
    %cst_248 = arith.constant 0.000000e+00 : f32
    %915 = vector.broadcast %cst_248 : f32 to vector<8x8xf32>
    %916 = arith.select %914, %344, %915 : vector<8x8xi1>, vector<8x8xf32>
    %cst_249 = arith.constant dense<0.000000e+00> : vector<8xf32>
    %917 = vector.multi_reduction <add>, %916, %cst_249 [0] : vector<8x8xf32> to vector<8xf32>
    %918 = vector.shape_cast %917 : vector<8xf32> to vector<1x8xf32>
    %919 = vector.broadcast %894 : vector<1x1xi32> to vector<8x8xi32>
    %920 = arith.cmpi eq, %24, %919 : vector<8x8xi32>
    %cst_250 = arith.constant 0.000000e+00 : f32
    %921 = vector.broadcast %cst_250 : f32 to vector<8x8xf32>
    %922 = arith.select %920, %344, %921 : vector<8x8xi1>, vector<8x8xf32>
    %cst_251 = arith.constant dense<0.000000e+00> : vector<8xf32>
    %923 = vector.multi_reduction <add>, %922, %cst_251 [0] : vector<8x8xf32> to vector<8xf32>
    %924 = vector.shape_cast %923 : vector<8xf32> to vector<1x8xf32>
    %c1_i32_252 = arith.constant 1 : i32
    %925 = vector.broadcast %c1_i32_252 : i32 to vector<1x1xi32>
    %926 = arith.subi %895, %925 : vector<1x1xi32>
    %927 = vector.broadcast %926 : vector<1x1xi32> to vector<1x8xi32>
    %928 = arith.cmpi eq, %26, %927 : vector<1x8xi32>
    %cst_253 = arith.constant 0.000000e+00 : f32
    %929 = vector.broadcast %cst_253 : f32 to vector<1x8xf32>
    %930 = arith.select %928, %918, %929 : vector<1x8xi1>, vector<1x8xf32>
    %cst_254 = arith.constant dense<0.000000e+00> : vector<1xf32>
    %931 = vector.multi_reduction <add>, %930, %cst_254 [1] : vector<1x8xf32> to vector<1xf32>
    %932 = vector.shape_cast %931 : vector<1xf32> to vector<1x1xf32>
    %933 = vector.broadcast %895 : vector<1x1xi32> to vector<1x8xi32>
    %934 = arith.cmpi eq, %26, %933 : vector<1x8xi32>
    %cst_255 = arith.constant 0.000000e+00 : f32
    %935 = vector.broadcast %cst_255 : f32 to vector<1x8xf32>
    %936 = arith.select %934, %918, %935 : vector<1x8xi1>, vector<1x8xf32>
    %cst_256 = arith.constant dense<0.000000e+00> : vector<1xf32>
    %937 = vector.multi_reduction <add>, %936, %cst_256 [1] : vector<1x8xf32> to vector<1xf32>
    %938 = vector.shape_cast %937 : vector<1xf32> to vector<1x1xf32>
    %c1_i32_257 = arith.constant 1 : i32
    %939 = vector.broadcast %c1_i32_257 : i32 to vector<1x1xi32>
    %940 = arith.subi %895, %939 : vector<1x1xi32>
    %941 = vector.broadcast %940 : vector<1x1xi32> to vector<1x8xi32>
    %942 = arith.cmpi eq, %26, %941 : vector<1x8xi32>
    %cst_258 = arith.constant 0.000000e+00 : f32
    %943 = vector.broadcast %cst_258 : f32 to vector<1x8xf32>
    %944 = arith.select %942, %924, %943 : vector<1x8xi1>, vector<1x8xf32>
    %cst_259 = arith.constant dense<0.000000e+00> : vector<1xf32>
    %945 = vector.multi_reduction <add>, %944, %cst_259 [1] : vector<1x8xf32> to vector<1xf32>
    %946 = vector.shape_cast %945 : vector<1xf32> to vector<1x1xf32>
    %947 = arith.minimumf %932, %938 : vector<1x1xf32>
    %948 = arith.minimumf %947, %946 : vector<1x1xf32>
    %949 = arith.cmpf oeq, %932, %948 : vector<1x1xf32>
    %cst_260 = arith.constant dense<true> : vector<1x1xi1>
    %950 = arith.xori %949, %cst_260 : vector<1x1xi1>
    %951 = arith.cmpf oeq, %938, %948 : vector<1x1xf32>
    %952 = arith.andi %950, %951 : vector<1x1xi1>
    %953 = arith.ori %949, %952 : vector<1x1xi1>
    %c1_i32_261 = arith.constant 1 : i32
    %954 = vector.broadcast %c1_i32_261 : i32 to vector<1x1xi32>
    %955 = arith.subi %894, %954 : vector<1x1xi32>
    %956 = arith.select %953, %955, %894 : vector<1x1xi1>, vector<1x1xi32>
    %c1_i32_262 = arith.constant 1 : i32
    %957 = vector.broadcast %c1_i32_262 : i32 to vector<1x1xi32>
    %958 = arith.subi %895, %957 : vector<1x1xi32>
    %c1_i32_263 = arith.constant 1 : i32
    %959 = vector.broadcast %c1_i32_263 : i32 to vector<1x1xi32>
    %960 = arith.subi %895, %959 : vector<1x1xi32>
    %961 = arith.select %952, %895, %960 : vector<1x1xi1>, vector<1x1xi32>
    %962 = arith.select %949, %958, %961 : vector<1x1xi1>, vector<1x1xi32>
    %963 = arith.select %910, %956, %894 : vector<1x1xi1>, vector<1x1xi32>
    %964 = arith.select %910, %962, %895 : vector<1x1xi1>, vector<1x1xi32>
    %965 = vector.broadcast %963 : vector<1x1xi32> to vector<8x8xi32>
    %966 = arith.cmpi eq, %24, %965 : vector<8x8xi32>
    %967 = vector.broadcast %910 : vector<1x1xi1> to vector<8x8xi1>
    %968 = arith.andi %967, %966 : vector<8x8xi1>
    %969 = vector.broadcast %964 : vector<1x1xi32> to vector<8x8xi32>
    %970 = arith.cmpi eq, %25, %969 : vector<8x8xi32>
    %971 = arith.andi %968, %970 : vector<8x8xi1>
    %972 = arith.extui %971 : vector<8x8xi1> to vector<8x8xi32>
    %973 = arith.sitofp %972 : vector<8x8xi32> to vector<8x8xf32>
    %974 = arith.maximumf %905, %973 : vector<8x8xf32>
    %c9_i32 = arith.constant 9 : i32
    %c0_i32_264 = arith.constant 0 : i32
    %975 = vector.broadcast %c0_i32_264 : i32 to vector<1x1xi32>
    %976 = arith.cmpi sgt, %963, %975 : vector<1x1xi32>
    %c0_i32_265 = arith.constant 0 : i32
    %977 = vector.broadcast %c0_i32_265 : i32 to vector<1x1xi32>
    %978 = arith.cmpi sgt, %964, %977 : vector<1x1xi32>
    %979 = arith.andi %976, %978 : vector<1x1xi1>
    %c1_i32_266 = arith.constant 1 : i32
    %980 = vector.broadcast %c1_i32_266 : i32 to vector<1x1xi32>
    %981 = arith.subi %963, %980 : vector<1x1xi32>
    %982 = vector.broadcast %981 : vector<1x1xi32> to vector<8x8xi32>
    %983 = arith.cmpi eq, %24, %982 : vector<8x8xi32>
    %cst_267 = arith.constant 0.000000e+00 : f32
    %984 = vector.broadcast %cst_267 : f32 to vector<8x8xf32>
    %985 = arith.select %983, %344, %984 : vector<8x8xi1>, vector<8x8xf32>
    %cst_268 = arith.constant dense<0.000000e+00> : vector<8xf32>
    %986 = vector.multi_reduction <add>, %985, %cst_268 [0] : vector<8x8xf32> to vector<8xf32>
    %987 = vector.shape_cast %986 : vector<8xf32> to vector<1x8xf32>
    %988 = vector.broadcast %963 : vector<1x1xi32> to vector<8x8xi32>
    %989 = arith.cmpi eq, %24, %988 : vector<8x8xi32>
    %cst_269 = arith.constant 0.000000e+00 : f32
    %990 = vector.broadcast %cst_269 : f32 to vector<8x8xf32>
    %991 = arith.select %989, %344, %990 : vector<8x8xi1>, vector<8x8xf32>
    %cst_270 = arith.constant dense<0.000000e+00> : vector<8xf32>
    %992 = vector.multi_reduction <add>, %991, %cst_270 [0] : vector<8x8xf32> to vector<8xf32>
    %993 = vector.shape_cast %992 : vector<8xf32> to vector<1x8xf32>
    %c1_i32_271 = arith.constant 1 : i32
    %994 = vector.broadcast %c1_i32_271 : i32 to vector<1x1xi32>
    %995 = arith.subi %964, %994 : vector<1x1xi32>
    %996 = vector.broadcast %995 : vector<1x1xi32> to vector<1x8xi32>
    %997 = arith.cmpi eq, %26, %996 : vector<1x8xi32>
    %cst_272 = arith.constant 0.000000e+00 : f32
    %998 = vector.broadcast %cst_272 : f32 to vector<1x8xf32>
    %999 = arith.select %997, %987, %998 : vector<1x8xi1>, vector<1x8xf32>
    %cst_273 = arith.constant dense<0.000000e+00> : vector<1xf32>
    %1000 = vector.multi_reduction <add>, %999, %cst_273 [1] : vector<1x8xf32> to vector<1xf32>
    %1001 = vector.shape_cast %1000 : vector<1xf32> to vector<1x1xf32>
    %1002 = vector.broadcast %964 : vector<1x1xi32> to vector<1x8xi32>
    %1003 = arith.cmpi eq, %26, %1002 : vector<1x8xi32>
    %cst_274 = arith.constant 0.000000e+00 : f32
    %1004 = vector.broadcast %cst_274 : f32 to vector<1x8xf32>
    %1005 = arith.select %1003, %987, %1004 : vector<1x8xi1>, vector<1x8xf32>
    %cst_275 = arith.constant dense<0.000000e+00> : vector<1xf32>
    %1006 = vector.multi_reduction <add>, %1005, %cst_275 [1] : vector<1x8xf32> to vector<1xf32>
    %1007 = vector.shape_cast %1006 : vector<1xf32> to vector<1x1xf32>
    %c1_i32_276 = arith.constant 1 : i32
    %1008 = vector.broadcast %c1_i32_276 : i32 to vector<1x1xi32>
    %1009 = arith.subi %964, %1008 : vector<1x1xi32>
    %1010 = vector.broadcast %1009 : vector<1x1xi32> to vector<1x8xi32>
    %1011 = arith.cmpi eq, %26, %1010 : vector<1x8xi32>
    %cst_277 = arith.constant 0.000000e+00 : f32
    %1012 = vector.broadcast %cst_277 : f32 to vector<1x8xf32>
    %1013 = arith.select %1011, %993, %1012 : vector<1x8xi1>, vector<1x8xf32>
    %cst_278 = arith.constant dense<0.000000e+00> : vector<1xf32>
    %1014 = vector.multi_reduction <add>, %1013, %cst_278 [1] : vector<1x8xf32> to vector<1xf32>
    %1015 = vector.shape_cast %1014 : vector<1xf32> to vector<1x1xf32>
    %1016 = arith.minimumf %1001, %1007 : vector<1x1xf32>
    %1017 = arith.minimumf %1016, %1015 : vector<1x1xf32>
    %1018 = arith.cmpf oeq, %1001, %1017 : vector<1x1xf32>
    %cst_279 = arith.constant dense<true> : vector<1x1xi1>
    %1019 = arith.xori %1018, %cst_279 : vector<1x1xi1>
    %1020 = arith.cmpf oeq, %1007, %1017 : vector<1x1xf32>
    %1021 = arith.andi %1019, %1020 : vector<1x1xi1>
    %1022 = arith.ori %1018, %1021 : vector<1x1xi1>
    %c1_i32_280 = arith.constant 1 : i32
    %1023 = vector.broadcast %c1_i32_280 : i32 to vector<1x1xi32>
    %1024 = arith.subi %963, %1023 : vector<1x1xi32>
    %1025 = arith.select %1022, %1024, %963 : vector<1x1xi1>, vector<1x1xi32>
    %c1_i32_281 = arith.constant 1 : i32
    %1026 = vector.broadcast %c1_i32_281 : i32 to vector<1x1xi32>
    %1027 = arith.subi %964, %1026 : vector<1x1xi32>
    %c1_i32_282 = arith.constant 1 : i32
    %1028 = vector.broadcast %c1_i32_282 : i32 to vector<1x1xi32>
    %1029 = arith.subi %964, %1028 : vector<1x1xi32>
    %1030 = arith.select %1021, %964, %1029 : vector<1x1xi1>, vector<1x1xi32>
    %1031 = arith.select %1018, %1027, %1030 : vector<1x1xi1>, vector<1x1xi32>
    %1032 = arith.select %979, %1025, %963 : vector<1x1xi1>, vector<1x1xi32>
    %1033 = arith.select %979, %1031, %964 : vector<1x1xi1>, vector<1x1xi32>
    %1034 = vector.broadcast %1032 : vector<1x1xi32> to vector<8x8xi32>
    %1035 = arith.cmpi eq, %24, %1034 : vector<8x8xi32>
    %1036 = vector.broadcast %979 : vector<1x1xi1> to vector<8x8xi1>
    %1037 = arith.andi %1036, %1035 : vector<8x8xi1>
    %1038 = vector.broadcast %1033 : vector<1x1xi32> to vector<8x8xi32>
    %1039 = arith.cmpi eq, %25, %1038 : vector<8x8xi32>
    %1040 = arith.andi %1037, %1039 : vector<8x8xi1>
    %1041 = arith.extui %1040 : vector<8x8xi1> to vector<8x8xi32>
    %1042 = arith.sitofp %1041 : vector<8x8xi32> to vector<8x8xf32>
    %1043 = arith.maximumf %974, %1042 : vector<8x8xf32>
    %c10_i32 = arith.constant 10 : i32
    %c0_i32_283 = arith.constant 0 : i32
    %1044 = vector.broadcast %c0_i32_283 : i32 to vector<1x1xi32>
    %1045 = arith.cmpi sgt, %1032, %1044 : vector<1x1xi32>
    %c0_i32_284 = arith.constant 0 : i32
    %1046 = vector.broadcast %c0_i32_284 : i32 to vector<1x1xi32>
    %1047 = arith.cmpi sgt, %1033, %1046 : vector<1x1xi32>
    %1048 = arith.andi %1045, %1047 : vector<1x1xi1>
    %c1_i32_285 = arith.constant 1 : i32
    %1049 = vector.broadcast %c1_i32_285 : i32 to vector<1x1xi32>
    %1050 = arith.subi %1032, %1049 : vector<1x1xi32>
    %1051 = vector.broadcast %1050 : vector<1x1xi32> to vector<8x8xi32>
    %1052 = arith.cmpi eq, %24, %1051 : vector<8x8xi32>
    %cst_286 = arith.constant 0.000000e+00 : f32
    %1053 = vector.broadcast %cst_286 : f32 to vector<8x8xf32>
    %1054 = arith.select %1052, %344, %1053 : vector<8x8xi1>, vector<8x8xf32>
    %cst_287 = arith.constant dense<0.000000e+00> : vector<8xf32>
    %1055 = vector.multi_reduction <add>, %1054, %cst_287 [0] : vector<8x8xf32> to vector<8xf32>
    %1056 = vector.shape_cast %1055 : vector<8xf32> to vector<1x8xf32>
    %1057 = vector.broadcast %1032 : vector<1x1xi32> to vector<8x8xi32>
    %1058 = arith.cmpi eq, %24, %1057 : vector<8x8xi32>
    %cst_288 = arith.constant 0.000000e+00 : f32
    %1059 = vector.broadcast %cst_288 : f32 to vector<8x8xf32>
    %1060 = arith.select %1058, %344, %1059 : vector<8x8xi1>, vector<8x8xf32>
    %cst_289 = arith.constant dense<0.000000e+00> : vector<8xf32>
    %1061 = vector.multi_reduction <add>, %1060, %cst_289 [0] : vector<8x8xf32> to vector<8xf32>
    %1062 = vector.shape_cast %1061 : vector<8xf32> to vector<1x8xf32>
    %c1_i32_290 = arith.constant 1 : i32
    %1063 = vector.broadcast %c1_i32_290 : i32 to vector<1x1xi32>
    %1064 = arith.subi %1033, %1063 : vector<1x1xi32>
    %1065 = vector.broadcast %1064 : vector<1x1xi32> to vector<1x8xi32>
    %1066 = arith.cmpi eq, %26, %1065 : vector<1x8xi32>
    %cst_291 = arith.constant 0.000000e+00 : f32
    %1067 = vector.broadcast %cst_291 : f32 to vector<1x8xf32>
    %1068 = arith.select %1066, %1056, %1067 : vector<1x8xi1>, vector<1x8xf32>
    %cst_292 = arith.constant dense<0.000000e+00> : vector<1xf32>
    %1069 = vector.multi_reduction <add>, %1068, %cst_292 [1] : vector<1x8xf32> to vector<1xf32>
    %1070 = vector.shape_cast %1069 : vector<1xf32> to vector<1x1xf32>
    %1071 = vector.broadcast %1033 : vector<1x1xi32> to vector<1x8xi32>
    %1072 = arith.cmpi eq, %26, %1071 : vector<1x8xi32>
    %cst_293 = arith.constant 0.000000e+00 : f32
    %1073 = vector.broadcast %cst_293 : f32 to vector<1x8xf32>
    %1074 = arith.select %1072, %1056, %1073 : vector<1x8xi1>, vector<1x8xf32>
    %cst_294 = arith.constant dense<0.000000e+00> : vector<1xf32>
    %1075 = vector.multi_reduction <add>, %1074, %cst_294 [1] : vector<1x8xf32> to vector<1xf32>
    %1076 = vector.shape_cast %1075 : vector<1xf32> to vector<1x1xf32>
    %c1_i32_295 = arith.constant 1 : i32
    %1077 = vector.broadcast %c1_i32_295 : i32 to vector<1x1xi32>
    %1078 = arith.subi %1033, %1077 : vector<1x1xi32>
    %1079 = vector.broadcast %1078 : vector<1x1xi32> to vector<1x8xi32>
    %1080 = arith.cmpi eq, %26, %1079 : vector<1x8xi32>
    %cst_296 = arith.constant 0.000000e+00 : f32
    %1081 = vector.broadcast %cst_296 : f32 to vector<1x8xf32>
    %1082 = arith.select %1080, %1062, %1081 : vector<1x8xi1>, vector<1x8xf32>
    %cst_297 = arith.constant dense<0.000000e+00> : vector<1xf32>
    %1083 = vector.multi_reduction <add>, %1082, %cst_297 [1] : vector<1x8xf32> to vector<1xf32>
    %1084 = vector.shape_cast %1083 : vector<1xf32> to vector<1x1xf32>
    %1085 = arith.minimumf %1070, %1076 : vector<1x1xf32>
    %1086 = arith.minimumf %1085, %1084 : vector<1x1xf32>
    %1087 = arith.cmpf oeq, %1070, %1086 : vector<1x1xf32>
    %cst_298 = arith.constant dense<true> : vector<1x1xi1>
    %1088 = arith.xori %1087, %cst_298 : vector<1x1xi1>
    %1089 = arith.cmpf oeq, %1076, %1086 : vector<1x1xf32>
    %1090 = arith.andi %1088, %1089 : vector<1x1xi1>
    %1091 = arith.ori %1087, %1090 : vector<1x1xi1>
    %c1_i32_299 = arith.constant 1 : i32
    %1092 = vector.broadcast %c1_i32_299 : i32 to vector<1x1xi32>
    %1093 = arith.subi %1032, %1092 : vector<1x1xi32>
    %1094 = arith.select %1091, %1093, %1032 : vector<1x1xi1>, vector<1x1xi32>
    %c1_i32_300 = arith.constant 1 : i32
    %1095 = vector.broadcast %c1_i32_300 : i32 to vector<1x1xi32>
    %1096 = arith.subi %1033, %1095 : vector<1x1xi32>
    %c1_i32_301 = arith.constant 1 : i32
    %1097 = vector.broadcast %c1_i32_301 : i32 to vector<1x1xi32>
    %1098 = arith.subi %1033, %1097 : vector<1x1xi32>
    %1099 = arith.select %1090, %1033, %1098 : vector<1x1xi1>, vector<1x1xi32>
    %1100 = arith.select %1087, %1096, %1099 : vector<1x1xi1>, vector<1x1xi32>
    %1101 = arith.select %1048, %1094, %1032 : vector<1x1xi1>, vector<1x1xi32>
    %1102 = arith.select %1048, %1100, %1033 : vector<1x1xi1>, vector<1x1xi32>
    %1103 = vector.broadcast %1101 : vector<1x1xi32> to vector<8x8xi32>
    %1104 = arith.cmpi eq, %24, %1103 : vector<8x8xi32>
    %1105 = vector.broadcast %1048 : vector<1x1xi1> to vector<8x8xi1>
    %1106 = arith.andi %1105, %1104 : vector<8x8xi1>
    %1107 = vector.broadcast %1102 : vector<1x1xi32> to vector<8x8xi32>
    %1108 = arith.cmpi eq, %25, %1107 : vector<8x8xi32>
    %1109 = arith.andi %1106, %1108 : vector<8x8xi1>
    %1110 = arith.extui %1109 : vector<8x8xi1> to vector<8x8xi32>
    %1111 = arith.sitofp %1110 : vector<8x8xi32> to vector<8x8xf32>
    %1112 = arith.maximumf %1043, %1111 : vector<8x8xf32>
    %c11_i32 = arith.constant 11 : i32
    %c0_i32_302 = arith.constant 0 : i32
    %1113 = vector.broadcast %c0_i32_302 : i32 to vector<1x1xi32>
    %1114 = arith.cmpi sgt, %1101, %1113 : vector<1x1xi32>
    %c0_i32_303 = arith.constant 0 : i32
    %1115 = vector.broadcast %c0_i32_303 : i32 to vector<1x1xi32>
    %1116 = arith.cmpi sgt, %1102, %1115 : vector<1x1xi32>
    %1117 = arith.andi %1114, %1116 : vector<1x1xi1>
    %c1_i32_304 = arith.constant 1 : i32
    %1118 = vector.broadcast %c1_i32_304 : i32 to vector<1x1xi32>
    %1119 = arith.subi %1101, %1118 : vector<1x1xi32>
    %1120 = vector.broadcast %1119 : vector<1x1xi32> to vector<8x8xi32>
    %1121 = arith.cmpi eq, %24, %1120 : vector<8x8xi32>
    %cst_305 = arith.constant 0.000000e+00 : f32
    %1122 = vector.broadcast %cst_305 : f32 to vector<8x8xf32>
    %1123 = arith.select %1121, %344, %1122 : vector<8x8xi1>, vector<8x8xf32>
    %cst_306 = arith.constant dense<0.000000e+00> : vector<8xf32>
    %1124 = vector.multi_reduction <add>, %1123, %cst_306 [0] : vector<8x8xf32> to vector<8xf32>
    %1125 = vector.shape_cast %1124 : vector<8xf32> to vector<1x8xf32>
    %1126 = vector.broadcast %1101 : vector<1x1xi32> to vector<8x8xi32>
    %1127 = arith.cmpi eq, %24, %1126 : vector<8x8xi32>
    %cst_307 = arith.constant 0.000000e+00 : f32
    %1128 = vector.broadcast %cst_307 : f32 to vector<8x8xf32>
    %1129 = arith.select %1127, %344, %1128 : vector<8x8xi1>, vector<8x8xf32>
    %cst_308 = arith.constant dense<0.000000e+00> : vector<8xf32>
    %1130 = vector.multi_reduction <add>, %1129, %cst_308 [0] : vector<8x8xf32> to vector<8xf32>
    %1131 = vector.shape_cast %1130 : vector<8xf32> to vector<1x8xf32>
    %c1_i32_309 = arith.constant 1 : i32
    %1132 = vector.broadcast %c1_i32_309 : i32 to vector<1x1xi32>
    %1133 = arith.subi %1102, %1132 : vector<1x1xi32>
    %1134 = vector.broadcast %1133 : vector<1x1xi32> to vector<1x8xi32>
    %1135 = arith.cmpi eq, %26, %1134 : vector<1x8xi32>
    %cst_310 = arith.constant 0.000000e+00 : f32
    %1136 = vector.broadcast %cst_310 : f32 to vector<1x8xf32>
    %1137 = arith.select %1135, %1125, %1136 : vector<1x8xi1>, vector<1x8xf32>
    %cst_311 = arith.constant dense<0.000000e+00> : vector<1xf32>
    %1138 = vector.multi_reduction <add>, %1137, %cst_311 [1] : vector<1x8xf32> to vector<1xf32>
    %1139 = vector.shape_cast %1138 : vector<1xf32> to vector<1x1xf32>
    %1140 = vector.broadcast %1102 : vector<1x1xi32> to vector<1x8xi32>
    %1141 = arith.cmpi eq, %26, %1140 : vector<1x8xi32>
    %cst_312 = arith.constant 0.000000e+00 : f32
    %1142 = vector.broadcast %cst_312 : f32 to vector<1x8xf32>
    %1143 = arith.select %1141, %1125, %1142 : vector<1x8xi1>, vector<1x8xf32>
    %cst_313 = arith.constant dense<0.000000e+00> : vector<1xf32>
    %1144 = vector.multi_reduction <add>, %1143, %cst_313 [1] : vector<1x8xf32> to vector<1xf32>
    %1145 = vector.shape_cast %1144 : vector<1xf32> to vector<1x1xf32>
    %c1_i32_314 = arith.constant 1 : i32
    %1146 = vector.broadcast %c1_i32_314 : i32 to vector<1x1xi32>
    %1147 = arith.subi %1102, %1146 : vector<1x1xi32>
    %1148 = vector.broadcast %1147 : vector<1x1xi32> to vector<1x8xi32>
    %1149 = arith.cmpi eq, %26, %1148 : vector<1x8xi32>
    %cst_315 = arith.constant 0.000000e+00 : f32
    %1150 = vector.broadcast %cst_315 : f32 to vector<1x8xf32>
    %1151 = arith.select %1149, %1131, %1150 : vector<1x8xi1>, vector<1x8xf32>
    %cst_316 = arith.constant dense<0.000000e+00> : vector<1xf32>
    %1152 = vector.multi_reduction <add>, %1151, %cst_316 [1] : vector<1x8xf32> to vector<1xf32>
    %1153 = vector.shape_cast %1152 : vector<1xf32> to vector<1x1xf32>
    %1154 = arith.minimumf %1139, %1145 : vector<1x1xf32>
    %1155 = arith.minimumf %1154, %1153 : vector<1x1xf32>
    %1156 = arith.cmpf oeq, %1139, %1155 : vector<1x1xf32>
    %cst_317 = arith.constant dense<true> : vector<1x1xi1>
    %1157 = arith.xori %1156, %cst_317 : vector<1x1xi1>
    %1158 = arith.cmpf oeq, %1145, %1155 : vector<1x1xf32>
    %1159 = arith.andi %1157, %1158 : vector<1x1xi1>
    %1160 = arith.ori %1156, %1159 : vector<1x1xi1>
    %c1_i32_318 = arith.constant 1 : i32
    %1161 = vector.broadcast %c1_i32_318 : i32 to vector<1x1xi32>
    %1162 = arith.subi %1101, %1161 : vector<1x1xi32>
    %1163 = arith.select %1160, %1162, %1101 : vector<1x1xi1>, vector<1x1xi32>
    %c1_i32_319 = arith.constant 1 : i32
    %1164 = vector.broadcast %c1_i32_319 : i32 to vector<1x1xi32>
    %1165 = arith.subi %1102, %1164 : vector<1x1xi32>
    %c1_i32_320 = arith.constant 1 : i32
    %1166 = vector.broadcast %c1_i32_320 : i32 to vector<1x1xi32>
    %1167 = arith.subi %1102, %1166 : vector<1x1xi32>
    %1168 = arith.select %1159, %1102, %1167 : vector<1x1xi1>, vector<1x1xi32>
    %1169 = arith.select %1156, %1165, %1168 : vector<1x1xi1>, vector<1x1xi32>
    %1170 = arith.select %1117, %1163, %1101 : vector<1x1xi1>, vector<1x1xi32>
    %1171 = arith.select %1117, %1169, %1102 : vector<1x1xi1>, vector<1x1xi32>
    %1172 = vector.broadcast %1170 : vector<1x1xi32> to vector<8x8xi32>
    %1173 = arith.cmpi eq, %24, %1172 : vector<8x8xi32>
    %1174 = vector.broadcast %1117 : vector<1x1xi1> to vector<8x8xi1>
    %1175 = arith.andi %1174, %1173 : vector<8x8xi1>
    %1176 = vector.broadcast %1171 : vector<1x1xi32> to vector<8x8xi32>
    %1177 = arith.cmpi eq, %25, %1176 : vector<8x8xi32>
    %1178 = arith.andi %1175, %1177 : vector<8x8xi1>
    %1179 = arith.extui %1178 : vector<8x8xi1> to vector<8x8xi32>
    %1180 = arith.sitofp %1179 : vector<8x8xi32> to vector<8x8xf32>
    %1181 = arith.maximumf %1112, %1180 : vector<8x8xf32>
    %c12_i32 = arith.constant 12 : i32
    %c0_i32_321 = arith.constant 0 : i32
    %1182 = vector.broadcast %c0_i32_321 : i32 to vector<1x1xi32>
    %1183 = arith.cmpi sgt, %1170, %1182 : vector<1x1xi32>
    %c0_i32_322 = arith.constant 0 : i32
    %1184 = vector.broadcast %c0_i32_322 : i32 to vector<1x1xi32>
    %1185 = arith.cmpi sgt, %1171, %1184 : vector<1x1xi32>
    %1186 = arith.andi %1183, %1185 : vector<1x1xi1>
    %c1_i32_323 = arith.constant 1 : i32
    %1187 = vector.broadcast %c1_i32_323 : i32 to vector<1x1xi32>
    %1188 = arith.subi %1170, %1187 : vector<1x1xi32>
    %1189 = vector.broadcast %1188 : vector<1x1xi32> to vector<8x8xi32>
    %1190 = arith.cmpi eq, %24, %1189 : vector<8x8xi32>
    %cst_324 = arith.constant 0.000000e+00 : f32
    %1191 = vector.broadcast %cst_324 : f32 to vector<8x8xf32>
    %1192 = arith.select %1190, %344, %1191 : vector<8x8xi1>, vector<8x8xf32>
    %cst_325 = arith.constant dense<0.000000e+00> : vector<8xf32>
    %1193 = vector.multi_reduction <add>, %1192, %cst_325 [0] : vector<8x8xf32> to vector<8xf32>
    %1194 = vector.shape_cast %1193 : vector<8xf32> to vector<1x8xf32>
    %1195 = vector.broadcast %1170 : vector<1x1xi32> to vector<8x8xi32>
    %1196 = arith.cmpi eq, %24, %1195 : vector<8x8xi32>
    %cst_326 = arith.constant 0.000000e+00 : f32
    %1197 = vector.broadcast %cst_326 : f32 to vector<8x8xf32>
    %1198 = arith.select %1196, %344, %1197 : vector<8x8xi1>, vector<8x8xf32>
    %cst_327 = arith.constant dense<0.000000e+00> : vector<8xf32>
    %1199 = vector.multi_reduction <add>, %1198, %cst_327 [0] : vector<8x8xf32> to vector<8xf32>
    %1200 = vector.shape_cast %1199 : vector<8xf32> to vector<1x8xf32>
    %c1_i32_328 = arith.constant 1 : i32
    %1201 = vector.broadcast %c1_i32_328 : i32 to vector<1x1xi32>
    %1202 = arith.subi %1171, %1201 : vector<1x1xi32>
    %1203 = vector.broadcast %1202 : vector<1x1xi32> to vector<1x8xi32>
    %1204 = arith.cmpi eq, %26, %1203 : vector<1x8xi32>
    %cst_329 = arith.constant 0.000000e+00 : f32
    %1205 = vector.broadcast %cst_329 : f32 to vector<1x8xf32>
    %1206 = arith.select %1204, %1194, %1205 : vector<1x8xi1>, vector<1x8xf32>
    %cst_330 = arith.constant dense<0.000000e+00> : vector<1xf32>
    %1207 = vector.multi_reduction <add>, %1206, %cst_330 [1] : vector<1x8xf32> to vector<1xf32>
    %1208 = vector.shape_cast %1207 : vector<1xf32> to vector<1x1xf32>
    %1209 = vector.broadcast %1171 : vector<1x1xi32> to vector<1x8xi32>
    %1210 = arith.cmpi eq, %26, %1209 : vector<1x8xi32>
    %cst_331 = arith.constant 0.000000e+00 : f32
    %1211 = vector.broadcast %cst_331 : f32 to vector<1x8xf32>
    %1212 = arith.select %1210, %1194, %1211 : vector<1x8xi1>, vector<1x8xf32>
    %cst_332 = arith.constant dense<0.000000e+00> : vector<1xf32>
    %1213 = vector.multi_reduction <add>, %1212, %cst_332 [1] : vector<1x8xf32> to vector<1xf32>
    %1214 = vector.shape_cast %1213 : vector<1xf32> to vector<1x1xf32>
    %c1_i32_333 = arith.constant 1 : i32
    %1215 = vector.broadcast %c1_i32_333 : i32 to vector<1x1xi32>
    %1216 = arith.subi %1171, %1215 : vector<1x1xi32>
    %1217 = vector.broadcast %1216 : vector<1x1xi32> to vector<1x8xi32>
    %1218 = arith.cmpi eq, %26, %1217 : vector<1x8xi32>
    %cst_334 = arith.constant 0.000000e+00 : f32
    %1219 = vector.broadcast %cst_334 : f32 to vector<1x8xf32>
    %1220 = arith.select %1218, %1200, %1219 : vector<1x8xi1>, vector<1x8xf32>
    %cst_335 = arith.constant dense<0.000000e+00> : vector<1xf32>
    %1221 = vector.multi_reduction <add>, %1220, %cst_335 [1] : vector<1x8xf32> to vector<1xf32>
    %1222 = vector.shape_cast %1221 : vector<1xf32> to vector<1x1xf32>
    %1223 = arith.minimumf %1208, %1214 : vector<1x1xf32>
    %1224 = arith.minimumf %1223, %1222 : vector<1x1xf32>
    %1225 = arith.cmpf oeq, %1208, %1224 : vector<1x1xf32>
    %cst_336 = arith.constant dense<true> : vector<1x1xi1>
    %1226 = arith.xori %1225, %cst_336 : vector<1x1xi1>
    %1227 = arith.cmpf oeq, %1214, %1224 : vector<1x1xf32>
    %1228 = arith.andi %1226, %1227 : vector<1x1xi1>
    %1229 = arith.ori %1225, %1228 : vector<1x1xi1>
    %c1_i32_337 = arith.constant 1 : i32
    %1230 = vector.broadcast %c1_i32_337 : i32 to vector<1x1xi32>
    %1231 = arith.subi %1170, %1230 : vector<1x1xi32>
    %1232 = arith.select %1229, %1231, %1170 : vector<1x1xi1>, vector<1x1xi32>
    %c1_i32_338 = arith.constant 1 : i32
    %1233 = vector.broadcast %c1_i32_338 : i32 to vector<1x1xi32>
    %1234 = arith.subi %1171, %1233 : vector<1x1xi32>
    %c1_i32_339 = arith.constant 1 : i32
    %1235 = vector.broadcast %c1_i32_339 : i32 to vector<1x1xi32>
    %1236 = arith.subi %1171, %1235 : vector<1x1xi32>
    %1237 = arith.select %1228, %1171, %1236 : vector<1x1xi1>, vector<1x1xi32>
    %1238 = arith.select %1225, %1234, %1237 : vector<1x1xi1>, vector<1x1xi32>
    %1239 = arith.select %1186, %1232, %1170 : vector<1x1xi1>, vector<1x1xi32>
    %1240 = arith.select %1186, %1238, %1171 : vector<1x1xi1>, vector<1x1xi32>
    %1241 = vector.broadcast %1239 : vector<1x1xi32> to vector<8x8xi32>
    %1242 = arith.cmpi eq, %24, %1241 : vector<8x8xi32>
    %1243 = vector.broadcast %1186 : vector<1x1xi1> to vector<8x8xi1>
    %1244 = arith.andi %1243, %1242 : vector<8x8xi1>
    %1245 = vector.broadcast %1240 : vector<1x1xi32> to vector<8x8xi32>
    %1246 = arith.cmpi eq, %25, %1245 : vector<8x8xi32>
    %1247 = arith.andi %1244, %1246 : vector<8x8xi1>
    %1248 = arith.extui %1247 : vector<8x8xi1> to vector<8x8xi32>
    %1249 = arith.sitofp %1248 : vector<8x8xi32> to vector<8x8xf32>
    %1250 = arith.maximumf %1181, %1249 : vector<8x8xf32>
    %c13_i32 = arith.constant 13 : i32
    %c0_i32_340 = arith.constant 0 : i32
    %1251 = vector.broadcast %c0_i32_340 : i32 to vector<1x1xi32>
    %1252 = arith.cmpi sgt, %1239, %1251 : vector<1x1xi32>
    %c0_i32_341 = arith.constant 0 : i32
    %1253 = vector.broadcast %c0_i32_341 : i32 to vector<1x1xi32>
    %1254 = arith.cmpi sgt, %1240, %1253 : vector<1x1xi32>
    %1255 = arith.andi %1252, %1254 : vector<1x1xi1>
    %c1_i32_342 = arith.constant 1 : i32
    %1256 = vector.broadcast %c1_i32_342 : i32 to vector<1x1xi32>
    %1257 = arith.subi %1239, %1256 : vector<1x1xi32>
    %1258 = vector.broadcast %1257 : vector<1x1xi32> to vector<8x8xi32>
    %1259 = arith.cmpi eq, %24, %1258 : vector<8x8xi32>
    %cst_343 = arith.constant 0.000000e+00 : f32
    %1260 = vector.broadcast %cst_343 : f32 to vector<8x8xf32>
    %1261 = arith.select %1259, %344, %1260 : vector<8x8xi1>, vector<8x8xf32>
    %cst_344 = arith.constant dense<0.000000e+00> : vector<8xf32>
    %1262 = vector.multi_reduction <add>, %1261, %cst_344 [0] : vector<8x8xf32> to vector<8xf32>
    %1263 = vector.shape_cast %1262 : vector<8xf32> to vector<1x8xf32>
    %1264 = vector.broadcast %1239 : vector<1x1xi32> to vector<8x8xi32>
    %1265 = arith.cmpi eq, %24, %1264 : vector<8x8xi32>
    %cst_345 = arith.constant 0.000000e+00 : f32
    %1266 = vector.broadcast %cst_345 : f32 to vector<8x8xf32>
    %1267 = arith.select %1265, %344, %1266 : vector<8x8xi1>, vector<8x8xf32>
    %cst_346 = arith.constant dense<0.000000e+00> : vector<8xf32>
    %1268 = vector.multi_reduction <add>, %1267, %cst_346 [0] : vector<8x8xf32> to vector<8xf32>
    %1269 = vector.shape_cast %1268 : vector<8xf32> to vector<1x8xf32>
    %c1_i32_347 = arith.constant 1 : i32
    %1270 = vector.broadcast %c1_i32_347 : i32 to vector<1x1xi32>
    %1271 = arith.subi %1240, %1270 : vector<1x1xi32>
    %1272 = vector.broadcast %1271 : vector<1x1xi32> to vector<1x8xi32>
    %1273 = arith.cmpi eq, %26, %1272 : vector<1x8xi32>
    %cst_348 = arith.constant 0.000000e+00 : f32
    %1274 = vector.broadcast %cst_348 : f32 to vector<1x8xf32>
    %1275 = arith.select %1273, %1263, %1274 : vector<1x8xi1>, vector<1x8xf32>
    %cst_349 = arith.constant dense<0.000000e+00> : vector<1xf32>
    %1276 = vector.multi_reduction <add>, %1275, %cst_349 [1] : vector<1x8xf32> to vector<1xf32>
    %1277 = vector.shape_cast %1276 : vector<1xf32> to vector<1x1xf32>
    %1278 = vector.broadcast %1240 : vector<1x1xi32> to vector<1x8xi32>
    %1279 = arith.cmpi eq, %26, %1278 : vector<1x8xi32>
    %cst_350 = arith.constant 0.000000e+00 : f32
    %1280 = vector.broadcast %cst_350 : f32 to vector<1x8xf32>
    %1281 = arith.select %1279, %1263, %1280 : vector<1x8xi1>, vector<1x8xf32>
    %cst_351 = arith.constant dense<0.000000e+00> : vector<1xf32>
    %1282 = vector.multi_reduction <add>, %1281, %cst_351 [1] : vector<1x8xf32> to vector<1xf32>
    %1283 = vector.shape_cast %1282 : vector<1xf32> to vector<1x1xf32>
    %c1_i32_352 = arith.constant 1 : i32
    %1284 = vector.broadcast %c1_i32_352 : i32 to vector<1x1xi32>
    %1285 = arith.subi %1240, %1284 : vector<1x1xi32>
    %1286 = vector.broadcast %1285 : vector<1x1xi32> to vector<1x8xi32>
    %1287 = arith.cmpi eq, %26, %1286 : vector<1x8xi32>
    %cst_353 = arith.constant 0.000000e+00 : f32
    %1288 = vector.broadcast %cst_353 : f32 to vector<1x8xf32>
    %1289 = arith.select %1287, %1269, %1288 : vector<1x8xi1>, vector<1x8xf32>
    %cst_354 = arith.constant dense<0.000000e+00> : vector<1xf32>
    %1290 = vector.multi_reduction <add>, %1289, %cst_354 [1] : vector<1x8xf32> to vector<1xf32>
    %1291 = vector.shape_cast %1290 : vector<1xf32> to vector<1x1xf32>
    %1292 = arith.minimumf %1277, %1283 : vector<1x1xf32>
    %1293 = arith.minimumf %1292, %1291 : vector<1x1xf32>
    %1294 = arith.cmpf oeq, %1277, %1293 : vector<1x1xf32>
    %cst_355 = arith.constant dense<true> : vector<1x1xi1>
    %1295 = arith.xori %1294, %cst_355 : vector<1x1xi1>
    %1296 = arith.cmpf oeq, %1283, %1293 : vector<1x1xf32>
    %1297 = arith.andi %1295, %1296 : vector<1x1xi1>
    %1298 = arith.ori %1294, %1297 : vector<1x1xi1>
    %c1_i32_356 = arith.constant 1 : i32
    %1299 = vector.broadcast %c1_i32_356 : i32 to vector<1x1xi32>
    %1300 = arith.subi %1239, %1299 : vector<1x1xi32>
    %1301 = arith.select %1298, %1300, %1239 : vector<1x1xi1>, vector<1x1xi32>
    %c1_i32_357 = arith.constant 1 : i32
    %1302 = vector.broadcast %c1_i32_357 : i32 to vector<1x1xi32>
    %1303 = arith.subi %1240, %1302 : vector<1x1xi32>
    %c1_i32_358 = arith.constant 1 : i32
    %1304 = vector.broadcast %c1_i32_358 : i32 to vector<1x1xi32>
    %1305 = arith.subi %1240, %1304 : vector<1x1xi32>
    %1306 = arith.select %1297, %1240, %1305 : vector<1x1xi1>, vector<1x1xi32>
    %1307 = arith.select %1294, %1303, %1306 : vector<1x1xi1>, vector<1x1xi32>
    %1308 = arith.select %1255, %1301, %1239 : vector<1x1xi1>, vector<1x1xi32>
    %1309 = arith.select %1255, %1307, %1240 : vector<1x1xi1>, vector<1x1xi32>
    %1310 = vector.broadcast %1308 : vector<1x1xi32> to vector<8x8xi32>
    %1311 = arith.cmpi eq, %24, %1310 : vector<8x8xi32>
    %1312 = vector.broadcast %1255 : vector<1x1xi1> to vector<8x8xi1>
    %1313 = arith.andi %1312, %1311 : vector<8x8xi1>
    %1314 = vector.broadcast %1309 : vector<1x1xi32> to vector<8x8xi32>
    %1315 = arith.cmpi eq, %25, %1314 : vector<8x8xi32>
    %1316 = arith.andi %1313, %1315 : vector<8x8xi1>
    %1317 = arith.extui %1316 : vector<8x8xi1> to vector<8x8xi32>
    %1318 = arith.sitofp %1317 : vector<8x8xi32> to vector<8x8xf32>
    %1319 = arith.maximumf %1250, %1318 : vector<8x8xf32>
    %c0_i32_359 = arith.constant 0 : i32
    %1320 = vector.broadcast %c0_i32_359 : i32 to vector<8x8xi32>
    %1321 = arith.cmpi eq, %24, %1320 : vector<8x8xi32>
    %c0_i32_360 = arith.constant 0 : i32
    %1322 = vector.broadcast %c0_i32_360 : i32 to vector<8x8xi32>
    %1323 = arith.cmpi eq, %25, %1322 : vector<8x8xi32>
    %1324 = arith.andi %1321, %1323 : vector<8x8xi1>
    %1325 = arith.extui %1324 : vector<8x8xi1> to vector<8x8xi32>
    %1326 = arith.sitofp %1325 : vector<8x8xi32> to vector<8x8xf32>
    %1327 = arith.maximumf %1319, %1326 : vector<8x8xf32>
    %1328 = arith.mulf %23, %1327 : vector<8x8xf32>
    %cst_361 = arith.constant dense<0.000000e+00> : vector<8xf32>
    %1329 = vector.multi_reduction <add>, %1328, %cst_361 [0] : vector<8x8xf32> to vector<8xf32>
    %1330 = vector.shape_cast %1329 : vector<8xf32> to vector<1x8xf32>
    %cst_362 = arith.constant dense<0.000000e+00> : vector<8xf32>
    %1331 = vector.multi_reduction <add>, %23, %cst_362 [0] : vector<8x8xf32> to vector<8xf32>
    %1332 = vector.shape_cast %1331 : vector<8xf32> to vector<1x8xf32>
    %cst_363 = arith.constant dense<0xFF800000> : vector<1xf32>
    %1333 = vector.multi_reduction <maximumf>, %1330, %cst_363 [1] : vector<1x8xf32> to vector<1xf32>
    %1334 = vector.shape_cast %1333 : vector<1xf32> to vector<1x1xf32>
    %cst_364 = arith.constant dense<0xFF800000> : vector<1xf32>
    %1335 = vector.multi_reduction <maximumf>, %1332, %cst_364 [1] : vector<1x8xf32> to vector<1xf32>
    %1336 = vector.shape_cast %1335 : vector<1xf32> to vector<1x1xf32>
    %1337 = vector.broadcast %1334 : vector<1x1xf32> to vector<1x8xf32>
    %1338 = arith.subf %1330, %1337 : vector<1x8xf32>
    %1339 = math.exp %1338 : vector<1x8xf32>
    %cst_365 = arith.constant dense<0.000000e+00> : vector<1xf32>
    %1340 = vector.multi_reduction <add>, %1339, %cst_365 [1] : vector<1x8xf32> to vector<1xf32>
    %1341 = vector.shape_cast %1340 : vector<1xf32> to vector<1x1xf32>
    %1342 = math.log %1341 : vector<1x1xf32>
    %1343 = arith.addf %1334, %1342 : vector<1x1xf32>
    %1344 = vector.broadcast %1336 : vector<1x1xf32> to vector<1x8xf32>
    %1345 = arith.subf %1332, %1344 : vector<1x8xf32>
    %1346 = math.exp %1345 : vector<1x8xf32>
    %cst_366 = arith.constant dense<0.000000e+00> : vector<1xf32>
    %1347 = vector.multi_reduction <add>, %1346, %cst_366 [1] : vector<1x8xf32> to vector<1xf32>
    %1348 = vector.shape_cast %1347 : vector<1xf32> to vector<1x1xf32>
    %1349 = math.log %1348 : vector<1x1xf32>
    %1350 = arith.addf %1336, %1349 : vector<1x1xf32>
    %1351 = arith.subf %1343, %1350 : vector<1x1xf32>
    %1352 = vector.shape_cast %1351 : vector<1x1xf32> to vector<1x1xf32>
    %1353 = vector.broadcast %1352 : vector<1x1xf32> to vector<1x128xf32>
    %c0_367 = arith.constant 0 : index
    %c0_368 = arith.constant 0 : index
    %c0_369 = arith.constant 0 : index
    %1354 = vector.load %arg3[%c0_367, %c0_368, %c0_369] : memref<1x1x128xf32, #tpu.memory_space<vmem>>, vector<1x1x128xf32>
    %1355 = vector.shape_cast %1354 : vector<1x1x128xf32> to vector<1x128xf32>
    %1356 = vector.shape_cast %1353 : vector<1x128xf32> to vector<1x1x128xf32>
    tpu.vector_store %arg3[%c0_367, %c0_368, %c0_369], %1356 {strides = array<i32>} : memref<1x1x128xf32, #tpu.memory_space<vmem>>, vector<1x1x128xf32>,
    return
  }
  func.func @transform_0(%arg0: i32) -> (i32, i32, i32) {
    %c0_i32 = arith.constant 0 : i32
    %c0_i32_0 = arith.constant 0 : i32
    %c0_i32_1 = arith.constant 0 : i32
    return %arg0, %c0_i32, %c0_i32_0 : i32, i32, i32
  }
  func.func @transform_1(%arg0: i32) -> (i32, i32, i32) {
    %c0_i32 = arith.constant 0 : i32
    %c0_i32_0 = arith.constant 0 : i32
    %c0_i32_1 = arith.constant 0 : i32
    return %arg0, %c0_i32, %c0_i32_0 : i32, i32, i32
  }
  func.func @transform_2(%arg0: i32) -> (i32, i32, i32) {
    %c0_i32 = arith.constant 0 : i32
    %c0_i32_0 = arith.constant 0 : i32
    %c0_i32_1 = arith.constant 0 : i32
    return %arg0, %c0_i32, %c0_i32_0 : i32, i32, i32
  }
}

</mosaic_0001>

<bundles_post_ra>
// kernel: dtw_forward.1
= control target key start
LH: loop header
LB: loop body
LE: loop exit
PB: predicated region body
PF: predicated region fallthrough
CT: control target
= control target key end

     0   :  { %7 = vsyncpa [#allocation3], 0  ;;  %s3039_s0 = inlined_call_operand.hbm [shape: f32[2,8,32], index: 0, kind: input, shape index: {}]   ;;  %s3040_s1 = inlined_call_operand.hbm [shape: f32[2,8,32], index: 1, kind: input, shape index: {}]   ;;  %s3041_s2 = inlined_call_operand.vmem [shape: f32[2,1,128], index: 2, kind: output, shape index: {}]  }
   0x1   :  { %9 = vsyncpa [#allocation3 + $0x1], 0 }
   0x2   :  { %10 = vsyncpa [#allocation5], 0 }
   0x3   :  { %12 = vsyncpa [#allocation5 + $0x1], 0  ;;  %s2352_s9 = smov 0   ;;  %s2354_s10 = smov 0  }
   0x4   :  { %s2356_s11 = smov 0   ;;  %s2358_s12 = smov 0  }
   0x5 LB: > { %s2371_s13 = sadd.s32 4294967295, %s2325_s12   ;;  %s2374_s14 = sadd.s32 1, %s2325_s12   ;;  %s2325_s12 = sphi %s2358_s12, %s3055_s12   ;;  %s2321_s11 = sphi %s2356_s11, %s3054_s11   ;;  %s2317_s10 = sphi %s2354_s10, %s3053_s10   ;;  %s2313_s9 = sphi %s2352_s9, %s3052_s9  }
   0x6   : > { %s22_s15 = ssub.s32 %s2325_s12, %s2374_s14  ;;  %s25_s16 = sadd.s32 1, %s2321_s11 }
   0x7   : > { %p23_p0 = scmp.eq.s32.totalorder %s22_s15, 0  ;;  %p32_p1 = scmp.ne.s32.totalorder %s2321_s11, %s2317_s10 }
   0x8   : > { %p33_p2 = scmp.eq.s32.totalorder %s2325_s12, 0  ;;  %p38_p3 = scmp.ne.s32.totalorder %s2317_s10, %s2313_s9 }
   0x9   : > { %s2384_s17 = scalar_select %p23_p0, %s2321_s11, %s25_s16  }
   0xa   : > { %p34_p4 = por %p33_p2, %p32_p1  ;;  %p39_p5 = scmp.eq.s32.totalorder %s2371_s13, 0 }
   0xb   : > { %p2174_p6 = scmp.lt.s32.totalorder %s2325_s12, 2  ;;  %s2393_s19 = sand.u32 1, %s2321_s11  }
   0xc   : > { %p2388_p7 = por %p39_p5, %p38_p3  ;;  %s2061_s20 = sshll.u32 %s2393_s19, 3 }
   0xd   : > { %s2062_s21 = sshll.u32 %s2325_s12, 7  ;;  %s118_s25 = scalar_lea.vmem [#allocation2], %s2061_s20 }
   0xe   : > { %s3043_s18 = scalar_select %p2388_p7, 1, 0 }
   0xf   : > { %s2402_s24 = scalar_lea.hbm %s3039_s0, %s2062_s21  ;;  %s125_s26 = sshll.u32 %s118_s25, 4  ;;  %s2406_s26 = int_to_ptr.vmem [resolvable:$true] %s125_s26 }
  0x10   : > { %p2408_p8 = pnand %p2174_p6, %p34_p4  ;;  %s115_s28 = scalar_lea.sflag [#allocation3], %s2393_s19 }
  0x11   : > { %s2227_s29 = scalar_lea.hbm %s2402_s24, 128  ;;  %s2232_s4 = scalar_lea.hbm %s3039_s0, 256 }
  0x12   : > { %p2228_p11 = scmp.ne.s32.totalorder %s2402_s24, %s2227_s29  ;;  %p2229_p12 = pneg %p2408_p8 }
  0x13   : > { %p2233_p1 = scmp.lt.u32.totalorder %s2402_s24, %s3039_s0  ;;  %p2234_p2 = scmp.lt.u32.totalorder %s2232_s4, %s2227_s29 }
  0x14   : > { %p2230_p13 = pnand %p2229_p12, %p2228_p11  ;;  %p2236_p4 = scmp.lt.u32.totalorder %s2227_s29, %s2402_s24 }
  0x15   : > { %p2235_p3 = por %p2234_p2, %p2233_p1 }
  0x16   : > { %p2231_p0 = pneg %p2230_p13 }
  0x17   : > { %p2237_p5 = por %p2236_p4, %p2235_p3 }
  0x19   : > { %p2238_p6 = pnand %p2237_p5, %p2231_p0 }
  0x1b   : > { %2241 = shalt.err (!%p2238_p6)
}
  0x1c   : > { %s2242_s7 = scalar_lea.vmem %s2406_s26, 128  ;;  %s2327_s8 = smov [#allocation2]  }
  0x1d   : > { %p2243_p11 = scmp.ne.s32.totalorder %s2406_s26, %s2242_s7  ;;  %s2247_s9 = sshll.u32 %s2327_s8, 4  ;;  %s2248_s9 = int_to_ptr.vmem [resolvable:$false] %s2247_s9 }
  0x1e   : > { %s2249_s15 = scalar_lea.vmem %s2248_s9, 256  ;;  %p2250_p10 = scmp.lt.s32.totalorder %s2406_s26, %s2248_s9 }
  0x1f   : > { %p2245_p13 = pnand %p2243_p11, %p2229_p12  ;;  %p2251_p1 = scmp.lt.s32.totalorder %s2249_s15, %s2242_s7 }
  0x21   : > { %p2246_p9 = pneg %p2245_p13  ;;  %p2252_p2 = por %p2251_p1, %p2250_p10 }
  0x23   : > { %p2253_p3 = pnand %p2252_p2, %p2246_p9 }
  0x25   : > { %2256 = shalt.err (!%p2253_p3)
}
  0x26   : > { %2170 = dma.hbm_to_vmem [thread:$0]  (!%p2408_p8), %s2402_s24, 128, %s2406_s26, %s115_s28  }
  0x27   : > { %p3045_p0 = scmp.lt.s32.totalorder %s2325_s12, 3  ;;  %p3046_p4 = scmp.ge.s32.totalorder %s2325_s12, 1 }
  0x28   : > { %s2453_s25 = scalar_lea.hbm %s3040_s1, %s2062_s21  ;;  %s136_s29 = scalar_lea.vmem [#allocation4], %s2061_s20 }
  0x29   : > { %p2444_p5 = pnand %p3046_p4, %p3045_p0  ;;  %s143_s30 = sshll.u32 %s136_s29, 4  ;;  %s144_s30 = int_to_ptr.vmem [resolvable:$true] %s143_s30 }
  0x2a   : > { %s133_s24 = scalar_lea.sflag [#allocation5], %s2393_s19  ;;  %s2257_s26 = scalar_lea.hbm %s2453_s25, 128 }
  0x2b   : > { %s3047_s16 = scalar_select %p2444_p5, 1, 0 }
  0x2c   : > { %p2258_p9 = scmp.ne.s32.totalorder %s2453_s25, %s2257_s26  ;;  %s2262_s21 = scalar_lea.hbm %s3040_s1, 256 }
  0x2d   : > { %p2263_p11 = scmp.lt.u32.totalorder %s2453_s25, %s3040_s1  ;;  %p2264_p13 = scmp.lt.u32.totalorder %s2262_s21, %s2257_s26 }
  0x2e   : > { %p2260_p10 = pnand %p2258_p9, %p2229_p12  ;;  %p2266_p2 = scmp.lt.u32.totalorder %s2257_s26, %s2453_s25 }
  0x2f   : > { %p2265_p1 = por %p2264_p13, %p2263_p11 }
  0x30   : > { %p2261_p6 = pneg %p2260_p10 }
  0x31   : > { %p2267_p3 = por %p2266_p2, %p2265_p1 }
  0x33   : > { %p2268_p0 = pnand %p2267_p3, %p2261_p6 }
  0x35   : > { %2271 = shalt.err (!%p2268_p0)
}
  0x36   : > { %s2272_s19 = scalar_lea.vmem %s144_s30, 128  ;;  %s2328_s20 = smov [#allocation4]  }
  0x37   : > { %p2273_p4 = scmp.ne.s32.totalorder %s144_s30, %s2272_s19  ;;  %s2277_s5 = sshll.u32 %s2328_s20, 4  ;;  %s2278_s5 = int_to_ptr.vmem [resolvable:$false] %s2277_s5 }
  0x38   : > { %s2279_s6 = scalar_lea.vmem %s2278_s5, 256  ;;  %p2280_p7 = scmp.lt.s32.totalorder %s144_s30, %s2278_s5 }
  0x39   : > { %p2275_p9 = pnand %p2273_p4, %p2229_p12  ;;  %p2281_p5 = scmp.lt.s32.totalorder %s2279_s6, %s2272_s19 }
  0x3b   : > { %p2276_p10 = pneg %p2275_p9  ;;  %p2282_p11 = por %p2281_p5, %p2280_p7 }
  0x3d   : > { %p2283_p13 = pnand %p2282_p11, %p2276_p10 }
  0x3f   : > { %2286 = shalt.err (!%p2283_p13)
}
  0x40   : > { %2173 = dma.hbm_to_vmem [thread:$0]  (!%p2408_p8), %s2453_s25, 128, %s144_s30, %s133_s24  }
  0x41   : > { %p3048_p6 = scmp.ne.s32.totalorder %s3047_s16, 0 }
  0x42   : > { %s154_s7 = sand.u32 (!%p3048_p6), 1, %s2317_s10   ;;  %p3049_p12 = scmp.ne.s32.totalorder (!%p3048_p6), %s3043_s18, 0 }
  0x43   : > { %152 = sbr.rel (%p3048_p6) target bundleno = 6852 (0x1ac4), region = 28  ;;  %s2066_s8 = sshll.u32 (!%p3048_p6), %s154_s7, 3 }
  0x44   : > { %s155_s9 = scalar_lea.sflag (!%p3048_p6), [#allocation3], %s154_s7  ;;  %s158_s15 = scalar_lea.vmem (!%p3048_p6), [#allocation2], %s2066_s8 }
  0x4a   : > { %2304 = dma.done.wait (%p3049_p12), %s155_s9, 128  }
  0x4b   : > { %2306 = vsyncadd (%p3049_p12), %s155_s9, 4294967168  ;;  %s164_s22 = scalar_lea.sflag [#allocation5], %s154_s7  ;;  %s167_s23 = scalar_lea.vmem [#allocation4], %s2066_s8 }
  0x4c   : > { %2308 = dma.done.wait (%p3049_p12), %s164_s22, 128  }
  0x4d   : > { %2310 = vsyncadd (%p3049_p12), %s164_s22, 4294967168  ;;  %v2329_v0 = vmov 0.0   ;;  %vm2330_vm0 = vmmov 0   ;;  %v195_v1 = vld [vmem:[%s167_s23] sm:$0xff]  ;;  %vm196_vm1 = vcmask 261120   ;;  %v194_v2 = vld [vmem:[%s158_s15] sm:$0xff]  ;;  %v693_v28 = vlaneseq }
  0x4e   : > { %2124 = vmatprep.subr.mxu1 %v2329_v0  ;;  %2139 = vmatprep.subr.mxu0 %v2329_v0  ;;  %v655_v3 = vmul.f32 %v195_v1, %v195_v1  ;;  %v198_v4 = vsel %vm196_vm1, %v194_v2, 0  ;;  %v201_v5 = vsel %vm196_vm1, %v195_v1, 0  ;;  %v649_v6 = vmul.f32 %v194_v2, %v194_v2  ;;  %s2331_s18 = smov 1   ;;  %s2332_s27 = smov 2  }
  0x4f   : > { %2126 = vmatprep.mubr.msk.f32.mxu1 %vm2330_vm0, %v2329_v0  ;;  %2141 = vmatprep.mubr.msk.f32.mxu0 %vm2330_vm0, %v2329_v0  ;;  %v204_v7 = vand.u32 4294901760, %v201_v5  ;;  %v269_v8 = vand.u32 4294901760, %v198_v4  ;;  %v2507_v29 = vshrl.u32 %v693_v28, 7  ;;  %vm706_vm3 = vcmask 64512   ;;  %s2333_s16 = smov 4   ;;  %p191_p7 = scmp.lt.s32.totalorder %s2371_s13, 1 }
  0x50   : > { %v656_v9 = vsel %vm196_vm1, %v655_v3, 0.0  ;;  %v650_v12 = vsel %vm196_vm1, %v649_v6, 0.0  ;;  %vm718_vm5 = vcmask 7168   ;;  %vm725_vm6 = vcmask 15360  }
  0x51   : > { %657 = vadd.xlane.f32.xlu0 %v656_v9  ;;  %v270_v10 = vsub.f32 %v198_v4, %v269_v8  ;;  %v281_v11 = vsub.f32 %v201_v5, %v204_v7  ;;  %2125 = vmatpush3.xpose.msra.mxu1 %v204_v7  ;;  %v2510_v31 = vsub.s32 0, %v2507_v29  ;;  %vm704_vm2 = vcmp.eq.s32.totalorder %v2507_v29, 0  ;;  %s3057_s13 = smov (!%p191_p7, %s2371_s13), 1 }
  0x52   : > { %2140 = vmatpush3.xpose.msra.mxu0 %v204_v7  ;;  %2129 = vmatprep.subr.mxu1 %v2329_v0  ;;  %vm740_vm4 = vcmp.eq.s32.totalorder %v2507_v29, 1  ;;  %vm732_vm7 = vcmask 31744   ;;  %vm799_vm8 = vcmp.eq.s32.totalorder %v2507_v29, 2  ;;  %vm858_vm9 = vcmp.eq.s32.totalorder %v2507_v29, 3  ;;  %s193_s30 = scalar_lea.vmem %s3041_s2, %s3057_s13 }
  0x53   : > { %v282_v13 = vand.u32 4294901760, %v281_v11  ;;  %v271_v14 = vand.u32 4294901760, %v270_v10  ;;  %2144 = vmatprep.subr.mxu0 %v2329_v0  ;;  %vm917_vm10 = vcmp.eq.s32.totalorder %v2507_v29, 4  ;;  %vm976_vm11 = vcmp.eq.s32.totalorder %v2507_v29, 5 }
  0x54   : > { %vm1035_vm12 = vcmp.eq.s32.totalorder %v2507_v29, 6  ;;  %vm1094_vm13 = vcmp.eq.s32.totalorder %v2507_v29, 7 }
  0x55   : > { %v272_v15 = vsub.f32 %v270_v10, %v271_v14  ;;  %2142 = vmatmul.mubr.f32.vlgmr.msra.gmra.mrb[0].mxu0 %v271_v14  ;;  %v283_v16 = vsub.f32 %v281_v11, %v282_v13  ;;  %651 = vadd.xlane.f32.xlu0 %v650_v12 }
  0x56   : > { %2145 = vmatpush3.xpose.msra.mxu0 %v282_v13  ;;  %2146 = vmatprep.mubr.msk.f32.mxu0 %vm2330_vm0, %v2329_v0 }
  0x57   : > { %v273_v17 = vand.u32 4294901760, %v272_v15  ;;  %v284_v18 = vand.u32 4294901760, %v283_v16  ;;  %2149 = vmatprep.subr.mxu0 %v2329_v0 }
  0x59   : > { %2127 = vmatmul.mubr.f32.vlgmr.msra.gmra.mrb[0].mxu1 %v273_v17 }
  0x5a   : > { %2130 = vmatpush3.xpose.msra.mxu1 %v284_v18  ;;  %2131 = vmatprep.mubr.msk.f32.mxu1 %vm2330_vm0, %v2329_v0 }
  0x5b   : > { %2134 = vmatprep.subr.mxu1 %v2329_v0 }
  0x5d   : > { %2147 = vmatmul.mubr.f32.vlgmr.msra.gmra.mrb[0].mxu0 %v269_v8 }
  0x5e   : > { %2150 = vmatpush3.xpose.msra.mxu0 %v204_v7  ;;  %2151 = vmatprep.mubr.msk.f32.mxu0 %vm2330_vm0, %v2329_v0 }
  0x61   : > { %2132 = vmatmul.mubr.f32.vlgmr.msra.gmra.mrb[0].mxu1 %v269_v8 }
  0x62   : > { %2135 = vmatpush3.xpose.msra.mxu1 %v281_v11  ;;  %2136 = vmatprep.mubr.msk.f32.mxu1 %vm2330_vm0, %v2329_v0 }
  0x65   : > { %2152 = vmatmul.mubr.f32.vlgmr.msra.gmra.mrb[0].mxu0 %v269_v8 }
  0x69   : > { %2137 = vmatmul.mubr.f32.vlgmr.msra.gmra.mrb[0].mxu1 %v270_v10 }
  0xde   : > { %v658_v19 = vpop.xlane.xlu0 %657 }
  0xdf   : > { %2215 = vrsqrt.f32 %v658_v19 }
  0xe2   : > { %v652_v27 = vpop.xlane.xlu0 %651 }
  0xe3   : > { %2217 = vrsqrt.f32 %v652_v27 }
  0xe9   : > { %v2216_v20 = vpop.eup %2215 }
  0xea   : > { %v660_v21 = vmin.f32 %v2216_v20, 1e+08 }
  0xec   : > { %661 = vxpose.xlu1.b32.start.end [1/1] (short) (narrow) %v660_v21, 8 }
  0xed   : > { %v2218_v30 = vpop.eup %2217 }
  0xee   : > { %v654_v32 = vmin.f32 %v2218_v30, 1e+08 }
 0x138   : > { %v645_v22 = vpop.f32.mrb[0].mxu0 }
 0x139   : > { %v2153_v23 = vpop.f32.mrb[1].mxu0 }
 0x13c   : > { %v425_v24 = vpop.f32.mrb[0].mxu1 }
 0x13d   : > { %v2154_v25 = vadd.f32 %v645_v22, %v425_v24  ;;  %v2138_v26 = vpop.f32.mrb[1].mxu1 }
 0x16c   : > { %v677_v33 = vpop.trf.xlu1 }
 0x16d   : > { %v696_v34 = vrot.slane %v677_v33, %v2510_v31 }
 0x16f   : > { %v697_v35 = vmul.f32 %v696_v34, %v654_v32 }
 0x171   : > { %v698_v36 = vmul.f32 %v2154_v25, %v697_v35 }
 0x173   : > { %v2514_v37 = vsub.f32 1.0, %v698_v36 }
 0x175   : > { %v705_v38 = vsel %vm704_vm2, %v2514_v37, 0.0  ;;  %v741_v46 = vsel %vm740_vm4, %v2514_v37, 0.0  ;;  %v800_v6 = vsel %vm799_vm8, %v2514_v37, 0.0 }
 0x176   : > { %v707_v39 = vsel %vm706_vm3, %v705_v38, 0.0  ;;  %v742_v47 = vsel %vm706_vm3, %v741_v46, 0.0  ;;  %v801_v7 = vsel %vm706_vm3, %v800_v6, 0.0 }
 0x177   : > { %v708_v40 = vrot.slane %v707_v39, 4  ;;  %v743_v48 = vrot.slane %v742_v47, 4  ;;  %v802_v8 = vrot.slane %v801_v7, 4 }
 0x179   : > { %v709_v41 = vadd.f32 %v708_v40, %v707_v39  ;;  %v744_v49 = vadd.f32 %v743_v48, %v742_v47  ;;  %v803_v9 = vadd.f32 %v802_v8, %v801_v7 }
 0x17b   : > { %v710_v42 = vrot.slane %v709_v41, 2  ;;  %v745_v50 = vrot.slane %v744_v49, 2  ;;  %v804_v11 = vrot.slane %v803_v9, 2 }
 0x17d   : > { %v711_v43 = vadd.f32 %v710_v42, %v709_v41  ;;  %v746_v51 = vadd.f32 %v745_v50, %v744_v49  ;;  %v805_v15 = vadd.f32 %v804_v11, %v803_v9  ;;  %v859_v42 = vsel %vm858_vm9, %v2514_v37, 0.0 }
 0x17f   : > { %v712_v44 = vrot.slane %v711_v43, 1  ;;  %v747_v55 = vrot.slane %v746_v51, 1  ;;  %v806_v20 = vrot.slane %v805_v15, 1 }
 0x181   : > { %v713_v45 = vadd.f32 %v712_v44, %v711_v43  ;;  %v748_v56 = vadd.f32 %v747_v55, %v746_v51  ;;  %v807_v21 = vadd.f32 %v806_v20, %v805_v15  ;;  %v860_v43 = vsel %vm706_vm3, %v859_v42, 0.0 }
 0x182   : > { %v861_v44 = vrot.slane %v860_v43, 4 }
 0x183   : > { %715 = vrot.lane.b32.xlu1 %v713_v45, %s2331_s18 }
 0x1f5   : > { %v716_v52 = vpop.permute.xlu1 %715 }
 0x1f6   : > { %v719_v53 = vsel %vm718_vm5, 0.0, %v716_v52 }
 0x1f7   : > { %v720_v54 = vadd.f32 %v719_v53, %v713_v45  ;;  %v862_v45 = vadd.f32 %v861_v44, %v860_v43 }
 0x1f9   : > { %722 = vrot.lane.b32.xlu0 %v720_v54, %s2332_s27  ;;  %v863_v47 = vrot.slane %v862_v45, 2 }
 0x1fb   : > { %v864_v52 = vadd.f32 %v863_v47, %v862_v45 }
 0x1fd   : > { %757 = vrot.lane.b32.xlu0 %v748_v56, %s2331_s18 }
 0x26b   : > { %v723_v57 = vpop.permute.xlu0 %722 }
 0x26c   : > { %v726_v58 = vsel %vm725_vm6, 0.0, %v723_v57 }
 0x26d   : > { %v727_v59 = vadd.f32 %v726_v58, %v720_v54 }
 0x26f   : > { %729 = vrot.lane.b32.xlu0 %v727_v59, %s2333_s16  ;;  %v758_v60 = vpop.permute.xlu0 %757 }
 0x270   : > { %v760_v61 = vsel %vm718_vm5, 0.0, %v758_v60 }
 0x271   : > { %v761_v62 = vadd.f32 %v760_v61, %v748_v56 }
 0x273   : > { %763 = vrot.lane.b32.xlu1 %v761_v62, %s2332_s27 }
 0x2e1   : > { %v730_v63 = vpop.permute.xlu0 %729 }
 0x2e2   : > { %v733_v1 = vsel %vm732_vm7, 0.0, %v730_v63 }
 0x2e3   : > { %v2534_v2 = vadd.f32 %v733_v1, %v727_v59 }
 0x2e5   : > { %v764_v3 = vpop.permute.xlu1 %763  ;;  %750 = vrot.lane.b32.xlu0 %v2534_v2, %s2331_s18 }
 0x2e6   : > { %v766_v4 = vsel %vm725_vm6, 0.0, %v764_v3 }
 0x2e7   : > { %v767_v5 = vadd.f32 %v766_v4, %v761_v62 }
 0x2e9   : > { %769 = vrot.lane.b32.xlu1 %v767_v5, %s2333_s16 }
 0x357   : > { %v751_v10 = vpop.permute.xlu0 %750 }
 0x358   : > { %v753_v12 = vsel %vm718_vm5, 1e+30, %v751_v10 }
 0x359   : > { %v754_v13 = vmin.f32 %v2534_v2, %v753_v12  ;;  %v918_v12 = vsel %vm917_vm10, %v2514_v37, 0.0 }
 0x35b   : > { %v770_v14 = vpop.permute.xlu1 %769  ;;  %v755_v17 = vadd.f32 %v754_v13, %v748_v56  ;;  %v865_v56 = vrot.slane %v864_v52, 1  ;;  %v919_v13 = vsel %vm706_vm3, %v918_v12, 0.0 }
 0x35c   : > { %v772_v16 = vsel %vm732_vm7, 0.0, %v770_v14  ;;  %v920_v14 = vrot.slane %v919_v13, 4 }
 0x35d   : > { %v773_v18 = vadd.f32 %v772_v16, %v767_v5  ;;  %v866_v57 = vadd.f32 %v865_v56, %v864_v52 }
 0x35e   : > { %v921_v15 = vadd.f32 %v920_v14, %v919_v13 }
 0x35f   : > { %v774_v19 = vsub.f32 %v755_v17, %v773_v18 }
 0x360   : > { %v922_v17 = vrot.slane %v921_v15, 2 }
 0x361   : > { %776 = vrot.lane.b32.xlu0 %v774_v19, %s2331_s18 }
 0x365   : > { %816 = vrot.lane.b32.xlu0 %v807_v21, %s2331_s18 }
 0x3d3   : > { %v777_v22 = vpop.permute.xlu0 %776 }
 0x3d4   : > { %v779_v23 = vsel %vm718_vm5, 1e+30, %v777_v22  ;;  %v923_v22 = vadd.f32 %v922_v17, %v921_v15 }
 0x3d5   : > { %v780_v24 = vmin.f32 %v774_v19, %v779_v23 }
 0x3d7   : > { %782 = vrot.lane.b32.xlu1 %v780_v24, %s2332_s27  ;;  %v817_v25 = vpop.permute.xlu0 %816 }
 0x3d8   : > { %v819_v26 = vsel %vm718_vm5, 0.0, %v817_v25 }
 0x3d9   : > { %v820_v27 = vadd.f32 %v819_v26, %v807_v21  ;;  %v924_v26 = vrot.slane %v923_v22, 1 }
 0x3db   : > { %822 = vrot.lane.b32.xlu0 %v820_v27, %s2332_s27 }
 0x449   : > { %v783_v30 = vpop.permute.xlu1 %782 }
 0x44a   : > { %v785_v32 = vsel %vm725_vm6, 1e+30, %v783_v30 }
 0x44b   : > { %v786_v33 = vmin.f32 %v780_v24, %v785_v32 }
 0x44d   : > { %788 = vrot.lane.b32.xlu1 %v786_v33, %s2333_s16  ;;  %v823_v34 = vpop.permute.xlu0 %822 }
 0x44e   : > { %v825_v35 = vsel %vm725_vm6, 0.0, %v823_v34 }
 0x44f   : > { %v826_v36 = vadd.f32 %v825_v35, %v820_v27  ;;  %v925_v27 = vadd.f32 %v924_v26, %v923_v22 }
 0x451   : > { %828 = vrot.lane.b32.xlu0 %v826_v36, %s2333_s16 }
 0x4bf   : > { %v789_v38 = vpop.permute.xlu1 %788 }
 0x4c0   : > { %v791_v39 = vsel %vm732_vm7, 1e+30, %v789_v38 }
 0x4c1   : > { %v792_v40 = vmin.f32 %v786_v33, %v791_v39 }
 0x4c3   : > { %v2559_v41 = vadd.f32 %v792_v40, %v773_v18  ;;  %v829_v46 = vpop.permute.xlu0 %828 }
 0x4c4   : > { %v831_v49 = vsel %vm732_vm7, 0.0, %v829_v46 }
 0x4c5   : > { %809 = vrot.lane.b32.xlu1 %v2559_v41, %s2331_s18  ;;  %v832_v53 = vadd.f32 %v831_v49, %v826_v36  ;;  %v977_v49 = vsel %vm976_vm11, %v2514_v37, 0.0 }
 0x537   : > { %v810_v48 = vpop.permute.xlu1 %809 }
 0x538   : > { %v812_v50 = vsel %vm718_vm5, 1e+30, %v810_v48 }
 0x539   : > { %v813_v51 = vmin.f32 %v2559_v41, %v812_v50  ;;  %v978_v50 = vsel %vm706_vm3, %v977_v49, 0.0 }
 0x53b   : > { %v814_v54 = vadd.f32 %v813_v51, %v807_v21  ;;  %v979_v51 = vrot.slane %v978_v50, 4 }
 0x53d   : > { %v833_v55 = vsub.f32 %v814_v54, %v832_v53  ;;  %v980_v52 = vadd.f32 %v979_v51, %v978_v50 }
 0x53f   : > { %835 = vrot.lane.b32.xlu1 %v833_v55, %s2331_s18  ;;  %v981_v54 = vrot.slane %v980_v52, 2 }
 0x543   : > { %875 = vrot.lane.b32.xlu1 %v866_v57, %s2331_s18 }
 0x5b1   : > { %v836_v58 = vpop.permute.xlu1 %835 }
 0x5b2   : > { %v838_v59 = vsel %vm718_vm5, 1e+30, %v836_v58 }
 0x5b3   : > { %v839_v60 = vmin.f32 %v833_v55, %v838_v59  ;;  %v982_v59 = vadd.f32 %v981_v54, %v980_v52 }
 0x5b5   : > { %841 = vrot.lane.b32.xlu0 %v839_v60, %s2332_s27  ;;  %v876_v61 = vpop.permute.xlu1 %875 }
 0x5b6   : > { %v878_v62 = vsel %vm718_vm5, 0.0, %v876_v61 }
 0x5b7   : > { %v879_v63 = vadd.f32 %v878_v62, %v866_v57 }
 0x5b9   : > { %881 = vrot.lane.b32.xlu1 %v879_v63, %s2332_s27 }
 0x627   : > { %v842_v1 = vpop.permute.xlu0 %841 }
 0x628   : > { %v844_v3 = vsel %vm725_vm6, 1e+30, %v842_v1 }
 0x629   : > { %v845_v4 = vmin.f32 %v839_v60, %v844_v3 }
 0x62b   : > { %847 = vrot.lane.b32.xlu0 %v845_v4, %s2333_s16  ;;  %v882_v5 = vpop.permute.xlu1 %881 }
 0x62c   : > { %v884_v6 = vsel %vm725_vm6, 0.0, %v882_v5 }
 0x62d   : > { %v885_v7 = vadd.f32 %v884_v6, %v879_v63  ;;  %v983_v63 = vrot.slane %v982_v59, 1 }
 0x62f   : > { %887 = vrot.lane.b32.xlu1 %v885_v7, %s2333_s16  ;;  %v984_v1 = vadd.f32 %v983_v63, %v982_v59 }
 0x69d   : > { %v848_v8 = vpop.permute.xlu0 %847 }
 0x69e   : > { %v850_v9 = vsel %vm732_vm7, 1e+30, %v848_v8 }
 0x69f   : > { %v851_v10 = vmin.f32 %v845_v4, %v850_v9 }
 0x6a1   : > { %v2582_v11 = vadd.f32 %v851_v10, %v832_v53  ;;  %v888_v16 = vpop.permute.xlu1 %887 }
 0x6a2   : > { %v890_v19 = vsel %vm732_vm7, 0.0, %v888_v16 }
 0x6a3   : > { %868 = vrot.lane.b32.xlu0 %v2582_v11, %s2331_s18  ;;  %v891_v23 = vadd.f32 %v890_v19, %v885_v7 }
 0x715   : > { %v869_v18 = vpop.permute.xlu0 %868 }
 0x716   : > { %v871_v20 = vsel %vm718_vm5, 1e+30, %v869_v18 }
 0x717   : > { %v872_v21 = vmin.f32 %v2582_v11, %v871_v20  ;;  %v1036_v20 = vsel %vm1035_vm12, %v2514_v37, 0.0 }
 0x719   : > { %v873_v24 = vadd.f32 %v872_v21, %v866_v57  ;;  %v1037_v21 = vsel %vm706_vm3, %v1036_v20, 0.0 }
 0x71a   : > { %v1038_v22 = vrot.slane %v1037_v21, 4 }
 0x71b   : > { %v892_v25 = vsub.f32 %v873_v24, %v891_v23 }
 0x71d   : > { %894 = vrot.lane.b32.xlu0 %v892_v25, %s2331_s18 }
 0x721   : > { %934 = vrot.lane.b32.xlu0 %v925_v27, %s2331_s18 }
 0x78f   : > { %v895_v30 = vpop.permute.xlu0 %894 }
 0x790   : > { %v897_v32 = vsel %vm718_vm5, 1e+30, %v895_v30 }
 0x791   : > { %v898_v33 = vmin.f32 %v892_v25, %v897_v32 }
 0x793   : > { %900 = vrot.lane.b32.xlu1 %v898_v33, %s2332_s27  ;;  %v935_v34 = vpop.permute.xlu0 %934 }
 0x794   : > { %v937_v35 = vsel %vm718_vm5, 0.0, %v935_v34 }
 0x795   : > { %v938_v36 = vadd.f32 %v937_v35, %v925_v27 }
 0x797   : > { %940 = vrot.lane.b32.xlu0 %v938_v36, %s2332_s27 }
 0x805   : > { %v901_v38 = vpop.permute.xlu1 %900 }
 0x806   : > { %v903_v39 = vsel %vm725_vm6, 1e+30, %v901_v38 }
 0x807   : > { %v904_v40 = vmin.f32 %v898_v33, %v903_v39 }
 0x809   : > { %906 = vrot.lane.b32.xlu1 %v904_v40, %s2333_s16  ;;  %v941_v42 = vpop.permute.xlu0 %940 }
 0x80a   : > { %v943_v43 = vsel %vm725_vm6, 0.0, %v941_v42 }
 0x80b   : > { %v944_v44 = vadd.f32 %v943_v43, %v938_v36 }
 0x80d   : > { %946 = vrot.lane.b32.xlu0 %v944_v44, %s2333_s16 }
 0x87b   : > { %v907_v45 = vpop.permute.xlu1 %906 }
 0x87c   : > { %v909_v46 = vsel %vm732_vm7, 1e+30, %v907_v45 }
 0x87d   : > { %v910_v47 = vmin.f32 %v904_v40, %v909_v46 }
 0x87f   : > { %v2605_v48 = vadd.f32 %v910_v47, %v891_v23  ;;  %v947_v53 = vpop.permute.xlu0 %946  ;;  %v1039_v23 = vadd.f32 %v1038_v22, %v1037_v21 }
 0x880   : > { %v949_v56 = vsel %vm732_vm7, 0.0, %v947_v53 }
 0x881   : > { %927 = vrot.lane.b32.xlu1 %v2605_v48, %s2331_s18  ;;  %v950_v60 = vadd.f32 %v949_v56, %v944_v44  ;;  %v1040_v25 = vrot.slane %v1039_v23, 2 }
 0x883   : > { %v1041_v33 = vadd.f32 %v1040_v25, %v1039_v23 }
 0x885   : > { %v1042_v38 = vrot.slane %v1041_v33, 1 }
 0x887   : > { %v1043_v39 = vadd.f32 %v1042_v38, %v1041_v33 }
 0x8f3   : > { %v928_v55 = vpop.permute.xlu1 %927 }
 0x8f4   : > { %v930_v57 = vsel %vm718_vm5, 1e+30, %v928_v55 }
 0x8f5   : > { %v931_v58 = vmin.f32 %v2605_v48, %v930_v57 }
 0x8f7   : > { %v932_v61 = vadd.f32 %v931_v58, %v925_v27  ;;  %v1095_v58 = vsel %vm1094_vm13, %v2514_v37, 0.0 }
 0x8f8   : > { %v1096_v59 = vsel %vm706_vm3, %v1095_v58, 0.0 }
 0x8f9   : > { %v951_v62 = vsub.f32 %v932_v61, %v950_v60 }
 0x8fb   : > { %953 = vrot.lane.b32.xlu1 %v951_v62, %s2331_s18 }
 0x8ff   : > { %993 = vrot.lane.b32.xlu1 %v984_v1, %s2331_s18 }
 0x96d   : > { %v954_v3 = vpop.permute.xlu1 %953 }
 0x96e   : > { %v956_v4 = vsel %vm718_vm5, 1e+30, %v954_v3 }
 0x96f   : > { %v957_v5 = vmin.f32 %v951_v62, %v956_v4 }
 0x971   : > { %959 = vrot.lane.b32.xlu0 %v957_v5, %s2332_s27  ;;  %v994_v6 = vpop.permute.xlu1 %993 }
 0x972   : > { %v996_v7 = vsel %vm718_vm5, 0.0, %v994_v6 }
 0x973   : > { %v997_v8 = vadd.f32 %v996_v7, %v984_v1 }
 0x975   : > { %999 = vrot.lane.b32.xlu1 %v997_v8, %s2332_s27 }
 0x9e3   : > { %v960_v9 = vpop.permute.xlu0 %959 }
 0x9e4   : > { %v962_v10 = vsel %vm725_vm6, 1e+30, %v960_v9 }
 0x9e5   : > { %v963_v12 = vmin.f32 %v957_v5, %v962_v10 }
 0x9e7   : > { %965 = vrot.lane.b32.xlu0 %v963_v12, %s2333_s16  ;;  %v1000_v13 = vpop.permute.xlu1 %999 }
 0x9e8   : > { %v1002_v14 = vsel %vm725_vm6, 0.0, %v1000_v13 }
 0x9e9   : > { %v1003_v15 = vadd.f32 %v1002_v14, %v997_v8 }
 0x9eb   : > { %1005 = vrot.lane.b32.xlu1 %v1003_v15, %s2333_s16 }
 0xa59   : > { %v966_v16 = vpop.permute.xlu0 %965 }
 0xa5a   : > { %v968_v17 = vsel %vm732_vm7, 1e+30, %v966_v16 }
 0xa5b   : > { %v969_v18 = vmin.f32 %v963_v12, %v968_v17 }
 0xa5d   : > { %v2628_v19 = vadd.f32 %v969_v18, %v950_v60  ;;  %v1006_v24 = vpop.permute.xlu1 %1005  ;;  %v1097_v60 = vrot.slane %v1096_v59, 4 }
 0xa5e   : > { %v1008_v27 = vsel %vm732_vm7, 0.0, %v1006_v24 }
 0xa5f   : > { %986 = vrot.lane.b32.xlu0 %v2628_v19, %s2331_s18  ;;  %v1009_v34 = vadd.f32 %v1008_v27, %v1003_v15  ;;  %v1098_v61 = vadd.f32 %v1097_v60, %v1096_v59 }
 0xa61   : > { %v1099_v63 = vrot.slane %v1098_v61, 2 }
 0xa63   : > { %v1100_v6 = vadd.f32 %v1099_v63, %v1098_v61 }
 0xa65   : > { %v1101_v10 = vrot.slane %v1100_v6, 1 }
 0xa67   : > { %v1102_v12 = vadd.f32 %v1101_v10, %v1100_v6 }
 0xad1   : > { %v987_v26 = vpop.permute.xlu0 %986 }
 0xad2   : > { %v989_v30 = vsel %vm718_vm5, 1e+30, %v987_v26 }
 0xad3   : > { %v990_v32 = vmin.f32 %v2628_v19, %v989_v30 }
 0xad5   : > { %v991_v35 = vadd.f32 %v990_v32, %v984_v1 }
 0xad7   : > { %v1010_v36 = vsub.f32 %v991_v35, %v1009_v34 }
 0xad9   : > { %1012 = vrot.lane.b32.xlu0 %v1010_v36, %s2331_s18 }
 0xadd   : > { %1052 = vrot.lane.b32.xlu0 %v1043_v39, %s2331_s18 }
 0xb4b   : > { %v1013_v40 = vpop.permute.xlu0 %1012 }
 0xb4c   : > { %v1015_v42 = vsel %vm718_vm5, 1e+30, %v1013_v40 }
 0xb4d   : > { %v1016_v43 = vmin.f32 %v1010_v36, %v1015_v42 }
 0xb4f   : > { %1018 = vrot.lane.b32.xlu1 %v1016_v43, %s2332_s27  ;;  %v1053_v44 = vpop.permute.xlu0 %1052 }
 0xb50   : > { %v1055_v45 = vsel %vm718_vm5, 0.0, %v1053_v44 }
 0xb51   : > { %v1056_v46 = vadd.f32 %v1055_v45, %v1043_v39 }
 0xb53   : > { %1058 = vrot.lane.b32.xlu0 %v1056_v46, %s2332_s27 }
 0xbc1   : > { %v1019_v47 = vpop.permute.xlu1 %1018 }
 0xbc2   : > { %v1021_v49 = vsel %vm725_vm6, 1e+30, %v1019_v47 }
 0xbc3   : > { %v1022_v50 = vmin.f32 %v1016_v43, %v1021_v49 }
 0xbc5   : > { %1024 = vrot.lane.b32.xlu1 %v1022_v50, %s2333_s16  ;;  %v1059_v51 = vpop.permute.xlu0 %1058 }
 0xbc6   : > { %v1061_v52 = vsel %vm725_vm6, 0.0, %v1059_v51  ;;  %v797_v51 = vrot.slane %v2559_v41, %v2510_v31 }
 0xbc7   : > { %v1062_v53 = vadd.f32 %v1061_v52, %v1056_v46  ;;  %v856_v52 = vrot.slane %v2582_v11, %v2510_v31 }
 0xbc9   : > { %1064 = vrot.lane.b32.xlu0 %v1062_v53, %s2333_s16 }
 0xc37   : > { %v1025_v54 = vpop.permute.xlu1 %1024 }
 0xc38   : > { %v1027_v55 = vsel %vm732_vm7, 1e+30, %v1025_v54 }
 0xc39   : > { %v1028_v56 = vmin.f32 %v1022_v50, %v1027_v55  ;;  %v738_v50 = vrot.slane %v2534_v2, %v2510_v31 }
 0xc3b   : > { %v2651_v57 = vadd.f32 %v1028_v56, %v1009_v34  ;;  %v1065_v62 = vpop.permute.xlu0 %1064  ;;  %v739_v55 = vsel %vm704_vm2, %v738_v50, 0.0  ;;  %v974_v56 = vrot.slane %v2628_v19, %v2510_v31 }
 0xc3c   : > { %v1067_v3 = vsel %vm732_vm7, 0.0, %v1065_v62  ;;  %v798_v2 = vsel %vm740_vm4, %v797_v51, %v739_v55  ;;  %vm2334_vm4 = vmmov 1  }
 0xc3d   : > { %1045 = vrot.lane.b32.xlu1 %v2651_v57, %s2331_s18  ;;  %v1068_v7 = vadd.f32 %v1067_v3, %v1062_v53  ;;  %v915_v53 = vrot.slane %v2605_v48, %v2510_v31  ;;  %v1033_v41 = vrot.slane %v2651_v57, %v2510_v31  ;;  %v857_v11 = vsel %vm799_vm8, %v856_v52, %v798_v2 }
 0xc3f   : > { %v916_v60 = vsel %vm858_vm9, %v915_v53, %v857_v11 }
 0xc40   : > { %v975_v19 = vsel %vm917_vm10, %v974_v56, %v916_v60 }
 0xc41   : > { %v1034_v62 = vsel %vm976_vm11, %v1033_v41, %v975_v19 }
 0xcaf   : > { %v1046_v1 = vpop.permute.xlu1 %1045 }
 0xcb0   : > { %v1048_v4 = vsel %vm718_vm5, 1e+30, %v1046_v1 }
 0xcb1   : > { %v1049_v5 = vmin.f32 %v2651_v57, %v1048_v4 }
 0xcb3   : > { %v1050_v8 = vadd.f32 %v1049_v5, %v1043_v39 }
 0xcb5   : > { %v1069_v9 = vsub.f32 %v1050_v8, %v1068_v7 }
 0xcb7   : > { %1071 = vrot.lane.b32.xlu1 %v1069_v9, %s2331_s18 }
 0xcbb   : > { %1111 = vrot.lane.b32.xlu1 %v1102_v12, %s2331_s18 }
 0xd29   : > { %v1072_v13 = vpop.permute.xlu1 %1071 }
 0xd2a   : > { %v1074_v14 = vsel %vm718_vm5, 1e+30, %v1072_v13  ;;  %v2723_v13 = vand.u32 127, %v693_v28 }
 0xd2b   : > { %v1075_v15 = vmin.f32 %v1069_v9, %v1074_v14 }
 0xd2c   : > { %vm1153_vm14 = vcmp.eq.s32.totalorder %v2723_v13, 7  ;;  %vm1173_vm15 = vcmp.eq.s32.totalorder %v2723_v13, 6 }
 0xd2d   : > { %1077 = vrot.lane.b32.xlu0 %v1075_v15, %s2332_s27  ;;  %v1112_v16 = vpop.permute.xlu1 %1111 }
 0xd2e   : > { %v1114_v17 = vsel %vm718_vm5, 0.0, %v1112_v16 }
 0xd2f   : > { %v1115_v18 = vadd.f32 %v1114_v17, %v1102_v12 }
 0xd31   : > { %1117 = vrot.lane.b32.xlu1 %v1115_v18, %s2332_s27 }
 0xd9f   : > { %v1078_v20 = vpop.permute.xlu0 %1077 }
 0xda0   : > { %v1080_v21 = vsel %vm725_vm6, 1e+30, %v1078_v20 }
 0xda1   : > { %v1081_v22 = vmin.f32 %v1075_v15, %v1080_v21 }
 0xda3   : > { %1083 = vrot.lane.b32.xlu0 %v1081_v22, %s2333_s16  ;;  %v1118_v23 = vpop.permute.xlu1 %1117 }
 0xda4   : > { %v1120_v24 = vsel %vm725_vm6, 0.0, %v1118_v23 }
 0xda5   : > { %v1121_v25 = vadd.f32 %v1120_v24, %v1115_v18 }
 0xda7   : > { %1123 = vrot.lane.b32.xlu1 %v1121_v25, %s2333_s16 }
 0xe15   : > { %v1084_v26 = vpop.permute.xlu0 %1083 }
 0xe16   : > { %v1086_v27 = vsel %vm732_vm7, 1e+30, %v1084_v26 }
 0xe17   : > { %v1087_v30 = vmin.f32 %v1081_v22, %v1086_v27 }
 0xe19   : > { %v1088_v32 = vadd.f32 %v1087_v30, %v1068_v7  ;;  %v1124_v33 = vpop.permute.xlu1 %1123 }
 0xe1a   : > { %v1126_v35 = vsel %vm732_vm7, 0.0, %v1124_v33 }
 0xe1b   : > { %1104 = vrot.lane.b32.xlu0 %v1088_v32, %s2331_s18  ;;  %v1127_v39 = vadd.f32 %v1126_v35, %v1121_v25  ;;  %v1092_v48 = vrot.slane %v1088_v32, %v2510_v31 }
 0xe1d   : > { %v1093_v57 = vsel %vm1035_vm12, %v1092_v48, %v1034_v62 }
 0xe8d   : > { %v1105_v34 = vpop.permute.xlu0 %1104 }
 0xe8e   : > { %v1107_v36 = vsel %vm718_vm5, 1e+30, %v1105_v34  ;;  %v2335_v34 = vmov 6  }
 0xe8f   : > { %v1108_v38 = vmin.f32 %v1088_v32, %v1107_v36  ;;  %v2336_v36 = vmov 7  }
 0xe91   : > { %v1109_v40 = vadd.f32 %v1108_v38, %v1102_v12 }
 0xe93   : > { %v1128_v42 = vsub.f32 %v1109_v40, %v1127_v39 }
 0xe95   : > { %1130 = vrot.lane.b32.xlu0 %v1128_v42, %s2331_s18 }
 0xf07   : > { %v1131_v43 = vpop.permute.xlu0 %1130 }
 0xf08   : > { %v1133_v44 = vsel %vm718_vm5, 1e+30, %v1131_v43 }
 0xf09   : > { %v1134_v45 = vmin.f32 %v1128_v42, %v1133_v44 }
 0xf0b   : > { %1136 = vrot.lane.b32.xlu1 %v1134_v45, %s2332_s27 }
 0xf7d   : > { %v1137_v46 = vpop.permute.xlu1 %1136 }
 0xf7e   : > { %v1139_v47 = vsel %vm725_vm6, 1e+30, %v1137_v46 }
 0xf7f   : > { %v1140_v49 = vmin.f32 %v1134_v45, %v1139_v47 }
 0xf81   : > { %1142 = vrot.lane.b32.xlu0 %v1140_v49, %s2333_s16 }
 0xff3   : > { %v1143_v54 = vpop.permute.xlu0 %1142 }
 0xff4   : > { %v1145_v58 = vsel %vm732_vm7, 1e+30, %v1143_v54 }
 0xff5   : > { %v1146_v59 = vmin.f32 %v1140_v49, %v1145_v58 }
 0xff7   : > { %v1147_v61 = vadd.f32 %v1146_v59, %v1127_v39 }
 0xff9   : > { %v1151_v63 = vrot.slane %v1147_v61, %v2510_v31 }
 0xffb   : > { %v2713_v1 = vsel %vm1094_vm13, %v1151_v63, %v1093_v57  ;;  %v1165_v3 = vsel %vm1094_vm13, %v1151_v63, 0.0 }
 0xffc   : > { %v1157_v4 = vsel %vm1035_vm12, %v2713_v1, 0.0  ;;  %v1166_v5 = vsel %vm706_vm3, %v1165_v3, 0.0 }
 0xffd   : > { %v1158_v6 = vsel %vm706_vm3, %v1157_v4, 0.0  ;;  %v1167_v7 = vrot.slane %v1166_v5, 4 }
 0xffe   : > { %v1159_v31 = vrot.slane %v1158_v6, 4 }
 0xfff   : > { %v1168_v8 = vadd.f32 %v1167_v7, %v1166_v5 }
0x1000   : > { %v1160_v9 = vadd.f32 %v1159_v31, %v1158_v6 }
0x1001   : > { %v1169_v10 = vrot.slane %v1168_v8, 2 }
0x1002   : > { %v1161_v12 = vrot.slane %v1160_v9, 2 }
0x1003   : > { %v1170_v14 = vadd.f32 %v1169_v10, %v1168_v8 }
0x1004   : > { %v1162_v15 = vadd.f32 %v1161_v12, %v1160_v9 }
0x1005   : > { %v1171_v16 = vrot.slane %v1170_v14, 1 }
0x1006   : > { %v1163_v17 = vrot.slane %v1162_v15, 1 }
0x1007   : > { %v1172_v20 = vadd.f32 %v1171_v16, %v1170_v14 }
0x1008   : > { %v1164_v18 = vadd.f32 %v1163_v17, %v1162_v15 }
0x1009   : > { %v1182_v28 = vsel %vm1173_vm15, %v1172_v20, 0.0 }
0x100a   : > { %v1178_v21 = vsel %vm1153_vm14, %v1164_v18, 0.0  ;;  %v1174_v22 = vsel %vm1173_vm15, %v1164_v18, 0.0  ;;  %v1183_v25 = vsel %vm706_vm3, %v1182_v28, 0.0  ;;  %vm1154_vm15 = vmand %vm1094_vm13, %vm1153_vm14 }
0x100b   : > { %v1179_v23 = vsel %vm706_vm3, %v1178_v21, 0.0  ;;  %v1175_v24 = vsel %vm706_vm3, %v1174_v22, 0.0  ;;  %v2068_v8 = vsel %vm1154_vm15, 1.0, %v2329_v0 }
0x100c   : > { %1180 = vadd.xlane.f32.xlu0 %v1179_v23  ;;  %1176 = vadd.xlane.f32.xlu1 %v1175_v24 }
0x1010   : > { %1184 = vadd.xlane.f32.xlu0 %v1183_v25 }
0x1099   : > { %v1181_v26 = vpop.xlane.xlu0 %1180  ;;  %v1177_v27 = vpop.xlane.xlu1 %1176 }
0x109a   : > { %v1186_v30 = vmin.f32 %v1177_v27, %v1181_v26 }
0x109d   : > { %v1185_v32 = vpop.xlane.xlu0 %1184 }
0x109e   : > { %v1187_v33 = vmin.f32 %v1186_v30, %v1185_v32 }
0x10a0   : > { %vm1188_vm0 = vcmp.eq.f32.partialorder %v1177_v27, %v1187_v33  ;;  %vm1190_vm1 = vcmp.eq.f32.partialorder %v1181_v26, %v1187_v33 }
0x10a1   : > { %vm1189_vm5 = vmxor %vm1188_vm0, %vm2334_vm4 }
0x10a2   : > { %vm1191_vm6 = vmand %vm1189_vm5, %vm1190_vm1 }
0x10a3   : > { %vm1192_vm7 = vmor %vm1188_vm0, %vm1191_vm6  ;;  %v1194_v35 = vsel %vm1191_vm6, 7, %v2335_v34 }
0x10a4   : > { %v1193_v38 = vsel %vm1192_vm7, 6, %v2336_v36  ;;  %v1195_v39 = vsel %vm1188_vm0, 6, %v1194_v35 }
0x10a5   : > { %v2070_v40 = vadd.s32 4294967295, %v1193_v38  ;;  %vm1197_vm8 = vcmp.eq.s32.totalorder %v2723_v13, %v1195_v39  ;;  %vm1196_vm9 = vcmp.eq.s32.totalorder %v2507_v29, %v1193_v38  ;;  %v2071_v58 = vadd.s32 4294967295, %v1195_v39 }
0x10a6   : > { %vm2737_vm10 = vmand %vm1196_vm9, %vm1197_vm8  ;;  %v1215_v43 = vsel %vm1196_vm9, %v2713_v1, 0.0  ;;  %vm1202_vm6 = vcmp.gt.s32.totalorder %v1193_v38, 0  ;;  %vm1203_vm7 = vcmp.gt.s32.totalorder %v1195_v39, 0 }
0x10a7   : > { %vm1206_vm11 = vcmp.eq.s32.totalorder %v2507_v29, %v2070_v40  ;;  %v1216_v44 = vsel %vm706_vm3, %v1215_v43, 0.0  ;;  %vm1224_vm12 = vcmp.eq.s32.totalorder %v2723_v13, %v2071_v58  ;;  %v2069_v9 = vsel %vm2737_vm10, 1.0, %v2329_v0 }
0x10a8   : > { %v1207_v45 = vsel %vm1206_vm11, %v2713_v1, 0.0  ;;  %v1217_v46 = vrot.slane %v1216_v44, 4  ;;  %vm1204_vm11 = vmand %vm1202_vm6, %vm1203_vm7  ;;  %v1201_v16 = vmax.f32 %v2068_v8, %v2069_v9 }
0x10a9   : > { %v1208_v47 = vsel %vm706_vm3, %v1207_v45, 0.0 }
0x10aa   : > { %v1209_v49 = vrot.slane %v1208_v47, 4  ;;  %v1218_v50 = vadd.f32 %v1217_v46, %v1216_v44 }
0x10ac   : > { %v1210_v51 = vadd.f32 %v1209_v49, %v1208_v47  ;;  %v1219_v52 = vrot.slane %v1218_v50, 2 }
0x10ae   : > { %v1211_v53 = vrot.slane %v1210_v51, 2  ;;  %v1220_v54 = vadd.f32 %v1219_v52, %v1218_v50 }
0x10b0   : > { %v1212_v55 = vadd.f32 %v1211_v53, %v1210_v51  ;;  %v1221_v56 = vrot.slane %v1220_v54, 1 }
0x10b2   : > { %v1213_v2 = vrot.slane %v1212_v55, 1  ;;  %v1222_v59 = vadd.f32 %v1221_v56, %v1220_v54 }
0x10b4   : > { %v1214_v41 = vadd.f32 %v1213_v2, %v1212_v55  ;;  %v1233_v19 = vsel %vm1224_vm12, %v1222_v59, 0.0 }
0x10b5   : > { %v1234_v62 = vsel %vm706_vm3, %v1233_v19, 0.0 }
0x10b6   : > { %v1229_v11 = vsel %vm1197_vm8, %v1214_v41, 0.0  ;;  %v1225_v48 = vsel %vm1224_vm12, %v1214_v41, 0.0 }
0x10b7   : > { %v1230_v60 = vsel %vm706_vm3, %v1229_v11, 0.0  ;;  %v1226_v61 = vsel %vm706_vm3, %v1225_v48, 0.0 }
0x10b8   : > { %1231 = vadd.xlane.f32.xlu0 %v1230_v60  ;;  %1227 = vadd.xlane.f32.xlu1 %v1226_v61 }
0x10bc   : > { %1235 = vadd.xlane.f32.xlu1 %v1234_v62 }
0x1145   : > { %v1232_v63 = vpop.xlane.xlu0 %1231  ;;  %v1228_v57 = vpop.xlane.xlu1 %1227 }
0x1146   : > { %v1237_v3 = vmin.f32 %v1228_v57, %v1232_v63 }
0x1149   : > { %v1236_v4 = vpop.xlane.xlu1 %1235 }
0x114a   : > { %v1238_v5 = vmin.f32 %v1237_v3, %v1236_v4 }
0x114c   : > { %vm1239_vm0 = vcmp.eq.f32.partialorder %v1228_v57, %v1238_v5  ;;  %vm1241_vm1 = vcmp.eq.f32.partialorder %v1232_v63, %v1238_v5 }
0x114d   : > { %vm1240_vm5 = vmxor %vm1239_vm0, %vm2334_vm4 }
0x114e   : > { %vm1242_vm8 = vmand %vm1240_vm5, %vm1241_vm1 }
0x114f   : > { %vm1243_vm9 = vmor %vm1239_vm0, %vm1242_vm8  ;;  %v1245_v6 = vsel %vm1242_vm8, %v1195_v39, %v2071_v58 }
0x1150   : > { %v1244_v7 = vsel %vm1243_vm9, %v2070_v40, %v1193_v38  ;;  %v1246_v31 = vsel %vm1239_vm0, %v2071_v58, %v1245_v6 }
0x1151   : > { %v1247_v10 = vsel %vm1204_vm11, %v1244_v7, %v1193_v38  ;;  %v1248_v12 = vsel %vm1204_vm11, %v1246_v31, %v1195_v39 }
0x1152   : > { %vm1253_vm13 = vcmp.eq.s32.totalorder %v2723_v13, %v1248_v12  ;;  %v2073_v14 = vadd.s32 4294967295, %v1247_v10  ;;  %vm1249_vm14 = vcmp.eq.s32.totalorder %v2507_v29, %v1247_v10  ;;  %v2074_v34 = vadd.s32 4294967295, %v1248_v12 }
0x1153   : > { %vm1252_vm12 = vmand %vm1204_vm11, %vm1249_vm14  ;;  %v1271_v15 = vsel %vm1249_vm14, %v2713_v1, 0.0  ;;  %vm1258_vm7 = vcmp.gt.s32.totalorder %v1247_v10, 0  ;;  %vm1259_vm8 = vcmp.gt.s32.totalorder %v1248_v12, 0 }
0x1154   : > { %vm1262_vm0 = vcmp.eq.s32.totalorder %v2507_v29, %v2073_v14  ;;  %vm1254_vm15 = vmand %vm1252_vm12, %vm1253_vm13  ;;  %v1272_v17 = vsel %vm706_vm3, %v1271_v15, 0.0  ;;  %vm1280_vm10 = vcmp.eq.s32.totalorder %v2723_v13, %v2074_v34 }
0x1155   : > { %v1263_v18 = vsel %vm1262_vm0, %v2713_v1, 0.0  ;;  %v2072_v20 = vsel %vm1254_vm15, 1.0, %v2329_v0  ;;  %v1273_v21 = vrot.slane %v1272_v17, 4 }
0x1156   : > { %v1264_v22 = vsel %vm706_vm3, %v1263_v18, 0.0  ;;  %v2771_v23 = vmax.f32 %v1201_v16, %v2072_v20 }
0x1157   : > { %v1265_v24 = vrot.slane %v1264_v22, 4  ;;  %v1274_v28 = vadd.f32 %v1273_v21, %v1272_v17 }
0x1159   : > { %v1266_v25 = vadd.f32 %v1265_v24, %v1264_v22  ;;  %v1275_v26 = vrot.slane %v1274_v28, 2 }
0x115b   : > { %v1267_v27 = vrot.slane %v1266_v25, 2  ;;  %v1276_v30 = vadd.f32 %v1275_v26, %v1274_v28 }
0x115d   : > { %v1268_v32 = vadd.f32 %v1267_v27, %v1266_v25  ;;  %v1277_v33 = vrot.slane %v1276_v30, 1 }
0x115f   : > { %v1269_v35 = vrot.slane %v1268_v32, 1  ;;  %v1278_v38 = vadd.f32 %v1277_v33, %v1276_v30 }
0x1161   : > { %v1270_v36 = vadd.f32 %v1269_v35, %v1268_v32  ;;  %v1289_v44 = vsel %vm1280_vm10, %v1278_v38, 0.0 }
0x1162   : > { %v1290_v45 = vsel %vm706_vm3, %v1289_v44, 0.0 }
0x1163   : > { %v1285_v39 = vsel %vm1253_vm13, %v1270_v36, 0.0  ;;  %v1281_v40 = vsel %vm1280_vm10, %v1270_v36, 0.0  ;;  %vm1260_vm13 = vmand %vm1258_vm7, %vm1259_vm8 }
0x1164   : > { %v1286_v42 = vsel %vm706_vm3, %v1285_v39, 0.0  ;;  %v1282_v43 = vsel %vm706_vm3, %v1281_v40, 0.0 }
0x1165   : > { %1287 = vadd.xlane.f32.xlu1 %v1286_v42  ;;  %1283 = vadd.xlane.f32.xlu0 %v1282_v43 }
0x1169   : > { %1291 = vadd.xlane.f32.xlu0 %v1290_v45 }
0x11f2   : > { %v1288_v46 = vpop.xlane.xlu1 %1287  ;;  %v1284_v47 = vpop.xlane.xlu0 %1283 }
0x11f3   : > { %v1293_v49 = vmin.f32 %v1284_v47, %v1288_v46 }
0x11f6   : > { %v1292_v50 = vpop.xlane.xlu0 %1291 }
0x11f7   : > { %v1294_v51 = vmin.f32 %v1293_v49, %v1292_v50 }
0x11f9   : > { %vm1295_vm1 = vcmp.eq.f32.partialorder %v1284_v47, %v1294_v51  ;;  %vm1297_vm5 = vcmp.eq.f32.partialorder %v1288_v46, %v1294_v51 }
0x11fa   : > { %vm1296_vm6 = vmxor %vm1295_vm1, %vm2334_vm4 }
0x11fb   : > { %vm1298_vm9 = vmand %vm1296_vm6, %vm1297_vm5 }
0x11fc   : > { %vm1299_vm11 = vmor %vm1295_vm1, %vm1298_vm9  ;;  %v1301_v52 = vsel %vm1298_vm9, %v1248_v12, %v2074_v34 }
0x11fd   : > { %v1300_v53 = vsel %vm1299_vm11, %v2073_v14, %v1247_v10  ;;  %v1302_v54 = vsel %vm1295_vm1, %v2074_v34, %v1301_v52 }
0x11fe   : > { %v1303_v55 = vsel %vm1260_vm13, %v1300_v53, %v1247_v10  ;;  %v1304_v56 = vsel %vm1260_vm13, %v1302_v54, %v1248_v12 }
0x11ff   : > { %vm1309_vm14 = vcmp.eq.s32.totalorder %v2723_v13, %v1304_v56  ;;  %v2076_v58 = vadd.s32 4294967295, %v1303_v55  ;;  %vm1305_vm12 = vcmp.eq.s32.totalorder %v2507_v29, %v1303_v55  ;;  %v2077_v7 = vadd.s32 4294967295, %v1304_v56 }
0x1200   : > { %vm1308_vm0 = vmand %vm1260_vm13, %vm1305_vm12  ;;  %v1327_v2 = vsel %vm1305_vm12, %v2713_v1, 0.0  ;;  %vm1314_vm8 = vcmp.gt.s32.totalorder %v1303_v55, 0  ;;  %vm1315_vm9 = vcmp.gt.s32.totalorder %v1304_v56, 0 }
0x1201   : > { %vm1318_vm15 = vcmp.eq.s32.totalorder %v2507_v29, %v2076_v58  ;;  %vm1310_vm10 = vmand %vm1308_vm0, %vm1309_vm14  ;;  %v1328_v41 = vsel %vm706_vm3, %v1327_v2, 0.0  ;;  %vm1336_vm1 = vcmp.eq.s32.totalorder %v2723_v13, %v2077_v7 }
0x1202   : > { %v1319_v59 = vsel %vm1318_vm15, %v2713_v1, 0.0  ;;  %v2075_v11 = vsel %vm1310_vm10, 1.0, %v2329_v0  ;;  %v1329_v48 = vrot.slane %v1328_v41, 4 }
0x1203   : > { %v1320_v60 = vsel %vm706_vm3, %v1319_v59, 0.0  ;;  %v1313_v61 = vmax.f32 %v2771_v23, %v2075_v11 }
0x1204   : > { %v1321_v19 = vrot.slane %v1320_v60, 4  ;;  %v1330_v62 = vadd.f32 %v1329_v48, %v1328_v41 }
0x1206   : > { %v1322_v63 = vadd.f32 %v1321_v19, %v1320_v60  ;;  %v1331_v57 = vrot.slane %v1330_v62, 2 }
0x1208   : > { %v1323_v3 = vrot.slane %v1322_v63, 2  ;;  %v1332_v4 = vadd.f32 %v1331_v57, %v1330_v62 }
0x120a   : > { %v1324_v5 = vadd.f32 %v1323_v3, %v1322_v63  ;;  %v1333_v6 = vrot.slane %v1332_v4, 1 }
0x120c   : > { %v1325_v31 = vrot.slane %v1324_v5, 1  ;;  %v1334_v9 = vadd.f32 %v1333_v6, %v1332_v4 }
0x120e   : > { %v1326_v8 = vadd.f32 %v1325_v31, %v1324_v5  ;;  %v1345_v16 = vsel %vm1336_vm1, %v1334_v9, 0.0 }
0x120f   : > { %v1346_v17 = vsel %vm706_vm3, %v1345_v16, 0.0 }
0x1210   : > { %v1341_v10 = vsel %vm1309_vm14, %v1326_v8, 0.0  ;;  %v1337_v12 = vsel %vm1336_vm1, %v1326_v8, 0.0  ;;  %vm1316_vm14 = vmand %vm1314_vm8, %vm1315_vm9 }
0x1211   : > { %v1342_v14 = vsel %vm706_vm3, %v1341_v10, 0.0  ;;  %v1338_v15 = vsel %vm706_vm3, %v1337_v12, 0.0 }
0x1212   : > { %1343 = vadd.xlane.f32.xlu0 %v1342_v14  ;;  %1339 = vadd.xlane.f32.xlu1 %v1338_v15 }
0x1216   : > { %1347 = vadd.xlane.f32.xlu1 %v1346_v17 }
0x129f   : > { %v1344_v18 = vpop.xlane.xlu0 %1343  ;;  %v1340_v20 = vpop.xlane.xlu1 %1339 }
0x12a0   : > { %v1349_v21 = vmin.f32 %v1340_v20, %v1344_v18 }
0x12a3   : > { %v1348_v22 = vpop.xlane.xlu1 %1347 }
0x12a4   : > { %v1350_v23 = vmin.f32 %v1349_v21, %v1348_v22 }
0x12a6   : > { %vm1351_vm5 = vcmp.eq.f32.partialorder %v1340_v20, %v1350_v23  ;;  %vm1353_vm6 = vcmp.eq.f32.partialorder %v1344_v18, %v1350_v23 }
0x12a7   : > { %vm1352_vm7 = vmxor %vm1351_vm5, %vm2334_vm4 }
0x12a8   : > { %vm1354_vm11 = vmand %vm1352_vm7, %vm1353_vm6 }
0x12a9   : > { %vm1355_vm13 = vmor %vm1351_vm5, %vm1354_vm11  ;;  %v1357_v24 = vsel %vm1354_vm11, %v1304_v56, %v2077_v7 }
0x12aa   : > { %v1356_v28 = vsel %vm1355_vm13, %v2076_v58, %v1303_v55  ;;  %v1358_v25 = vsel %vm1351_vm5, %v2077_v7, %v1357_v24 }
0x12ab   : > { %v1359_v26 = vsel %vm1316_vm14, %v1356_v28, %v1303_v55  ;;  %v1360_v27 = vsel %vm1316_vm14, %v1358_v25, %v1304_v56 }
0x12ac   : > { %vm1365_vm12 = vcmp.eq.s32.totalorder %v2723_v13, %v1360_v27  ;;  %v2079_v30 = vadd.s32 4294967295, %v1359_v26  ;;  %vm1361_vm0 = vcmp.eq.s32.totalorder %v2507_v29, %v1359_v26  ;;  %v2080_v50 = vadd.s32 4294967295, %v1360_v27 }
0x12ad   : > { %vm1364_vm15 = vmand %vm1316_vm14, %vm1361_vm0  ;;  %v1383_v32 = vsel %vm1361_vm0, %v2713_v1, 0.0  ;;  %vm1370_vm9 = vcmp.gt.s32.totalorder %v1359_v26, 0  ;;  %vm1371_vm11 = vcmp.gt.s32.totalorder %v1360_v27, 0 }
0x12ae   : > { %vm1374_vm10 = vcmp.eq.s32.totalorder %v2507_v29, %v2079_v30  ;;  %vm1366_vm1 = vmand %vm1364_vm15, %vm1365_vm12  ;;  %v1384_v33 = vsel %vm706_vm3, %v1383_v32, 0.0  ;;  %vm1392_vm5 = vcmp.eq.s32.totalorder %v2723_v13, %v2080_v50 }
0x12af   : > { %v1375_v34 = vsel %vm1374_vm10, %v2713_v1, 0.0  ;;  %v2078_v35 = vsel %vm1366_vm1, 1.0, %v2329_v0  ;;  %v1385_v36 = vrot.slane %v1384_v33, 4 }
0x12b0   : > { %v1376_v38 = vsel %vm706_vm3, %v1375_v34, 0.0  ;;  %v2808_v39 = vmax.f32 %v1313_v61, %v2078_v35 }
0x12b1   : > { %v1377_v40 = vrot.slane %v1376_v38, 4  ;;  %v1386_v42 = vadd.f32 %v1385_v36, %v1384_v33 }
0x12b3   : > { %v1378_v43 = vadd.f32 %v1377_v40, %v1376_v38  ;;  %v1387_v44 = vrot.slane %v1386_v42, 2 }
0x12b5   : > { %v1379_v45 = vrot.slane %v1378_v43, 2  ;;  %v1388_v46 = vadd.f32 %v1387_v44, %v1386_v42 }
0x12b7   : > { %v1380_v47 = vadd.f32 %v1379_v45, %v1378_v43  ;;  %v1389_v49 = vrot.slane %v1388_v46, 1 }
0x12b9   : > { %v1381_v51 = vrot.slane %v1380_v47, 1  ;;  %v1390_v53 = vadd.f32 %v1389_v49, %v1388_v46 }
0x12bb   : > { %v1382_v52 = vadd.f32 %v1381_v51, %v1380_v47  ;;  %v1401_v2 = vsel %vm1392_vm5, %v1390_v53, 0.0 }
0x12bc   : > { %v1402_v41 = vsel %vm706_vm3, %v1401_v2, 0.0 }
0x12bd   : > { %v1397_v54 = vsel %vm1365_vm12, %v1382_v52, 0.0  ;;  %v1393_v55 = vsel %vm1392_vm5, %v1382_v52, 0.0  ;;  %vm1372_vm12 = vmand %vm1370_vm9, %vm1371_vm11 }
0x12be   : > { %v1398_v56 = vsel %vm706_vm3, %v1397_v54, 0.0  ;;  %v1394_v58 = vsel %vm706_vm3, %v1393_v55, 0.0 }
0x12bf   : > { %1399 = vadd.xlane.f32.xlu1 %v1398_v56  ;;  %1395 = vadd.xlane.f32.xlu0 %v1394_v58 }
0x12c3   : > { %1403 = vadd.xlane.f32.xlu0 %v1402_v41 }
0x134c   : > { %v1400_v59 = vpop.xlane.xlu1 %1399  ;;  %v1396_v11 = vpop.xlane.xlu0 %1395 }
0x134d   : > { %v1405_v48 = vmin.f32 %v1396_v11, %v1400_v59 }
0x1350   : > { %v1404_v60 = vpop.xlane.xlu0 %1403 }
0x1351   : > { %v1406_v61 = vmin.f32 %v1405_v48, %v1404_v60 }
0x1353   : > { %vm1407_vm6 = vcmp.eq.f32.partialorder %v1396_v11, %v1406_v61  ;;  %vm1409_vm7 = vcmp.eq.f32.partialorder %v1400_v59, %v1406_v61 }
0x1354   : > { %vm1408_vm8 = vmxor %vm1407_vm6, %vm2334_vm4 }
0x1355   : > { %vm1410_vm13 = vmand %vm1408_vm8, %vm1409_vm7 }
0x1356   : > { %vm1411_vm14 = vmor %vm1407_vm6, %vm1410_vm13  ;;  %v1413_v19 = vsel %vm1410_vm13, %v1360_v27, %v2080_v50 }
0x1357   : > { %v1412_v62 = vsel %vm1411_vm14, %v2079_v30, %v1359_v26  ;;  %v1414_v63 = vsel %vm1407_vm6, %v2080_v50, %v1413_v19 }
0x1358   : > { %v1415_v57 = vsel %vm1372_vm12, %v1412_v62, %v1359_v26  ;;  %v1416_v3 = vsel %vm1372_vm12, %v1414_v63, %v1360_v27 }
0x1359   : > { %vm1421_vm0 = vcmp.eq.s32.totalorder %v2723_v13, %v1416_v3  ;;  %v2082_v4 = vadd.s32 4294967295, %v1415_v57  ;;  %vm1417_vm15 = vcmp.eq.s32.totalorder %v2507_v29, %v1415_v57  ;;  %v2083_v22 = vadd.s32 4294967295, %v1416_v3 }
0x135a   : > { %vm1420_vm10 = vmand %vm1372_vm12, %vm1417_vm15  ;;  %v1439_v5 = vsel %vm1417_vm15, %v2713_v1, 0.0  ;;  %vm1426_vm11 = vcmp.gt.s32.totalorder %v1415_v57, 0  ;;  %vm1427_vm13 = vcmp.gt.s32.totalorder %v1416_v3, 0 }
0x135b   : > { %vm1430_vm1 = vcmp.eq.s32.totalorder %v2507_v29, %v2082_v4  ;;  %vm1422_vm5 = vmand %vm1420_vm10, %vm1421_vm0  ;;  %v1440_v6 = vsel %vm706_vm3, %v1439_v5, 0.0  ;;  %vm1448_vm6 = vcmp.eq.s32.totalorder %v2723_v13, %v2083_v22 }
0x135c   : > { %v1431_v7 = vsel %vm1430_vm1, %v2713_v1, 0.0  ;;  %v2081_v31 = vsel %vm1422_vm5, 1.0, %v2329_v0  ;;  %v1441_v8 = vrot.slane %v1440_v6, 4 }
0x135d   : > { %v1432_v9 = vsel %vm706_vm3, %v1431_v7, 0.0  ;;  %v1425_v10 = vmax.f32 %v2808_v39, %v2081_v31 }
0x135e   : > { %v1433_v12 = vrot.slane %v1432_v9, 4  ;;  %v1442_v14 = vadd.f32 %v1441_v8, %v1440_v6 }
0x1360   : > { %v1434_v15 = vadd.f32 %v1433_v12, %v1432_v9  ;;  %v1443_v16 = vrot.slane %v1442_v14, 2 }
0x1362   : > { %v1435_v17 = vrot.slane %v1434_v15, 2  ;;  %v1444_v18 = vadd.f32 %v1443_v16, %v1442_v14 }
0x1364   : > { %v1436_v20 = vadd.f32 %v1435_v17, %v1434_v15  ;;  %v1445_v21 = vrot.slane %v1444_v18, 1 }
0x1366   : > { %v1437_v23 = vrot.slane %v1436_v20, 1  ;;  %v1446_v28 = vadd.f32 %v1445_v21, %v1444_v18 }
0x1368   : > { %v1438_v24 = vadd.f32 %v1437_v23, %v1436_v20  ;;  %v1457_v32 = vsel %vm1448_vm6, %v1446_v28, 0.0 }
0x1369   : > { %v1458_v33 = vsel %vm706_vm3, %v1457_v32, 0.0 }
0x136a   : > { %v1453_v25 = vsel %vm1421_vm0, %v1438_v24, 0.0  ;;  %v1449_v26 = vsel %vm1448_vm6, %v1438_v24, 0.0  ;;  %vm1428_vm0 = vmand %vm1426_vm11, %vm1427_vm13 }
0x136b   : > { %v1454_v27 = vsel %vm706_vm3, %v1453_v25, 0.0  ;;  %v1450_v30 = vsel %vm706_vm3, %v1449_v26, 0.0 }
0x136c   : > { %1455 = vadd.xlane.f32.xlu0 %v1454_v27  ;;  %1451 = vadd.xlane.f32.xlu1 %v1450_v30 }
0x1370   : > { %1459 = vadd.xlane.f32.xlu1 %v1458_v33 }
0x13f9   : > { %v1456_v34 = vpop.xlane.xlu0 %1455  ;;  %v1452_v35 = vpop.xlane.xlu1 %1451 }
0x13fa   : > { %v1461_v36 = vmin.f32 %v1452_v35, %v1456_v34 }
0x13fd   : > { %v1460_v38 = vpop.xlane.xlu1 %1459 }
0x13fe   : > { %v1462_v39 = vmin.f32 %v1461_v36, %v1460_v38 }
0x1400   : > { %vm1463_vm7 = vcmp.eq.f32.partialorder %v1452_v35, %v1462_v39  ;;  %vm1465_vm8 = vcmp.eq.f32.partialorder %v1456_v34, %v1462_v39 }
0x1401   : > { %vm1464_vm9 = vmxor %vm1463_vm7, %vm2334_vm4 }
0x1402   : > { %vm1466_vm14 = vmand %vm1464_vm9, %vm1465_vm8 }
0x1403   : > { %vm1467_vm12 = vmor %vm1463_vm7, %vm1466_vm14  ;;  %v1469_v40 = vsel %vm1466_vm14, %v1416_v3, %v2083_v22 }
0x1404   : > { %v1468_v42 = vsel %vm1467_vm12, %v2082_v4, %v1415_v57  ;;  %v1470_v43 = vsel %vm1463_vm7, %v2083_v22, %v1469_v40 }
0x1405   : > { %v1471_v44 = vsel %vm1428_vm0, %v1468_v42, %v1415_v57  ;;  %v1472_v45 = vsel %vm1428_vm0, %v1470_v43, %v1416_v3 }
0x1406   : > { %vm1477_vm15 = vcmp.eq.s32.totalorder %v2723_v13, %v1472_v45  ;;  %v2085_v46 = vadd.s32 4294967295, %v1471_v44  ;;  %vm1473_vm10 = vcmp.eq.s32.totalorder %v2507_v29, %v1471_v44  ;;  %v2086_v60 = vadd.s32 4294967295, %v1472_v45 }
0x1407   : > { %vm1476_vm1 = vmand %vm1428_vm0, %vm1473_vm10  ;;  %v1495_v47 = vsel %vm1473_vm10, %v2713_v1, 0.0  ;;  %vm1482_vm13 = vcmp.gt.s32.totalorder %v1471_v44, 0  ;;  %vm1483_vm14 = vcmp.gt.s32.totalorder %v1472_v45, 0 }
0x1408   : > { %vm1486_vm5 = vcmp.eq.s32.totalorder %v2507_v29, %v2085_v46  ;;  %vm1478_vm6 = vmand %vm1476_vm1, %vm1477_vm15  ;;  %v1496_v49 = vsel %vm706_vm3, %v1495_v47, 0.0  ;;  %vm1504_vm7 = vcmp.eq.s32.totalorder %v2723_v13, %v2086_v60 }
0x1409   : > { %v1487_v50 = vsel %vm1486_vm5, %v2713_v1, 0.0  ;;  %v2084_v51 = vsel %vm1478_vm6, 1.0, %v2329_v0  ;;  %v1497_v52 = vrot.slane %v1496_v49, 4 }
0x140a   : > { %v1488_v53 = vsel %vm706_vm3, %v1487_v50, 0.0  ;;  %v2845_v54 = vmax.f32 %v1425_v10, %v2084_v51 }
0x140b   : > { %v1489_v55 = vrot.slane %v1488_v53, 4  ;;  %v1498_v56 = vadd.f32 %v1497_v52, %v1496_v49 }
0x140d   : > { %v1490_v58 = vadd.f32 %v1489_v55, %v1488_v53  ;;  %v1499_v2 = vrot.slane %v1498_v56, 2 }
0x140f   : > { %v1491_v41 = vrot.slane %v1490_v58, 2  ;;  %v1500_v59 = vadd.f32 %v1499_v2, %v1498_v56 }
0x1411   : > { %v1492_v11 = vadd.f32 %v1491_v41, %v1490_v58  ;;  %v1501_v48 = vrot.slane %v1500_v59, 1 }
0x1413   : > { %v1493_v61 = vrot.slane %v1492_v11, 1  ;;  %v1502_v62 = vadd.f32 %v1501_v48, %v1500_v59 }
0x1415   : > { %v1494_v19 = vadd.f32 %v1493_v61, %v1492_v11  ;;  %v1513_v5 = vsel %vm1504_vm7, %v1502_v62, 0.0 }
0x1416   : > { %v1514_v6 = vsel %vm706_vm3, %v1513_v5, 0.0 }
0x1417   : > { %v1509_v63 = vsel %vm1477_vm15, %v1494_v19, 0.0  ;;  %v1505_v57 = vsel %vm1504_vm7, %v1494_v19, 0.0  ;;  %vm1484_vm15 = vmand %vm1482_vm13, %vm1483_vm14 }
0x1418   : > { %v1510_v3 = vsel %vm706_vm3, %v1509_v63, 0.0  ;;  %v1506_v4 = vsel %vm706_vm3, %v1505_v57, 0.0 }
0x1419   : > { %1511 = vadd.xlane.f32.xlu1 %v1510_v3  ;;  %1507 = vadd.xlane.f32.xlu0 %v1506_v4 }
0x141d   : > { %1515 = vadd.xlane.f32.xlu0 %v1514_v6 }
0x14a6   : > { %v1512_v7 = vpop.xlane.xlu1 %1511  ;;  %v1508_v31 = vpop.xlane.xlu0 %1507 }
0x14a7   : > { %v1517_v8 = vmin.f32 %v1508_v31, %v1512_v7 }
0x14aa   : > { %v1516_v9 = vpop.xlane.xlu0 %1515 }
0x14ab   : > { %v1518_v10 = vmin.f32 %v1517_v8, %v1516_v9 }
0x14ad   : > { %vm1519_vm8 = vcmp.eq.f32.partialorder %v1508_v31, %v1518_v10  ;;  %vm1521_vm9 = vcmp.eq.f32.partialorder %v1512_v7, %v1518_v10 }
0x14ae   : > { %vm1520_vm11 = vmxor %vm1519_vm8, %vm2334_vm4 }
0x14af   : > { %vm1522_vm12 = vmand %vm1520_vm11, %vm1521_vm9 }
0x14b0   : > { %vm1523_vm0 = vmor %vm1519_vm8, %vm1522_vm12  ;;  %v1525_v12 = vsel %vm1522_vm12, %v1472_v45, %v2086_v60 }
0x14b1   : > { %v1524_v14 = vsel %vm1523_vm0, %v2085_v46, %v1471_v44  ;;  %v1526_v15 = vsel %vm1519_vm8, %v2086_v60, %v1525_v12 }
0x14b2   : > { %v1527_v16 = vsel %vm1484_vm15, %v1524_v14, %v1471_v44  ;;  %v1528_v17 = vsel %vm1484_vm15, %v1526_v15, %v1472_v45 }
0x14b3   : > { %vm1533_vm10 = vcmp.eq.s32.totalorder %v2723_v13, %v1528_v17  ;;  %v2088_v18 = vadd.s32 4294967295, %v1527_v16  ;;  %vm1529_vm1 = vcmp.eq.s32.totalorder %v2507_v29, %v1527_v16  ;;  %v2089_v38 = vadd.s32 4294967295, %v1528_v17 }
0x14b4   : > { %vm1532_vm5 = vmand %vm1484_vm15, %vm1529_vm1  ;;  %v1551_v20 = vsel %vm1529_vm1, %v2713_v1, 0.0  ;;  %vm1538_vm14 = vcmp.gt.s32.totalorder %v1527_v16, 0  ;;  %vm1539_vm12 = vcmp.gt.s32.totalorder %v1528_v17, 0 }
0x14b5   : > { %vm1542_vm6 = vcmp.eq.s32.totalorder %v2507_v29, %v2088_v18  ;;  %vm1534_vm7 = vmand %vm1532_vm5, %vm1533_vm10  ;;  %v1552_v21 = vsel %vm706_vm3, %v1551_v20, 0.0  ;;  %vm1560_vm8 = vcmp.eq.s32.totalorder %v2723_v13, %v2089_v38 }
0x14b6   : > { %v1543_v22 = vsel %vm1542_vm6, %v2713_v1, 0.0  ;;  %v2087_v23 = vsel %vm1534_vm7, 1.0, %v2329_v0  ;;  %v1553_v24 = vrot.slane %v1552_v21, 4 }
0x14b7   : > { %v1544_v28 = vsel %vm706_vm3, %v1543_v22, 0.0  ;;  %v1537_v25 = vmax.f32 %v2845_v54, %v2087_v23 }
0x14b8   : > { %v1545_v26 = vrot.slane %v1544_v28, 4  ;;  %v1554_v27 = vadd.f32 %v1553_v24, %v1552_v21 }
0x14ba   : > { %v1546_v30 = vadd.f32 %v1545_v26, %v1544_v28  ;;  %v1555_v32 = vrot.slane %v1554_v27, 2 }
0x14bc   : > { %v1547_v33 = vrot.slane %v1546_v30, 2  ;;  %v1556_v34 = vadd.f32 %v1555_v32, %v1554_v27 }
0x14be   : > { %v1548_v35 = vadd.f32 %v1547_v33, %v1546_v30  ;;  %v1557_v36 = vrot.slane %v1556_v34, 1 }
0x14c0   : > { %v1549_v39 = vrot.slane %v1548_v35, 1  ;;  %v1558_v42 = vadd.f32 %v1557_v36, %v1556_v34 }
0x14c2   : > { %v1550_v40 = vadd.f32 %v1549_v39, %v1548_v35  ;;  %v1569_v47 = vsel %vm1560_vm8, %v1558_v42, 0.0 }
0x14c3   : > { %v1570_v49 = vsel %vm706_vm3, %v1569_v47, 0.0 }
0x14c4   : > { %v1565_v43 = vsel %vm1533_vm10, %v1550_v40, 0.0  ;;  %v1561_v44 = vsel %vm1560_vm8, %v1550_v40, 0.0  ;;  %vm1540_vm10 = vmand %vm1538_vm14, %vm1539_vm12 }
0x14c5   : > { %v1566_v45 = vsel %vm706_vm3, %v1565_v43, 0.0  ;;  %v1562_v46 = vsel %vm706_vm3, %v1561_v44, 0.0 }
0x14c6   : > { %1567 = vadd.xlane.f32.xlu0 %v1566_v45  ;;  %1563 = vadd.xlane.f32.xlu1 %v1562_v46 }
0x14ca   : > { %1571 = vadd.xlane.f32.xlu1 %v1570_v49 }
0x1553   : > { %v1568_v50 = vpop.xlane.xlu0 %1567  ;;  %v1564_v51 = vpop.xlane.xlu1 %1563 }
0x1554   : > { %v1573_v52 = vmin.f32 %v1564_v51, %v1568_v50 }
0x1557   : > { %v1572_v53 = vpop.xlane.xlu1 %1571 }
0x1558   : > { %v1574_v54 = vmin.f32 %v1573_v52, %v1572_v53 }
0x155a   : > { %vm1575_vm9 = vcmp.eq.f32.partialorder %v1564_v51, %v1574_v54  ;;  %vm1577_vm11 = vcmp.eq.f32.partialorder %v1568_v50, %v1574_v54 }
0x155b   : > { %vm1576_vm13 = vmxor %vm1575_vm9, %vm2334_vm4 }
0x155c   : > { %vm1578_vm0 = vmand %vm1576_vm13, %vm1577_vm11 }
0x155d   : > { %vm1579_vm15 = vmor %vm1575_vm9, %vm1578_vm0  ;;  %v1581_v55 = vsel %vm1578_vm0, %v1528_v17, %v2089_v38 }
0x155e   : > { %v1580_v56 = vsel %vm1579_vm15, %v2088_v18, %v1527_v16  ;;  %v1582_v58 = vsel %vm1575_vm9, %v2089_v38, %v1581_v55 }
0x155f   : > { %v1583_v2 = vsel %vm1540_vm10, %v1580_v56, %v1527_v16  ;;  %v1584_v41 = vsel %vm1540_vm10, %v1582_v58, %v1528_v17 }
0x1560   : > { %vm1589_vm1 = vcmp.eq.s32.totalorder %v2723_v13, %v1584_v41  ;;  %v2091_v59 = vadd.s32 4294967295, %v1583_v2  ;;  %vm1585_vm5 = vcmp.eq.s32.totalorder %v2507_v29, %v1583_v2  ;;  %v2092_v9 = vadd.s32 4294967295, %v1584_v41 }
0x1561   : > { %vm1588_vm6 = vmand %vm1540_vm10, %vm1585_vm5  ;;  %v1607_v11 = vsel %vm1585_vm5, %v2713_v1, 0.0  ;;  %vm1594_vm12 = vcmp.gt.s32.totalorder %v1583_v2, 0  ;;  %vm1595_vm0 = vcmp.gt.s32.totalorder %v1584_v41, 0 }
0x1562   : > { %vm1598_vm7 = vcmp.eq.s32.totalorder %v2507_v29, %v2091_v59  ;;  %vm1590_vm8 = vmand %vm1588_vm6, %vm1589_vm1  ;;  %v1608_v48 = vsel %vm706_vm3, %v1607_v11, 0.0  ;;  %vm1616_vm9 = vcmp.eq.s32.totalorder %v2723_v13, %v2092_v9 }
0x1563   : > { %v1599_v60 = vsel %vm1598_vm7, %v2713_v1, 0.0  ;;  %v2090_v61 = vsel %vm1590_vm8, 1.0, %v2329_v0  ;;  %v1609_v19 = vrot.slane %v1608_v48, 4 }
0x1564   : > { %v1600_v62 = vsel %vm706_vm3, %v1599_v60, 0.0  ;;  %v2882_v63 = vmax.f32 %v1537_v25, %v2090_v61 }
0x1565   : > { %v1601_v57 = vrot.slane %v1600_v62, 4  ;;  %v1610_v3 = vadd.f32 %v1609_v19, %v1608_v48 }
0x1567   : > { %v1602_v4 = vadd.f32 %v1601_v57, %v1600_v62  ;;  %v1611_v5 = vrot.slane %v1610_v3, 2 }
0x1569   : > { %v1603_v6 = vrot.slane %v1602_v4, 2  ;;  %v1612_v7 = vadd.f32 %v1611_v5, %v1610_v3 }
0x156b   : > { %v1604_v31 = vadd.f32 %v1603_v6, %v1602_v4  ;;  %v1613_v8 = vrot.slane %v1612_v7, 1 }
0x156d   : > { %v1605_v10 = vrot.slane %v1604_v31, 1  ;;  %v1614_v14 = vadd.f32 %v1613_v8, %v1612_v7 }
0x156f   : > { %v1606_v12 = vadd.f32 %v1605_v10, %v1604_v31  ;;  %v1625_v20 = vsel %vm1616_vm9, %v1614_v14, 0.0 }
0x1570   : > { %v1626_v21 = vsel %vm706_vm3, %v1625_v20, 0.0 }
0x1571   : > { %v1621_v15 = vsel %vm1589_vm1, %v1606_v12, 0.0  ;;  %v1617_v16 = vsel %vm1616_vm9, %v1606_v12, 0.0  ;;  %vm1596_vm1 = vmand %vm1594_vm12, %vm1595_vm0 }
0x1572   : > { %v1622_v17 = vsel %vm706_vm3, %v1621_v15, 0.0  ;;  %v1618_v18 = vsel %vm706_vm3, %v1617_v16, 0.0 }
0x1573   : > { %1623 = vadd.xlane.f32.xlu1 %v1622_v17  ;;  %1619 = vadd.xlane.f32.xlu0 %v1618_v18 }
0x1577   : > { %1627 = vadd.xlane.f32.xlu0 %v1626_v21 }
0x1600   : > { %v1624_v22 = vpop.xlane.xlu1 %1623  ;;  %v1620_v23 = vpop.xlane.xlu0 %1619 }
0x1601   : > { %v1629_v24 = vmin.f32 %v1620_v23, %v1624_v22 }
0x1604   : > { %v1628_v28 = vpop.xlane.xlu0 %1627 }
0x1605   : > { %v1630_v25 = vmin.f32 %v1629_v24, %v1628_v28 }
0x1607   : > { %vm1631_vm11 = vcmp.eq.f32.partialorder %v1620_v23, %v1630_v25  ;;  %vm1633_vm13 = vcmp.eq.f32.partialorder %v1624_v22, %v1630_v25 }
0x1608   : > { %vm1632_vm14 = vmxor %vm1631_vm11, %vm2334_vm4 }
0x1609   : > { %vm1634_vm15 = vmand %vm1632_vm14, %vm1633_vm13 }
0x160a   : > { %vm1635_vm10 = vmor %vm1631_vm11, %vm1634_vm15  ;;  %v1637_v26 = vsel %vm1634_vm15, %v1584_v41, %v2092_v9 }
0x160b   : > { %v1636_v27 = vsel %vm1635_vm10, %v2091_v59, %v1583_v2  ;;  %v1638_v30 = vsel %vm1631_vm11, %v2092_v9, %v1637_v26 }
0x160c   : > { %v1639_v32 = vsel %vm1596_vm1, %v1636_v27, %v1583_v2  ;;  %v1640_v33 = vsel %vm1596_vm1, %v1638_v30, %v1584_v41 }
0x160d   : > { %vm1645_vm5 = vcmp.eq.s32.totalorder %v2723_v13, %v1640_v33  ;;  %v2094_v34 = vadd.s32 4294967295, %v1639_v32  ;;  %vm1641_vm6 = vcmp.eq.s32.totalorder %v2507_v29, %v1639_v32  ;;  %v2095_v53 = vadd.s32 4294967295, %v1640_v33 }
0x160e   : > { %vm1644_vm7 = vmand %vm1596_vm1, %vm1641_vm6  ;;  %v1663_v35 = vsel %vm1641_vm6, %v2713_v1, 0.0  ;;  %vm1650_vm0 = vcmp.gt.s32.totalorder %v1639_v32, 0  ;;  %vm1651_vm15 = vcmp.gt.s32.totalorder %v1640_v33, 0 }
0x160f   : > { %vm1654_vm8 = vcmp.eq.s32.totalorder %v2507_v29, %v2094_v34  ;;  %vm1646_vm9 = vmand %vm1644_vm7, %vm1645_vm5  ;;  %v1664_v36 = vsel %vm706_vm3, %v1663_v35, 0.0  ;;  %vm1672_vm11 = vcmp.eq.s32.totalorder %v2723_v13, %v2095_v53 }
0x1610   : > { %v1655_v38 = vsel %vm1654_vm8, %v2713_v1, 0.0  ;;  %v2093_v39 = vsel %vm1646_vm9, 1.0, %v2329_v0  ;;  %v1665_v40 = vrot.slane %v1664_v36, 4 }
0x1611   : > { %v1656_v42 = vsel %vm706_vm3, %v1655_v38, 0.0  ;;  %v1649_v43 = vmax.f32 %v2882_v63, %v2093_v39 }
0x1612   : > { %v1657_v44 = vrot.slane %v1656_v42, 4  ;;  %v1666_v45 = vadd.f32 %v1665_v40, %v1664_v36 }
0x1614   : > { %v1658_v46 = vadd.f32 %v1657_v44, %v1656_v42  ;;  %v1667_v47 = vrot.slane %v1666_v45, 2 }
0x1616   : > { %v1659_v49 = vrot.slane %v1658_v46, 2  ;;  %v1668_v50 = vadd.f32 %v1667_v47, %v1666_v45 }
0x1618   : > { %v1660_v51 = vadd.f32 %v1659_v49, %v1658_v46  ;;  %v1669_v52 = vrot.slane %v1668_v50, 1 }
0x161a   : > { %v1661_v54 = vrot.slane %v1660_v51, 1  ;;  %v1670_v56 = vadd.f32 %v1669_v52, %v1668_v50 }
0x161c   : > { %v1662_v55 = vadd.f32 %v1661_v54, %v1660_v51  ;;  %v1681_v11 = vsel %vm1672_vm11, %v1670_v56, 0.0 }
0x161d   : > { %v1682_v48 = vsel %vm706_vm3, %v1681_v11, 0.0 }
0x161e   : > { %v1677_v58 = vsel %vm1645_vm5, %v1662_v55, 0.0  ;;  %v1673_v2 = vsel %vm1672_vm11, %v1662_v55, 0.0  ;;  %vm1652_vm5 = vmand %vm1650_vm0, %vm1651_vm15 }
0x161f   : > { %v1678_v41 = vsel %vm706_vm3, %v1677_v58, 0.0  ;;  %v1674_v59 = vsel %vm706_vm3, %v1673_v2, 0.0 }
0x1620   : > { %1679 = vadd.xlane.f32.xlu0 %v1678_v41  ;;  %1675 = vadd.xlane.f32.xlu1 %v1674_v59 }
0x1624   : > { %1683 = vadd.xlane.f32.xlu1 %v1682_v48 }
0x16ad   : > { %v1680_v60 = vpop.xlane.xlu0 %1679  ;;  %v1676_v61 = vpop.xlane.xlu1 %1675 }
0x16ae   : > { %v1685_v19 = vmin.f32 %v1676_v61, %v1680_v60 }
0x16b1   : > { %v1684_v62 = vpop.xlane.xlu1 %1683 }
0x16b2   : > { %v1686_v63 = vmin.f32 %v1685_v19, %v1684_v62 }
0x16b4   : > { %vm1687_vm13 = vcmp.eq.f32.partialorder %v1676_v61, %v1686_v63  ;;  %vm1689_vm14 = vcmp.eq.f32.partialorder %v1680_v60, %v1686_v63 }
0x16b5   : > { %vm1688_vm12 = vmxor %vm1687_vm13, %vm2334_vm4 }
0x16b6   : > { %vm1690_vm10 = vmand %vm1688_vm12, %vm1689_vm14 }
0x16b7   : > { %vm1691_vm1 = vmor %vm1687_vm13, %vm1690_vm10  ;;  %v1693_v57 = vsel %vm1690_vm10, %v1640_v33, %v2095_v53 }
0x16b8   : > { %v1692_v3 = vsel %vm1691_vm1, %v2094_v34, %v1639_v32  ;;  %v1694_v4 = vsel %vm1687_vm13, %v2095_v53, %v1693_v57 }
0x16b9   : > { %v1695_v5 = vsel %vm1652_vm5, %v1692_v3, %v1639_v32  ;;  %v1696_v6 = vsel %vm1652_vm5, %v1694_v4, %v1640_v33 }
0x16ba   : > { %vm1701_vm6 = vcmp.eq.s32.totalorder %v2723_v13, %v1696_v6  ;;  %v2097_v7 = vadd.s32 4294967295, %v1695_v5  ;;  %vm1697_vm7 = vcmp.eq.s32.totalorder %v2507_v29, %v1695_v5  ;;  %v2098_v28 = vadd.s32 4294967295, %v1696_v6 }
0x16bb   : > { %vm1700_vm8 = vmand %vm1652_vm5, %vm1697_vm7  ;;  %v1719_v31 = vsel %vm1697_vm7, %v2713_v1, 0.0  ;;  %vm1706_vm15 = vcmp.gt.s32.totalorder %v1695_v5, 0  ;;  %vm1707_vm10 = vcmp.gt.s32.totalorder %v1696_v6, 0 }
0x16bc   : > { %vm1710_vm9 = vcmp.eq.s32.totalorder %v2507_v29, %v2097_v7  ;;  %vm1702_vm11 = vmand %vm1700_vm8, %vm1701_vm6  ;;  %v1720_v8 = vsel %vm706_vm3, %v1719_v31, 0.0  ;;  %vm1728_vm13 = vcmp.eq.s32.totalorder %v2723_v13, %v2098_v28 }
0x16bd   : > { %v1711_v9 = vsel %vm1710_vm9, %v2713_v1, 0.0  ;;  %v2096_v10 = vsel %vm1702_vm11, 1.0, %v2329_v0  ;;  %v1721_v12 = vrot.slane %v1720_v8, 4 }
0x16be   : > { %v1712_v14 = vsel %vm706_vm3, %v1711_v9, 0.0  ;;  %v2919_v15 = vmax.f32 %v1649_v43, %v2096_v10 }
0x16bf   : > { %v1713_v16 = vrot.slane %v1712_v14, 4  ;;  %v1722_v17 = vadd.f32 %v1721_v12, %v1720_v8 }
0x16c1   : > { %v1714_v18 = vadd.f32 %v1713_v16, %v1712_v14  ;;  %v1723_v20 = vrot.slane %v1722_v17, 2 }
0x16c3   : > { %v1715_v21 = vrot.slane %v1714_v18, 2  ;;  %v1724_v22 = vadd.f32 %v1723_v20, %v1722_v17 }
0x16c5   : > { %v1716_v23 = vadd.f32 %v1715_v21, %v1714_v18  ;;  %v1725_v24 = vrot.slane %v1724_v22, 1 }
0x16c7   : > { %v1717_v25 = vrot.slane %v1716_v23, 1  ;;  %v1726_v27 = vadd.f32 %v1725_v24, %v1724_v22 }
0x16c9   : > { %v1718_v26 = vadd.f32 %v1717_v25, %v1716_v23  ;;  %v1737_v35 = vsel %vm1728_vm13, %v1726_v27, 0.0 }
0x16ca   : > { %v1738_v36 = vsel %vm706_vm3, %v1737_v35, 0.0 }
0x16cb   : > { %v1733_v30 = vsel %vm1701_vm6, %v1718_v26, 0.0  ;;  %v1729_v32 = vsel %vm1728_vm13, %v1718_v26, 0.0  ;;  %vm1708_vm6 = vmand %vm1706_vm15, %vm1707_vm10 }
0x16cc   : > { %v1734_v33 = vsel %vm706_vm3, %v1733_v30, 0.0  ;;  %v1730_v34 = vsel %vm706_vm3, %v1729_v32, 0.0 }
0x16cd   : > { %1735 = vadd.xlane.f32.xlu1 %v1734_v33  ;;  %1731 = vadd.xlane.f32.xlu0 %v1730_v34 }
0x16d1   : > { %1739 = vadd.xlane.f32.xlu0 %v1738_v36 }
0x175a   : > { %v1736_v38 = vpop.xlane.xlu1 %1735  ;;  %v1732_v39 = vpop.xlane.xlu0 %1731 }
0x175b   : > { %v1741_v40 = vmin.f32 %v1732_v39, %v1736_v38 }
0x175e   : > { %v1740_v42 = vpop.xlane.xlu0 %1739 }
0x175f   : > { %v1742_v43 = vmin.f32 %v1741_v40, %v1740_v42 }
0x1761   : > { %vm1743_vm14 = vcmp.eq.f32.partialorder %v1732_v39, %v1742_v43  ;;  %vm1745_vm12 = vcmp.eq.f32.partialorder %v1736_v38, %v1742_v43 }
0x1762   : > { %vm1744_vm0 = vmxor %vm1743_vm14, %vm2334_vm4 }
0x1763   : > { %vm1746_vm1 = vmand %vm1744_vm0, %vm1745_vm12 }
0x1764   : > { %vm1747_vm5 = vmor %vm1743_vm14, %vm1746_vm1  ;;  %v1749_v44 = vsel %vm1746_vm1, %v1696_v6, %v2098_v28 }
0x1765   : > { %v1748_v45 = vsel %vm1747_vm5, %v2097_v7, %v1695_v5  ;;  %v1750_v46 = vsel %vm1743_vm14, %v2098_v28, %v1749_v44 }
0x1766   : > { %v1751_v47 = vsel %vm1708_vm6, %v1748_v45, %v1695_v5  ;;  %v1752_v49 = vsel %vm1708_vm6, %v1750_v46, %v1696_v6 }
0x1767   : > { %vm1757_vm7 = vcmp.eq.s32.totalorder %v2723_v13, %v1752_v49  ;;  %v2100_v50 = vadd.s32 4294967295, %v1751_v47  ;;  %vm1753_vm8 = vcmp.eq.s32.totalorder %v2507_v29, %v1751_v47  ;;  %v2101_v62 = vadd.s32 4294967295, %v1752_v49 }
0x1768   : > { %vm1756_vm9 = vmand %vm1708_vm6, %vm1753_vm8  ;;  %v1775_v51 = vsel %vm1753_vm8, %v2713_v1, 0.0  ;;  %vm1762_vm10 = vcmp.gt.s32.totalorder %v1751_v47, 0  ;;  %vm1763_vm1 = vcmp.gt.s32.totalorder %v1752_v49, 0 }
0x1769   : > { %vm1766_vm11 = vcmp.eq.s32.totalorder %v2507_v29, %v2100_v50  ;;  %vm1758_vm13 = vmand %vm1756_vm9, %vm1757_vm7  ;;  %v1776_v52 = vsel %vm706_vm3, %v1775_v51, 0.0  ;;  %vm1784_vm14 = vcmp.eq.s32.totalorder %v2723_v13, %v2101_v62 }
0x176a   : > { %v1767_v53 = vsel %vm1766_vm11, %v2713_v1, 0.0  ;;  %v2099_v54 = vsel %vm1758_vm13, 1.0, %v2329_v0  ;;  %v1777_v55 = vrot.slane %v1776_v52, 4 }
0x176b   : > { %v1768_v56 = vsel %vm706_vm3, %v1767_v53, 0.0  ;;  %v1761_v58 = vmax.f32 %v2919_v15, %v2099_v54 }
0x176c   : > { %v1769_v2 = vrot.slane %v1768_v56, 4  ;;  %v1778_v41 = vadd.f32 %v1777_v55, %v1776_v52 }
0x176e   : > { %v1770_v59 = vadd.f32 %v1769_v2, %v1768_v56  ;;  %v1779_v11 = vrot.slane %v1778_v41, 2 }
0x1770   : > { %v1771_v48 = vrot.slane %v1770_v59, 2  ;;  %v1780_v60 = vadd.f32 %v1779_v11, %v1778_v41 }
0x1772   : > { %v1772_v61 = vadd.f32 %v1771_v48, %v1770_v59  ;;  %v1781_v19 = vrot.slane %v1780_v60, 1 }
0x1774   : > { %v1773_v63 = vrot.slane %v1772_v61, 1  ;;  %v1782_v3 = vadd.f32 %v1781_v19, %v1780_v60  ;;  %v1943_v60 = vsel %vm706_vm3, %v2514_v37, 0.0 }
0x1776   : > { %v1774_v57 = vadd.f32 %v1773_v63, %v1772_v61  ;;  %v1793_v31 = vsel %vm1784_vm14, %v1782_v3, 0.0  ;;  %v1944_v63 = vrot.slane %v1943_v60, 4 }
0x1777   : > { %v1794_v8 = vsel %vm706_vm3, %v1793_v31, 0.0 }
0x1778   : > { %v1789_v4 = vsel %vm1757_vm7, %v1774_v57, 0.0  ;;  %v1785_v5 = vsel %vm1784_vm14, %v1774_v57, 0.0  ;;  %vm1764_vm7 = vmand %vm1762_vm10, %vm1763_vm1 }
0x1779   : > { %v1790_v6 = vsel %vm706_vm3, %v1789_v4, 0.0  ;;  %v1786_v7 = vsel %vm706_vm3, %v1785_v5, 0.0 }
0x177a   : > { %1791 = vadd.xlane.f32.xlu0 %v1790_v6  ;;  %1787 = vadd.xlane.f32.xlu1 %v1786_v7 }
0x177e   : > { %1795 = vadd.xlane.f32.xlu1 %v1794_v8  ;;  %v1945_v8 = vadd.f32 %v1944_v63, %v1943_v60 }
0x1807   : > { %v1792_v9 = vpop.xlane.xlu0 %1791  ;;  %v1788_v10 = vpop.xlane.xlu1 %1787 }
0x1808   : > { %v1797_v12 = vmin.f32 %v1788_v10, %v1792_v9 }
0x180b   : > { %v1796_v14 = vpop.xlane.xlu1 %1795 }
0x180c   : > { %v1798_v15 = vmin.f32 %v1797_v12, %v1796_v14 }
0x180e   : > { %vm1799_vm12 = vcmp.eq.f32.partialorder %v1788_v10, %v1798_v15  ;;  %vm1801_vm0 = vcmp.eq.f32.partialorder %v1792_v9, %v1798_v15  ;;  %v1946_v15 = vrot.slane %v1945_v8, 2 }
0x180f   : > { %vm1800_vm15 = vmxor %vm1799_vm12, %vm2334_vm4 }
0x1810   : > { %vm1802_vm5 = vmand %vm1800_vm15, %vm1801_vm0 }
0x1811   : > { %vm1803_vm6 = vmor %vm1799_vm12, %vm1802_vm5  ;;  %v1805_v16 = vsel %vm1802_vm5, %v1752_v49, %v2101_v62 }
0x1812   : > { %v1804_v17 = vsel %vm1803_vm6, %v2100_v50, %v1751_v47  ;;  %v1806_v18 = vsel %vm1799_vm12, %v2101_v62, %v1805_v16 }
0x1813   : > { %v1807_v20 = vsel %vm1764_vm7, %v1804_v17, %v1751_v47  ;;  %v1808_v21 = vsel %vm1764_vm7, %v1806_v18, %v1752_v49 }
0x1814   : > { %vm1813_vm8 = vcmp.eq.s32.totalorder %v2723_v13, %v1808_v21  ;;  %v2103_v22 = vadd.s32 4294967295, %v1807_v20  ;;  %vm1809_vm9 = vcmp.eq.s32.totalorder %v2507_v29, %v1807_v20  ;;  %v2104_v42 = vadd.s32 4294967295, %v1808_v21 }
0x1815   : > { %vm1812_vm11 = vmand %vm1764_vm7, %vm1809_vm9  ;;  %v1831_v23 = vsel %vm1809_vm9, %v2713_v1, 0.0  ;;  %vm1818_vm10 = vcmp.gt.s32.totalorder %v1807_v20, 0  ;;  %vm1819_vm1 = vcmp.gt.s32.totalorder %v1808_v21, 0 }
0x1816   : > { %vm1822_vm13 = vcmp.eq.s32.totalorder %v2507_v29, %v2103_v22  ;;  %vm1814_vm14 = vmand %vm1812_vm11, %vm1813_vm8  ;;  %v1832_v24 = vsel %vm706_vm3, %v1831_v23, 0.0  ;;  %vm1840_vm12 = vcmp.eq.s32.totalorder %v2723_v13, %v2104_v42 }
0x1817   : > { %v1823_v28 = vsel %vm1822_vm13, %v2713_v1, 0.0  ;;  %v2102_v25 = vsel %vm1814_vm14, 1.0, %v2329_v0  ;;  %v1833_v26 = vrot.slane %v1832_v24, 4 }
0x1818   : > { %v1824_v27 = vsel %vm706_vm3, %v1823_v28, 0.0  ;;  %v2956_v30 = vmax.f32 %v1761_v58, %v2102_v25 }
0x1819   : > { %v1825_v32 = vrot.slane %v1824_v27, 4  ;;  %v1834_v33 = vadd.f32 %v1833_v26, %v1832_v24 }
0x181b   : > { %v1826_v34 = vadd.f32 %v1825_v32, %v1824_v27  ;;  %v1835_v35 = vrot.slane %v1834_v33, 2 }
0x181d   : > { %v1827_v36 = vrot.slane %v1826_v34, 2  ;;  %v1836_v38 = vadd.f32 %v1835_v35, %v1834_v33 }
0x181f   : > { %v1828_v39 = vadd.f32 %v1827_v36, %v1826_v34  ;;  %v1837_v40 = vrot.slane %v1836_v38, 1 }
0x1821   : > { %v1829_v43 = vrot.slane %v1828_v39, 1  ;;  %v1838_v45 = vadd.f32 %v1837_v40, %v1836_v38 }
0x1823   : > { %v1830_v44 = vadd.f32 %v1829_v43, %v1828_v39  ;;  %v1849_v51 = vsel %vm1840_vm12, %v1838_v45, 0.0 }
0x1824   : > { %v1850_v52 = vsel %vm706_vm3, %v1849_v51, 0.0 }
0x1825   : > { %v1845_v46 = vsel %vm1813_vm8, %v1830_v44, 0.0  ;;  %v1841_v47 = vsel %vm1840_vm12, %v1830_v44, 0.0  ;;  %vm1820_vm8 = vmand %vm1818_vm10, %vm1819_vm1 }
0x1826   : > { %v1846_v49 = vsel %vm706_vm3, %v1845_v46, 0.0  ;;  %v1842_v50 = vsel %vm706_vm3, %v1841_v47, 0.0 }
0x1827   : > { %1847 = vadd.xlane.f32.xlu1 %v1846_v49  ;;  %1843 = vadd.xlane.f32.xlu0 %v1842_v50 }
0x182b   : > { %1851 = vadd.xlane.f32.xlu0 %v1850_v52 }
0x18b4   : > { %v1848_v53 = vpop.xlane.xlu1 %1847  ;;  %v1844_v54 = vpop.xlane.xlu0 %1843 }
0x18b5   : > { %v1853_v55 = vmin.f32 %v1844_v54, %v1848_v53 }
0x18b8   : > { %v1852_v56 = vpop.xlane.xlu0 %1851 }
0x18b9   : > { %v1854_v58 = vmin.f32 %v1853_v55, %v1852_v56 }
0x18bb   : > { %vm1855_vm0 = vcmp.eq.f32.partialorder %v1844_v54, %v1854_v58  ;;  %vm1857_vm15 = vcmp.eq.f32.partialorder %v1848_v53, %v1854_v58 }
0x18bc   : > { %vm1856_vm5 = vmxor %vm1855_vm0, %vm2334_vm4 }
0x18bd   : > { %vm1858_vm6 = vmand %vm1856_vm5, %vm1857_vm15 }
0x18be   : > { %vm1859_vm7 = vmor %vm1855_vm0, %vm1858_vm6  ;;  %v1861_v2 = vsel %vm1858_vm6, %v1808_v21, %v2104_v42 }
0x18bf   : > { %v1860_v41 = vsel %vm1859_vm7, %v2103_v22, %v1807_v20  ;;  %v1862_v59 = vsel %vm1855_vm0, %v2104_v42, %v1861_v2 }
0x18c0   : > { %v2965_v11 = vsel %vm1820_vm8, %v1860_v41, %v1807_v20  ;;  %v2967_v48 = vsel %vm1820_vm8, %v1862_v59, %v1808_v21  ;;  %v1947_v20 = vadd.f32 %v1946_v15, %v1945_v8 }
0x18c1   : > { %vm1869_vm9 = vcmp.eq.s32.totalorder %v2723_v13, %v2967_v48  ;;  %v2974_v61 = vadd.s32 4294967295, %v2965_v11  ;;  %vm1865_vm11 = vcmp.eq.s32.totalorder %v2507_v29, %v2965_v11  ;;  %vm1874_vm1 = vcmp.gt.s32.totalorder %v2965_v11, 0 }
0x18c2   : > { %vm1868_vm13 = vmand %vm1820_vm8, %vm1865_vm11  ;;  %v1887_v19 = vsel %vm1865_vm11, %v2713_v1, 0.0  ;;  %v1948_v26 = vrot.slane %v1947_v20, 1  ;;  %vm1875_vm5 = vcmp.gt.s32.totalorder %v2967_v48, 0  ;;  %vm1930_vm8 = vcmp.eq.s32.totalorder %v2723_v13, 0 }
0x18c3   : > { %vm1878_vm14 = vcmp.eq.s32.totalorder %v2507_v29, %v2974_v61  ;;  %vm1870_vm12 = vmand %vm1868_vm13, %vm1869_vm9  ;;  %v1888_v62 = vsel %vm706_vm3, %v1887_v19, 0.0 }
0x18c4   : > { %v1879_v57 = vsel %vm1878_vm14, %v2713_v1, 0.0  ;;  %v2987_v3 = vsel %vm1870_vm12, 1.0, %v2329_v0  ;;  %v1889_v4 = vrot.slane %v1888_v62, 4  ;;  %v2107_v1 = vadd.s32 4294967295, %v2967_v48  ;;  %vm1876_vm11 = vmand %vm1874_vm1, %vm1875_vm5 }
0x18c5   : > { %v1880_v5 = vsel %vm706_vm3, %v1879_v57, 0.0  ;;  %v1873_v6 = vmax.f32 %v2956_v30, %v2987_v3  ;;  %v1949_v32 = vadd.f32 %v1948_v26, %v1947_v20 }
0x18c6   : > { %v1881_v7 = vrot.slane %v1880_v5, 4  ;;  %v1890_v31 = vadd.f32 %v1889_v4, %v1888_v62  ;;  %vm1896_vm0 = vcmp.eq.s32.totalorder %v2723_v13, %v2107_v1 }
0x18c7   : > { %v1953_v33 = vsel %vm706_vm3, %v1949_v32, -inf }
0x18c8   : > { %v1882_v9 = vadd.f32 %v1881_v7, %v1880_v5  ;;  %v1891_v10 = vrot.slane %v1890_v31, 2 }
0x18ca   : > { %v1883_v12 = vrot.slane %v1882_v9, 2  ;;  %v1892_v14 = vadd.f32 %v1891_v10, %v1890_v31 }
0x18cc   : > { %v1884_v16 = vadd.f32 %v1883_v12, %v1882_v9  ;;  %v1893_v17 = vrot.slane %v1892_v14, 1 }
0x18ce   : > { %v1885_v18 = vrot.slane %v1884_v16, 1  ;;  %v1894_v22 = vadd.f32 %v1893_v17, %v1892_v14 }
0x18d0   : > { %v1886_v21 = vadd.f32 %v1885_v18, %v1884_v16  ;;  %v1905_v27 = vsel %vm1896_vm0, %v1894_v22, 0.0 }
0x18d1   : > { %v1906_v30 = vsel %vm706_vm3, %v1905_v27, 0.0 }
0x18d2   : > { %v1901_v23 = vsel %vm1869_vm9, %v1886_v21, 0.0  ;;  %v1897_v24 = vsel %vm1896_vm0, %v1886_v21, 0.0 }
0x18d3   : > { %v1902_v28 = vsel %vm706_vm3, %v1901_v23, 0.0  ;;  %v1898_v25 = vsel %vm706_vm3, %v1897_v24, 0.0 }
0x18d4   : > { %1903 = vadd.xlane.f32.xlu0 %v1902_v28  ;;  %1899 = vadd.xlane.f32.xlu1 %v1898_v25 }
0x18d8   : > { %1907 = vadd.xlane.f32.xlu1 %v1906_v30 }
0x18dc   : > { %1954 = vmax.xlane.f32.xlu1 %v1953_v33 }
0x1961   : > { %v1904_v34 = vpop.xlane.xlu0 %1903  ;;  %v1900_v35 = vpop.xlane.xlu1 %1899 }
0x1962   : > { %v1909_v36 = vmin.f32 %v1900_v35, %v1904_v34 }
0x1965   : > { %v1908_v38 = vpop.xlane.xlu1 %1907 }
0x1966   : > { %v1910_v39 = vmin.f32 %v1909_v36, %v1908_v38 }
0x1968   : > { %vm1911_vm15 = vcmp.eq.f32.partialorder %v1900_v35, %v1910_v39  ;;  %vm1913_vm10 = vcmp.eq.f32.partialorder %v1904_v34, %v1910_v39 }
0x1969   : > { %vm1912_vm6 = vmxor %vm1911_vm15, %vm2334_vm4  ;;  %v1955_v40 = vpop.xlane.xlu1 %1954 }
0x196a   : > { %vm1914_vm7 = vmand %vm1912_vm6, %vm1913_vm10  ;;  %v1965_v42 = vsub.f32 %v1949_v32, %v1955_v40 }
0x196b   : > { %vm1915_vm9 = vmor %vm1911_vm15, %vm1914_vm7  ;;  %v1917_v43 = vsel %vm1914_vm7, %v2967_v48, %v2107_v1 }
0x196c   : > { %v1916_v44 = vsel %vm1915_vm9, %v2974_v61, %v2965_v11  ;;  %v1918_v45 = vsel %vm1911_vm15, %v2107_v1, %v1917_v43  ;;  %v1966_v46 = vmul.f32 1.442695, %v1965_v42  ;;  %vm1931_vm4 = vmand %vm704_vm2, %vm1930_vm8 }
0x196d   : > { %v1919_v47 = vsel %vm1876_vm11, %v1916_v44, %v2965_v11  ;;  %v1920_v49 = vsel %vm1876_vm11, %v1918_v45, %v2967_v48  ;;  %v2109_v51 = vsel %vm1931_vm4, 1.0, %v2329_v0 }
0x196e   : > { %vm1921_vm13 = vcmp.eq.s32.totalorder %v2507_v29, %v1919_v47  ;;  %vm1925_vm14 = vcmp.eq.s32.totalorder %v2723_v13, %v1920_v49  ;;  %2219 = vpow2.f32 %v1966_v46 }
0x196f   : > { %vm1924_vm12 = vmand %vm1876_vm11, %vm1921_vm13 }
0x1970   : > { %vm1926_vm0 = vmand %vm1924_vm12, %vm1925_vm14 }
0x1971   : > { %v2108_v50 = vsel %vm1926_vm0, 1.0, %v2329_v0 }
0x1972   : > { %v1929_v52 = vmax.f32 %v1873_v6, %v2108_v50 }
0x1974   : > { %v1934_v53 = vmax.f32 %v1929_v52, %v2109_v51 }
0x1976   : > { %v1935_v54 = vmul.f32 %v1934_v53, %v2514_v37 }
0x1978   : > { %v2220_v55 = vpop.eup %2219  ;;  %v1936_v56 = vsel %vm706_vm3, %v1935_v54, 0.0 }
0x1979   : > { %v1968_v58 = vsel %vm706_vm3, %v2220_v55, 0.0  ;;  %v1937_v2 = vrot.slane %v1936_v56, 4 }
0x197a   : > { %1969 = vadd.xlane.f32.xlu1 %v1968_v58 }
0x197b   : > { %v1938_v29 = vadd.f32 %v1937_v2, %v1936_v56 }
0x197d   : > { %v1939_v13 = vrot.slane %v1938_v29, 2 }
0x197f   : > { %v1940_v41 = vadd.f32 %v1939_v13, %v1938_v29 }
0x1981   : > { %v1941_v59 = vrot.slane %v1940_v41, 1 }
0x1983   : > { %v1942_v11 = vadd.f32 %v1941_v59, %v1940_v41 }
0x1985   : > { %v1950_v48 = vsel %vm706_vm3, %v1942_v11, -inf }
0x1986   : > { %1951 = vmax.xlane.f32.xlu0 %v1950_v48 }
0x1a07   : > { %v1970_v62 = vpop.xlane.xlu1 %1969 }
0x1a13   : > { %v1952_v0 = vpop.xlane.xlu0 %1951 }
0x1a14   : > { %v1956_v60 = vsub.f32 %v1942_v11, %v1952_v0 }
0x1a16   : > { %v1957_v37 = vmul.f32 1.442695, %v1956_v60 }
0x1a18   : > { %2221 = vpow2.f32 %v1957_v37 }
0x1a19   : > { %2223 = vlog2.f32 %v1970_v62 }
0x1a22   : > { %v2222_v61 = vpop.eup %2221 }
0x1a23   : > { %v1959_v19 = vsel %vm706_vm3, %v2222_v61, 0.0  ;;  %v2224_v57 = vpop.eup %2223 }
0x1a24   : > { %1960 = vadd.xlane.f32.xlu0 %v1959_v19  ;;  %v1972_v3 = vmul.f32 0.6931472, %v2224_v57 }
0x1a26   : > { %v1973_v6 = vadd.f32 %v1972_v3, %v1955_v40 }
0x1ab1   : > { %v1961_v63 = vpop.xlane.xlu0 %1960 }
0x1ab2   : > { %2225 = vlog2.f32 %v1961_v63 }
0x1abc   : > { %v2226_v4 = vpop.eup %2225 }
0x1abd   : > { %v1963_v5 = vmul.f32 0.6931472, %v2226_v4 }
0x1abf   : > { %v1964_v7 = vadd.f32 %v1963_v5, %v1952_v0 }
0x1ac1   : > { %v1974_v31 = vsub.f32 %v1964_v7, %v1973_v6 }
0x1ac3   : > { %1975 = vst [vmem:[%s193_s30] sm:$0x1] %v1974_v31 }
0x1ac4 PF: > { %p15_p8 = scmp.ge.s32.totalorder %s2374_s14, 4   ;;  %s3052_s9 = smov %s2317_s10 }
0x1ac5   : > { %s3053_s10 = smov %s2321_s11  ;;  %s3054_s11 = smov %s2384_s17 }
0x1ac6   : > { %s3055_s12 = smov %s2374_s14  ;;  %17 = sbr.rel (!%p15_p8) target bundleno = 5 (0x5), region = 81 }
0x1acd   :  { %1993 = vsyncpa [#allocation3], 1 }
0x1ace   :  { %1995 = vsyncpa [#allocation3 + $0x1], 1 }
0x1acf   :  { %1996 = vsyncpa [#allocation5], 1 }
0x1ad0   :  { %1998 = vsyncpa [#allocation5 + $0x1], 1 }

</bundles_post_ra>
